<compile_context>
chip_gen: v5e
topology: v5e:2x2
jax: 0.10.0
libtpu: 0.0.40
codegen_flags: <defaults>
</compile_context>

<pallas_src>
import functools

import jax
import jax.numpy as jnp
from jax.experimental import pallas as pl
from jax.experimental.pallas import tpu as pltpu

LN_EPS = 1e-5                 # PyTorch nn.LayerNorm default
MXU_DTYPE = jnp.bfloat16      # matmul operand / intermediate dtype (accumulation f32)

ROW_TILE = 256                # row tile target   (multiple of 8)
COL_TILE = 512                # lane tile target  (multiple of 128)
K_TILE = 512                  # contraction tile target (multiple of 128)
VMEM_LIMIT = 48 * 1024 * 1024 # scoped VMEM budget, leaves headroom on v7x (64 MiB)


def _pick_tile(total, target, align):
    """Largest divisor of `total` that is a multiple of `align` and <= target.
    Falls back to the full extent (always a legal block)."""
    if total <= target:
        return total
    start = target - (target % align)
    for cand in range(start, align - 1, -align):
        if total % cand == 0:
            return cand
    return total


# ---------------------------------------------------------------------------
# In-kernel helpers
# ---------------------------------------------------------------------------
def _ln_rows(x, g, b):
    """LayerNorm over the last axis in f32 (biased variance, PyTorch semantics)."""
    xf = x.astype(jnp.float32)
    mean = jnp.mean(xf, axis=-1, keepdims=True)
    xc = xf - mean
    var = jnp.mean(xc * xc, axis=-1, keepdims=True)
    inv = jax.lax.rsqrt(var + LN_EPS)
    return (xc * inv) * g + b


def _erf_poly(x):
    # Exact-erf GELU via the Abramowitz & Stegun 7.1.26 polynomial
    # (|abs err| < 1.5e-7): only exp/mul/add, all lower on the Mosaic VPU/EUP.
    a1, a2, a3, a4, a5 = (0.254829592, -0.284496736, 1.421413741,
                          -1.453152027, 1.061405429)
    pc = 0.3275911
    ax = jnp.abs(x)
    t = 1.0 / (1.0 + pc * ax)
    poly = t * (a1 + t * (a2 + t * (a3 + t * (a4 + t * a5))))
    y = 1.0 - poly * jnp.exp(-ax * ax)
    return jnp.where(x >= 0.0, y, -y)


def _gelu_exact(x):
    return 0.5 * x * (1.0 + _erf_poly(x * 0.7071067811865476))


# ---------------------------------------------------------------------------
# Pallas kernel bodies
# ---------------------------------------------------------------------------
def _ln_kernel(x_ref, g_ref, b_ref, o_ref):
    o_ref[...] = _ln_rows(x_ref[...], g_ref[...], b_ref[...])


def _ln_matmul_kernel(x_ref, g_ref, b_ref, w_ref, o_ref, xn_ref):
    # LN + cast computed once per row tile (column axis is the inner grid axis).
    @pl.when(pl.program_id(1) == 0)
    def _():
        xn_ref[...] = _ln_rows(x_ref[...], g_ref[...], b_ref[...]).astype(MXU_DTYPE)

    o_ref[...] = jnp.dot(xn_ref[...], w_ref[...],
                         preferred_element_type=jnp.float32).astype(o_ref.dtype)


def _ln_matmul_gelu_kernel(x_ref, g_ref, b_ref, w_ref, wb_ref, o_ref, xn_ref):
    @pl.when(pl.program_id(1) == 0)
    def _():
        xn_ref[...] = _ln_rows(x_ref[...], g_ref[...], b_ref[...]).astype(MXU_DTYPE)

    h = jnp.dot(xn_ref[...], w_ref[...],
                preferred_element_type=jnp.float32) + wb_ref[...]
    o_ref[...] = _gelu_exact(h).astype(o_ref.dtype)


def _matmul_bias_res_kernel(x_ref, w_ref, wb_ref, res_ref, o_ref, acc_ref):
    # out = x @ w + bias + residual, K-tiled with an f32 VMEM accumulator.
    @pl.when(pl.program_id(2) == 0)
    def _():
        acc_ref[...] = jnp.zeros_like(acc_ref)

    acc_ref[...] += jnp.dot(x_ref[...], w_ref[...],
                            preferred_element_type=jnp.float32)

    @pl.when(pl.program_id(2) == pl.num_programs(2) - 1)
    def _():
        o_ref[...] = acc_ref[...] + wb_ref[...] + res_ref[...]


def _attn_fused(q2, k2, v2, alibi_ref, w_out, b_out_ref, res, heads, dh, scale):
    """softmax(scale*q k^T + alibi) @ v, per-head, with the output projection
    accumulated head-by-head (no concat), plus bias and residual."""
    d = heads * dh
    acc = res + b_out_ref[...]                      # (N, D) f32
    # TODO(synk): for dh >= 128 move the head loop onto the grid with per-head
    # BlockSpecs and flash-style kv tiling (online softmax) for long sequences.
    for h in range(heads):
        qh = q2[:, h * dh:(h + 1) * dh]
        kh = k2[:, h * dh:(h + 1) * dh]
        vh = v2[:, h * dh:(h + 1) * dh]
        s = jax.lax.dot_general(qh, kh, (((1,), (1,)), ((), ())),
                                preferred_element_type=jnp.float32)
        s = s * scale + alibi_ref[0, h].astype(jnp.float32)
        s = s - jnp.max(s, axis=-1, keepdims=True)
        p = jnp.exp(s)
        p = p * pl.reciprocal(jnp.sum(p, axis=-1, keepdims=True), approx=True)
        oh = jnp.dot(p.astype(MXU_DTYPE), vh, preferred_element_type=jnp.float32)
        acc = acc + jnp.dot(oh.astype(MXU_DTYPE),
                            w_out[h * dh:(h + 1) * dh, :],
                            preferred_element_type=jnp.float32)
    return acc


def _self_attn_kernel(qkv_ref, alibi_ref, w_out_ref, b_out_ref, res_ref, o_ref,
                      *, heads, dh, scale):
    d = heads * dh
    qkv = qkv_ref[0]                               # (N, 3D) bf16: q | k | v
    q2 = qkv[:, 0:d]
    k2 = qkv[:, d:2 * d]
    v2 = qkv[:, 2 * d:3 * d]
    w_out = w_out_ref[...]                         # (D, D) bf16
    res = res_ref[0]                               # (N, D) f32 residual
    o_ref[0] = _attn_fused(q2, k2, v2, alibi_ref, w_out, b_out_ref, res,
                           heads, dh, scale)


def _cross_attn_kernel(q_ref, kv_ref, alibi_ref, w_out_ref, b_out_ref, res_ref,
                       o_ref, *, heads, dh, scale):
    d = heads * dh
    q2 = q_ref[0]                                  # (N, D) bf16
    kv = kv_ref[0]                                 # (M, 2D) bf16: k | v
    k2 = kv[:, 0:d]
    v2 = kv[:, d:2 * d]
    w_out = w_out_ref[...]
    res = res_ref[0]
    o_ref[0] = _attn_fused(q2, k2, v2, alibi_ref, w_out, b_out_ref, res,
                           heads, dh, scale)


# ---------------------------------------------------------------------------
# pallas_call wrappers
# ---------------------------------------------------------------------------
def layernorm(x2d, g, b):
    r, d = x2d.shape
    tm = _pick_tile(r, ROW_TILE, 8)
    return pl.pallas_call(
        _ln_kernel,
        grid=(r // tm,),
        in_specs=[pl.BlockSpec((tm, d), lambda i: (i, 0)),
                  pl.BlockSpec((1, d), lambda i: (0, 0)),
                  pl.BlockSpec((1, d), lambda i: (0, 0))],
        out_specs=pl.BlockSpec((tm, d), lambda i: (i, 0)),
        out_shape=jax.ShapeDtypeStruct((r, d), jnp.float32),
        compiler_params=pltpu.CompilerParams(dimension_semantics=("parallel",),
                                             vmem_limit_bytes=VMEM_LIMIT),
    )(x2d, g, b)


def ln_matmul(x2d, g, b, w):
    """LayerNorm(x) @ w  (w pre-transposed (in, out), bf16; bf16 output)."""
    r, d = x2d.shape
    c = w.shape[1]
    tm = _pick_tile(r, ROW_TILE, 8)
    tn = _pick_tile(c, COL_TILE, 128)
    cost = pl.CostEstimate(flops=2 * r * d * c, transcendentals=0,
                           bytes_accessed=4 * r * d + 2 * d * c + 2 * r * c)
    return pl.pallas_call(
        _ln_matmul_kernel,
        grid=(r // tm, c // tn),
        in_specs=[pl.BlockSpec((tm, d), lambda i, j: (i, 0)),
                  pl.BlockSpec((1, d), lambda i, j: (0, 0)),
                  pl.BlockSpec((1, d), lambda i, j: (0, 0)),
                  pl.BlockSpec((d, tn), lambda i, j: (0, j))],
        out_specs=pl.BlockSpec((tm, tn), lambda i, j: (i, j)),
        out_shape=jax.ShapeDtypeStruct((r, c), MXU_DTYPE),
        scratch_shapes=[pltpu.VMEM((tm, d), MXU_DTYPE)],
        compiler_params=pltpu.CompilerParams(
            dimension_semantics=("parallel", "arbitrary"),
            vmem_limit_bytes=VMEM_LIMIT),
        cost_estimate=cost,
    )(x2d, g, b, w)


def ln_matmul_gelu(x2d, g, b, w, wb):
    """GELU(LayerNorm(x) @ w + bias) — FFN first linear; bf16 hidden output."""
    r, d = x2d.shape
    c = w.shape[1]
    tm = _pick_tile(r, ROW_TILE, 8)
    tn = _pick_tile(c, COL_TILE, 128)
    cost = pl.CostEstimate(flops=2 * r * d * c, transcendentals=r * c,
                           bytes_accessed=4 * r * d + 2 * d * c + 2 * r * c)
    return pl.pallas_call(
        _ln_matmul_gelu_kernel,
        grid=(r // tm, c // tn),
        in_specs=[pl.BlockSpec((tm, d), lambda i, j: (i, 0)),
                  pl.BlockSpec((1, d), lambda i, j: (0, 0)),
                  pl.BlockSpec((1, d), lambda i, j: (0, 0)),
                  pl.BlockSpec((d, tn), lambda i, j: (0, j)),
                  pl.BlockSpec((1, tn), lambda i, j: (0, j))],
        out_specs=pl.BlockSpec((tm, tn), lambda i, j: (i, j)),
        out_shape=jax.ShapeDtypeStruct((r, c), MXU_DTYPE),
        scratch_shapes=[pltpu.VMEM((tm, d), MXU_DTYPE)],
        compiler_params=pltpu.CompilerParams(
            dimension_semantics=("parallel", "arbitrary"),
            vmem_limit_bytes=VMEM_LIMIT),
        cost_estimate=cost,
    )(x2d, g, b, w, wb)


def matmul_bias_res(x2d, w, wb, res):
    """x @ w + bias + residual, K-tiled with f32 accumulator (FFN second linear)."""
    r, kdim = x2d.shape
    c = w.shape[1]
    tm = _pick_tile(r, ROW_TILE, 8)
    tn = _pick_tile(c, COL_TILE, 128)
    tk = _pick_tile(kdim, K_TILE, 128)
    cost = pl.CostEstimate(flops=2 * r * kdim * c, transcendentals=0,
                           bytes_accessed=2 * r * kdim + 2 * kdim * c + 8 * r * c)
    return pl.pallas_call(
        _matmul_bias_res_kernel,
        grid=(r // tm, c // tn, kdim // tk),
        in_specs=[pl.BlockSpec((tm, tk), lambda i, j, kk: (i, kk)),
                  pl.BlockSpec((tk, tn), lambda i, j, kk: (kk, j)),
                  pl.BlockSpec((1, tn), lambda i, j, kk: (0, j)),
                  pl.BlockSpec((tm, tn), lambda i, j, kk: (i, j))],
        out_specs=pl.BlockSpec((tm, tn), lambda i, j, kk: (i, j)),
        out_shape=jax.ShapeDtypeStruct((r, c), jnp.float32),
        scratch_shapes=[pltpu.VMEM((tm, tn), jnp.float32)],
        compiler_params=pltpu.CompilerParams(
            dimension_semantics=("parallel", "parallel", "arbitrary"),
            vmem_limit_bytes=VMEM_LIMIT),
        cost_estimate=cost,
    )(x2d, w, wb, res)


def _prep_alibi(alibi, heads):
    if alibi is None:
        alibi = jnp.zeros((1, heads, 1, 1), jnp.float32)
    return alibi.astype(MXU_DTYPE)      # halve DMA; converted to f32 in-kernel


def self_attention_fused(qkv, alibi, w_out, b_out, res, heads, scale):
    """qkv: (B, N, 3D) bf16 packed q|k|v; fused softmax-attn + out-proj + bias + residual."""
    b, n, d3 = qkv.shape
    d = d3 // 3
    dh = d // heads
    alibi = _prep_alibi(alibi, heads)
    _, _, an, am = alibi.shape
    kernel = functools.partial(_self_attn_kernel, heads=heads, dh=dh, scale=scale)
    # TODO(synk): for long sequences tile the kv axis with online softmax
    # (flash-style) instead of materializing the (N, N) scores per head.
    return pl.pallas_call(
        kernel,
        grid=(b,),
        in_specs=[pl.BlockSpec((1, n, d3), lambda bi: (bi, 0, 0)),
                  pl.BlockSpec((1, heads, an, am), lambda bi: (0, 0, 0, 0)),
                  pl.BlockSpec((d, d), lambda bi: (0, 0)),
                  pl.BlockSpec((1, d), lambda bi: (0, 0)),
                  pl.BlockSpec((1, n, d), lambda bi: (bi, 0, 0))],
        out_specs=pl.BlockSpec((1, n, d), lambda bi: (bi, 0, 0)),
        out_shape=jax.ShapeDtypeStruct((b, n, d), jnp.float32),
        compiler_params=pltpu.CompilerParams(dimension_semantics=("parallel",),
                                             vmem_limit_bytes=VMEM_LIMIT),
    )(qkv, alibi, w_out, b_out, res)


def cross_attention_fused(q, kv, alibi, w_out, b_out, res, heads, scale):
    """q: (B, N, D) bf16; kv: (B, M, 2D) bf16 packed k|v; fused out-proj + residual."""
    b, n, d = q.shape
    m = kv.shape[1]
    dh = d // heads
    alibi = _prep_alibi(alibi, heads)
    _, _, an, am = alibi.shape
    kernel = functools.partial(_cross_attn_kernel, heads=heads, dh=dh, scale=scale)
    return pl.pallas_call(
        kernel,
        grid=(b,),
        in_specs=[pl.BlockSpec((1, n, d), lambda bi: (bi, 0, 0)),
                  pl.BlockSpec((1, m, 2 * d), lambda bi: (bi, 0, 0)),
                  pl.BlockSpec((1, heads, an, am), lambda bi: (0, 0, 0, 0)),
                  pl.BlockSpec((d, d), lambda bi: (0, 0)),
                  pl.BlockSpec((1, d), lambda bi: (0, 0)),
                  pl.BlockSpec((1, n, d), lambda bi: (bi, 0, 0))],
        out_specs=pl.BlockSpec((1, n, d), lambda bi: (bi, 0, 0)),
        out_shape=jax.ShapeDtypeStruct((b, n, d), jnp.float32),
        compiler_params=pltpu.CompilerParams(dimension_semantics=("parallel",),
                                             vmem_limit_bytes=VMEM_LIMIT),
    )(q, kv, alibi, w_out, b_out, res)


# ---------------------------------------------------------------------------
# Module forward passes (thin JAX glue — reshapes only, no transposes)
# ---------------------------------------------------------------------------
def attention_block(p, x, alibi, heads):
    b, n, d = x.shape
    dh = d // heads
    scale = dh ** (-0.5)
    x2 = x.reshape(b * n, d)
    qkv = ln_matmul(x2, p["ln_g"], p["ln_b"], p["w_qkv"]).reshape(b, n, 3 * d)
    # fused: attention + output projection + bias + residual
    return self_attention_fused(qkv, alibi, p["w_out"], p["b_out"], x, heads, scale)


def cross_attention_block(p, x, context, alibi, heads):
    b, n, d = x.shape
    m = context.shape[1]
    dh = d // heads
    scale = dh ** (-0.5)
    x2 = x.reshape(b * n, d)
    c2 = context.reshape(b * m, d)
    # NB: same input_norm parameters applied to x and context (PyTorch behavior).
    q = ln_matmul(x2, p["ln_g"], p["ln_b"], p["w_q"]).reshape(b, n, d)
    kv = ln_matmul(c2, p["ln_g"], p["ln_b"], p["w_kv"]).reshape(b, m, 2 * d)
    return cross_attention_fused(q, kv, alibi, p["w_out"], p["b_out"], x, heads, scale)


def ffn_block(p, x):
    b, n, d = x.shape
    x2 = x.reshape(b * n, d)
    h = ln_matmul_gelu(x2, p["ln_g"], p["ln_b"], p["w1"], p["b1"])   # bf16 hidden
    return matmul_bias_res(h, p["w2"], p["b2"], x2).reshape(b, n, d)


def base_transformer_cross_attn(params, x, context, self_alibi=None,
                                cross_alibi=None, *, heads=8):
    for layer in params["layers"]:
        x = attention_block(layer["self_attn"], x, self_alibi, heads)
        x = cross_attention_block(layer["cross_attn"], x, context,
                                  cross_alibi, heads)
        x = ffn_block(layer["ffn"], x)
    b, n, d = x.shape
    return layernorm(x.reshape(b * n, d), params["norm_out_g"],
                     params["norm_out_b"]).reshape(b, n, d)


# ---------------------------------------------------------------------------
# Deterministic parameter init (weights pre-transposed (in, out), stored bf16)
# ---------------------------------------------------------------------------
def init_params(key, dim, layers, heads=8, ff_mult=4):
    inner = dim * ff_mult
    del heads
    params = {"layers": []}

    def w(k, shape, scale=0.02):
        return (jax.random.normal(k, shape, jnp.float32) * scale).astype(MXU_DTYPE)

    def bvec(k, shape, scale=0.02):
        return jax.random.normal(k, shape, jnp.float32) * scale

    layer_keys = jax.random.split(key, layers)
    for i in range(layers):
        lk = jax.random.split(layer_keys[i], 10)
        w_k = w(lk[4], (dim, dim))
        w_v = w(lk[5], (dim, dim))
        params["layers"].append({
            "self_attn": {
                "ln_g": jnp.ones((1, dim), jnp.float32),
                "ln_b": jnp.zeros((1, dim), jnp.float32),
                "w_qkv": w(lk[0], (dim, 3 * dim)),        # (in, out) = Linear.weight.T
                "w_out": w(lk[1], (dim, dim)),
                "b_out": bvec(lk[2], (1, dim)),
            },
            "cross_attn": {
                "ln_g": jnp.ones((1, dim), jnp.float32),
                "ln_b": jnp.zeros((1, dim), jnp.float32),
                "w_q": w(lk[3], (dim, dim)),
                "w_kv": jnp.concatenate([w_k, w_v], axis=1),   # (D, 2D): k | v
                "w_out": w(lk[6], (dim, dim)),
                "b_out": bvec(lk[7], (1, dim)),
            },
            "ffn": {
                "ln_g": jnp.ones((1, dim), jnp.float32),
                "ln_b": jnp.zeros((1, dim), jnp.float32),
                "w1": w(lk[8], (dim, inner)),
                "b1": jnp.zeros((1, inner), jnp.float32),
                "w2": w(lk[9], (inner, dim)),
                "b2": jnp.zeros((1, dim), jnp.float32),
            },
        })
    params["norm_out_g"] = jnp.ones((1, dim), jnp.float32)
    params["norm_out_b"] = jnp.zeros((1, dim), jnp.float32)
    return params


if __name__ == "__main__":
    dim, n_layers, heads, ff_mult = 32, 2, 8, 4
    B, N, M = 2, 8, 16  # batch, query seq len, context seq len

    key = jax.random.PRNGKey(0)
    kp, kx, kc, ksa, kca = jax.random.split(key, 5)
    params = init_params(kp, dim, n_layers, heads, ff_mult)

    x = jax.random.normal(kx, (B, N, dim), jnp.float32)
    context = jax.random.normal(kc, (B, M, dim), jnp.float32)
    self_alibi = jax.random.normal(ksa, (1, heads, N, N), jnp.float32) * 0.1
    cross_alibi = jax.random.normal(kca, (1, heads, N, M), jnp.float32) * 0.1

    fwd = jax.jit(functools.partial(base_transformer_cross_attn, heads=heads))
    out = fwd(params, x, context, self_alibi, cross_alibi)
    jax.block_until_ready(out)
    assert out.shape == (B, N, dim) and out.dtype == jnp.float32
    assert bool(jnp.all(jnp.isfinite(out)))
    print("KERNEL_OK")
</pallas_src>

<mosaic_0001>
module attributes {stable_mosaic.version = 11 : i64} {
  func.func @_ln_matmul_kernel(%arg0: i32, %arg1: i32, %arg2: memref<16x32xf32, #tpu.memory_space<vmem>>, %arg3: memref<1x32xf32, #tpu.memory_space<vmem>>, %arg4: memref<1x32xf32, #tpu.memory_space<vmem>>, %arg5: memref<32x32xbf16, #tpu.memory_space<vmem>>, %arg6: memref<16x32xbf16, #tpu.memory_space<vmem>>, %arg7: memref<16x32xbf16, #tpu.memory_space<vmem>>) attributes {dimension_semantics = [#tpu.dimension_semantics<parallel>, #tpu.dimension_semantics<arbitrary>], iteration_bounds = array<i64: 1, 1>, scalar_prefetch = 0 : i64, scratch_operands = 1 : i64, tpu.core_type = #tpu.core_type<tc>, window_params = [{transform_indices = @transform_0, window_bounds = array<i64: 16, 32>}, {pipeline_mode = #tpu.pipeline_mode<synchronous>, transform_indices = @transform_1, window_bounds = array<i64: 1, 32>}, {pipeline_mode = #tpu.pipeline_mode<synchronous>, transform_indices = @transform_2, window_bounds = array<i64: 1, 32>}, {transform_indices = @transform_3, window_bounds = array<i64: 32, 32>}, {transform_indices = @transform_4, window_bounds = array<i64: 16, 32>}]} {
    %c0_i32 = arith.constant 0 : i32
    %0 = arith.cmpi eq, %arg1, %c0_i32 : i32
    %1 = arith.extui %0 : i1 to i32
    %c0_i32_0 = arith.constant 0 : i32
    %2 = arith.cmpi ne, %1, %c0_i32_0 : i32
    scf.if %2 {
      %c0_6 = arith.constant 0 : index
      %c0_7 = arith.constant 0 : index
      %8 = vector.load %arg2[%c0_6, %c0_7] : memref<16x32xf32, #tpu.memory_space<vmem>>, vector<16x32xf32>
      %c0_8 = arith.constant 0 : index
      %c0_9 = arith.constant 0 : index
      %9 = vector.load %arg3[%c0_8, %c0_9] : memref<1x32xf32, #tpu.memory_space<vmem>>, vector<1x32xf32>
      %c0_10 = arith.constant 0 : index
      %c0_11 = arith.constant 0 : index
      %10 = vector.load %arg4[%c0_10, %c0_11] : memref<1x32xf32, #tpu.memory_space<vmem>>, vector<1x32xf32>
      %cst_12 = arith.constant dense<0.000000e+00> : vector<16xf32>
      %11 = vector.multi_reduction <add>, %8, %cst_12 [1] : vector<16x32xf32> to vector<16xf32>
      %12 = vector.shape_cast %11 : vector<16xf32> to vector<16x1xf32>
      %cst_13 = arith.constant 3.200000e+01 : f32
      %13 = vector.broadcast %cst_13 : f32 to vector<16x1xf32>
      %14 = arith.divf %12, %13 : vector<16x1xf32>
      %15 = vector.broadcast %14 : vector<16x1xf32> to vector<16x32xf32>
      %16 = arith.subf %8, %15 : vector<16x32xf32>
      %17 = arith.mulf %16, %16 : vector<16x32xf32>
      %cst_14 = arith.constant dense<0.000000e+00> : vector<16xf32>
      %18 = vector.multi_reduction <add>, %17, %cst_14 [1] : vector<16x32xf32> to vector<16xf32>
      %19 = vector.shape_cast %18 : vector<16xf32> to vector<16x1xf32>
      %cst_15 = arith.constant 3.200000e+01 : f32
      %20 = vector.broadcast %cst_15 : f32 to vector<16x1xf32>
      %21 = arith.divf %19, %20 : vector<16x1xf32>
      %cst_16 = arith.constant 9.99999974E-6 : f32
      %22 = vector.broadcast %cst_16 : f32 to vector<16x1xf32>
      %23 = arith.addf %21, %22 : vector<16x1xf32>
      %24 = math.rsqrt %23 : vector<16x1xf32>
      %25 = vector.broadcast %24 : vector<16x1xf32> to vector<16x32xf32>
      %26 = arith.mulf %16, %25 : vector<16x32xf32>
      %27 = vector.broadcast %9 : vector<1x32xf32> to vector<16x32xf32>
      %28 = arith.mulf %26, %27 : vector<16x32xf32>
      %29 = vector.broadcast %10 : vector<1x32xf32> to vector<16x32xf32>
      %30 = arith.addf %28, %29 : vector<16x32xf32>
      %31 = arith.truncf %30 : vector<16x32xf32> to vector<16x32xbf16>
      %c0_17 = arith.constant 0 : index
      %c0_18 = arith.constant 0 : index
      %32 = vector.load %arg7[%c0_17, %c0_18] : memref<16x32xbf16, #tpu.memory_space<vmem>>, vector<16x32xbf16>
      tpu.vector_store %arg7[%c0_17, %c0_18], %31 {strides = array<i32>} : memref<16x32xbf16, #tpu.memory_space<vmem>>, vector<16x32xbf16>,
    } else {
    }
    %c0 = arith.constant 0 : index
    %c0_1 = arith.constant 0 : index
    %3 = vector.load %arg7[%c0, %c0_1] : memref<16x32xbf16, #tpu.memory_space<vmem>>, vector<16x32xbf16>
    %c0_2 = arith.constant 0 : index
    %c0_3 = arith.constant 0 : index
    %4 = vector.load %arg5[%c0_2, %c0_3] : memref<32x32xbf16, #tpu.memory_space<vmem>>, vector<32x32xbf16>
    %cst = arith.constant dense<0.000000e+00> : vector<16x32xf32>
    %5 = tpu.matmul %3, %4, %cst {dimension_numbers = #tpu.dot_dimension_numbers<[1], [0], [0], [1], [0, 0, 1, 1], [], []>} : vector<16x32xbf16>, vector<32x32xbf16>, vector<16x32xf32> -> vector<16x32xf32>
    %6 = arith.truncf %5 : vector<16x32xf32> to vector<16x32xbf16>
    %c0_4 = arith.constant 0 : index
    %c0_5 = arith.constant 0 : index
    %7 = vector.load %arg6[%c0_4, %c0_5] : memref<16x32xbf16, #tpu.memory_space<vmem>>, vector<16x32xbf16>
    tpu.vector_store %arg6[%c0_4, %c0_5], %6 {strides = array<i32>} : memref<16x32xbf16, #tpu.memory_space<vmem>>, vector<16x32xbf16>,
    return
  }
  func.func @transform_0(%arg0: i32, %arg1: i32) -> (i32, i32) {
    %c0_i32 = arith.constant 0 : i32
    %c0_i32_0 = arith.constant 0 : i32
    return %arg0, %c0_i32 : i32, i32
  }
  func.func @transform_1(%arg0: i32, %arg1: i32) -> (i32, i32) {
    %c0_i32 = arith.constant 0 : i32
    %c0_i32_0 = arith.constant 0 : i32
    %c0_i32_1 = arith.constant 0 : i32
    return %c0_i32, %c0_i32_0 : i32, i32
  }
  func.func @transform_2(%arg0: i32, %arg1: i32) -> (i32, i32) {
    %c0_i32 = arith.constant 0 : i32
    %c0_i32_0 = arith.constant 0 : i32
    %c0_i32_1 = arith.constant 0 : i32
    return %c0_i32, %c0_i32_0 : i32, i32
  }
  func.func @transform_3(%arg0: i32, %arg1: i32) -> (i32, i32) {
    %c0_i32 = arith.constant 0 : i32
    %c0_i32_0 = arith.constant 0 : i32
    return %c0_i32, %arg1 : i32, i32
  }
  func.func @transform_4(%arg0: i32, %arg1: i32) -> (i32, i32) {
    %c0_i32 = arith.constant 0 : i32
    return %arg0, %arg1 : i32, i32
  }
}

module attributes {stable_mosaic.version = 11 : i64} {
  func.func @_ln_matmul_kernel(%arg0: i32, %arg1: i32, %arg2: memref<16x32xf32, #tpu.memory_space<vmem>>, %arg3: memref<1x32xf32, #tpu.memory_space<vmem>>, %arg4: memref<1x32xf32, #tpu.memory_space<vmem>>, %arg5: memref<32x96xbf16, #tpu.memory_space<vmem>>, %arg6: memref<16x96xbf16, #tpu.memory_space<vmem>>, %arg7: memref<16x32xbf16, #tpu.memory_space<vmem>>) attributes {dimension_semantics = [#tpu.dimension_semantics<parallel>, #tpu.dimension_semantics<arbitrary>], iteration_bounds = array<i64: 1, 1>, scalar_prefetch = 0 : i64, scratch_operands = 1 : i64, tpu.core_type = #tpu.core_type<tc>, window_params = [{transform_indices = @transform_0, window_bounds = array<i64: 16, 32>}, {pipeline_mode = #tpu.pipeline_mode<synchronous>, transform_indices = @transform_1, window_bounds = array<i64: 1, 32>}, {pipeline_mode = #tpu.pipeline_mode<synchronous>, transform_indices = @transform_2, window_bounds = array<i64: 1, 32>}, {transform_indices = @transform_3, window_bounds = array<i64: 32, 96>}, {transform_indices = @transform_4, window_bounds = array<i64: 16, 96>}]} {
    %c0_i32 = arith.constant 0 : i32
    %0 = arith.cmpi eq, %arg1, %c0_i32 : i32
    %1 = arith.extui %0 : i1 to i32
    %c0_i32_0 = arith.constant 0 : i32
    %2 = arith.cmpi ne, %1, %c0_i32_0 : i32
    scf.if %2 {
      %c0_6 = arith.constant 0 : index
      %c0_7 = arith.constant 0 : index
      %8 = vector.load %arg2[%c0_6, %c0_7] : memref<16x32xf32, #tpu.memory_space<vmem>>, vector<16x32xf32>
      %c0_8 = arith.constant 0 : index
      %c0_9 = arith.constant 0 : index
      %9 = vector.load %arg3[%c0_8, %c0_9] : memref<1x32xf32, #tpu.memory_space<vmem>>, vector<1x32xf32>
      %c0_10 = arith.constant 0 : index
      %c0_11 = arith.constant 0 : index
      %10 = vector.load %arg4[%c0_10, %c0_11] : memref<1x32xf32, #tpu.memory_space<vmem>>, vector<1x32xf32>
      %cst_12 = arith.constant dense<0.000000e+00> : vector<16xf32>
      %11 = vector.multi_reduction <add>, %8, %cst_12 [1] : vector<16x32xf32> to vector<16xf32>
      %12 = vector.shape_cast %11 : vector<16xf32> to vector<16x1xf32>
      %cst_13 = arith.constant 3.200000e+01 : f32
      %13 = vector.broadcast %cst_13 : f32 to vector<16x1xf32>
      %14 = arith.divf %12, %13 : vector<16x1xf32>
      %15 = vector.broadcast %14 : vector<16x1xf32> to vector<16x32xf32>
      %16 = arith.subf %8, %15 : vector<16x32xf32>
      %17 = arith.mulf %16, %16 : vector<16x32xf32>
      %cst_14 = arith.constant dense<0.000000e+00> : vector<16xf32>
      %18 = vector.multi_reduction <add>, %17, %cst_14 [1] : vector<16x32xf32> to vector<16xf32>
      %19 = vector.shape_cast %18 : vector<16xf32> to vector<16x1xf32>
      %cst_15 = arith.constant 3.200000e+01 : f32
      %20 = vector.broadcast %cst_15 : f32 to vector<16x1xf32>
      %21 = arith.divf %19, %20 : vector<16x1xf32>
      %cst_16 = arith.constant 9.99999974E-6 : f32
      %22 = vector.broadcast %cst_16 : f32 to vector<16x1xf32>
      %23 = arith.addf %21, %22 : vector<16x1xf32>
      %24 = math.rsqrt %23 : vector<16x1xf32>
      %25 = vector.broadcast %24 : vector<16x1xf32> to vector<16x32xf32>
      %26 = arith.mulf %16, %25 : vector<16x32xf32>
      %27 = vector.broadcast %9 : vector<1x32xf32> to vector<16x32xf32>
      %28 = arith.mulf %26, %27 : vector<16x32xf32>
      %29 = vector.broadcast %10 : vector<1x32xf32> to vector<16x32xf32>
      %30 = arith.addf %28, %29 : vector<16x32xf32>
      %31 = arith.truncf %30 : vector<16x32xf32> to vector<16x32xbf16>
      %c0_17 = arith.constant 0 : index
      %c0_18 = arith.constant 0 : index
      %32 = vector.load %arg7[%c0_17, %c0_18] : memref<16x32xbf16, #tpu.memory_space<vmem>>, vector<16x32xbf16>
      tpu.vector_store %arg7[%c0_17, %c0_18], %31 {strides = array<i32>} : memref<16x32xbf16, #tpu.memory_space<vmem>>, vector<16x32xbf16>,
    } else {
    }
    %c0 = arith.constant 0 : index
    %c0_1 = arith.constant 0 : index
    %3 = vector.load %arg7[%c0, %c0_1] : memref<16x32xbf16, #tpu.memory_space<vmem>>, vector<16x32xbf16>
    %c0_2 = arith.constant 0 : index
    %c0_3 = arith.constant 0 : index
    %4 = vector.load %arg5[%c0_2, %c0_3] : memref<32x96xbf16, #tpu.memory_space<vmem>>, vector<32x96xbf16>
    %cst = arith.constant dense<0.000000e+00> : vector<16x96xf32>
    %5 = tpu.matmul %3, %4, %cst {dimension_numbers = #tpu.dot_dimension_numbers<[1], [0], [0], [1], [0, 0, 1, 1], [], []>} : vector<16x32xbf16>, vector<32x96xbf16>, vector<16x96xf32> -> vector<16x96xf32>
    %6 = arith.truncf %5 : vector<16x96xf32> to vector<16x96xbf16>
    %c0_4 = arith.constant 0 : index
    %c0_5 = arith.constant 0 : index
    %7 = vector.load %arg6[%c0_4, %c0_5] : memref<16x96xbf16, #tpu.memory_space<vmem>>, vector<16x96xbf16>
    tpu.vector_store %arg6[%c0_4, %c0_5], %6 {strides = array<i32>} : memref<16x96xbf16, #tpu.memory_space<vmem>>, vector<16x96xbf16>,
    return
  }
  func.func @transform_0(%arg0: i32, %arg1: i32) -> (i32, i32) {
    %c0_i32 = arith.constant 0 : i32
    %c0_i32_0 = arith.constant 0 : i32
    return %arg0, %c0_i32 : i32, i32
  }
  func.func @transform_1(%arg0: i32, %arg1: i32) -> (i32, i32) {
    %c0_i32 = arith.constant 0 : i32
    %c0_i32_0 = arith.constant 0 : i32
    %c0_i32_1 = arith.constant 0 : i32
    return %c0_i32, %c0_i32_0 : i32, i32
  }
  func.func @transform_2(%arg0: i32, %arg1: i32) -> (i32, i32) {
    %c0_i32 = arith.constant 0 : i32
    %c0_i32_0 = arith.constant 0 : i32
    %c0_i32_1 = arith.constant 0 : i32
    return %c0_i32, %c0_i32_0 : i32, i32
  }
  func.func @transform_3(%arg0: i32, %arg1: i32) -> (i32, i32) {
    %c0_i32 = arith.constant 0 : i32
    %c0_i32_0 = arith.constant 0 : i32
    return %c0_i32, %arg1 : i32, i32
  }
  func.func @transform_4(%arg0: i32, %arg1: i32) -> (i32, i32) {
    %c0_i32 = arith.constant 0 : i32
    return %arg0, %arg1 : i32, i32
  }
}

module attributes {stable_mosaic.version = 11 : i64} {
  func.func @_self_attn_kernel(%arg0: i32, %arg1: memref<1x8x96xbf16, #tpu.memory_space<vmem>>, %arg2: memref<1x8x8x8xbf16, #tpu.memory_space<vmem>>, %arg3: memref<32x32xbf16, #tpu.memory_space<vmem>>, %arg4: memref<1x32xf32, #tpu.memory_space<vmem>>, %arg5: memref<1x8x32xf32, #tpu.memory_space<vmem>>, %arg6: memref<1x8x32xf32, #tpu.memory_space<vmem>>) attributes {dimension_semantics = [#tpu.dimension_semantics<parallel>], iteration_bounds = array<i64: 2>, scalar_prefetch = 0 : i64, scratch_operands = 0 : i64, tpu.core_type = #tpu.core_type<tc>, window_params = [{transform_indices = @transform_0, window_bounds = array<i64: 1, 8, 96>}, {pipeline_mode = #tpu.pipeline_mode<synchronous>, transform_indices = @transform_1, window_bounds = array<i64: 1, 8, 8, 8>}, {pipeline_mode = #tpu.pipeline_mode<synchronous>, transform_indices = @transform_2, window_bounds = array<i64: 32, 32>}, {pipeline_mode = #tpu.pipeline_mode<synchronous>, transform_indices = @transform_3, window_bounds = array<i64: 1, 32>}, {transform_indices = @transform_4, window_bounds = array<i64: 1, 8, 32>}, {transform_indices = @transform_5, window_bounds = array<i64: 1, 8, 32>}]} {
    %c0 = arith.constant 0 : index
    %c0_0 = arith.constant 0 : index
    %c0_1 = arith.constant 0 : index
    %0 = vector.load %arg1[%c0, %c0_0, %c0_1] : memref<1x8x96xbf16, #tpu.memory_space<vmem>>, vector<1x8x96xbf16>
    %1 = vector.shape_cast %0 : vector<1x8x96xbf16> to vector<8x96xbf16>
    %2 = vector.extract_strided_slice %1 {offsets = [0, 0], sizes = [8, 32], strides = [1, 1]} : vector<8x96xbf16> to vector<8x32xbf16>
    %3 = vector.extract_strided_slice %1 {offsets = [0, 32], sizes = [8, 32], strides = [1, 1]} : vector<8x96xbf16> to vector<8x32xbf16>
    %4 = vector.extract_strided_slice %1 {offsets = [0, 64], sizes = [8, 32], strides = [1, 1]} : vector<8x96xbf16> to vector<8x32xbf16>
    %c0_2 = arith.constant 0 : index
    %c0_3 = arith.constant 0 : index
    %5 = vector.load %arg3[%c0_2, %c0_3] : memref<32x32xbf16, #tpu.memory_space<vmem>>, vector<32x32xbf16>
    %c0_4 = arith.constant 0 : index
    %c0_5 = arith.constant 0 : index
    %c0_6 = arith.constant 0 : index
    %6 = vector.load %arg5[%c0_4, %c0_5, %c0_6] : memref<1x8x32xf32, #tpu.memory_space<vmem>>, vector<1x8x32xf32>
    %7 = vector.shape_cast %6 : vector<1x8x32xf32> to vector<8x32xf32>
    %c0_7 = arith.constant 0 : index
    %c0_8 = arith.constant 0 : index
    %8 = vector.load %arg4[%c0_7, %c0_8] : memref<1x32xf32, #tpu.memory_space<vmem>>, vector<1x32xf32>
    %9 = vector.broadcast %8 : vector<1x32xf32> to vector<8x32xf32>
    %10 = arith.addf %7, %9 : vector<8x32xf32>
    %11 = vector.extract_strided_slice %2 {offsets = [0, 0], sizes = [8, 4], strides = [1, 1]} : vector<8x32xbf16> to vector<8x4xbf16>
    %12 = vector.extract_strided_slice %3 {offsets = [0, 0], sizes = [8, 4], strides = [1, 1]} : vector<8x32xbf16> to vector<8x4xbf16>
    %13 = vector.extract_strided_slice %4 {offsets = [0, 0], sizes = [8, 4], strides = [1, 1]} : vector<8x32xbf16> to vector<8x4xbf16>
    %cst = arith.constant dense<0.000000e+00> : vector<8x8xf32>
    %14 = tpu.matmul %11, %12, %cst {dimension_numbers = #tpu.dot_dimension_numbers<[1], [1], [0], [0], [0, 0, 1, 0], [], []>} : vector<8x4xbf16>, vector<8x4xbf16>, vector<8x8xf32> -> vector<8x8xf32>
    %cst_9 = arith.constant 5.000000e-01 : f32
    %15 = vector.broadcast %cst_9 : f32 to vector<8x8xf32>
    %16 = arith.mulf %14, %15 : vector<8x8xf32>
    %c0_10 = arith.constant 0 : index
    %c0_11 = arith.constant 0 : index
    %c0_12 = arith.constant 0 : index
    %c0_13 = arith.constant 0 : index
    %17 = vector.load %arg2[%c0_10, %c0_11, %c0_12, %c0_13] : memref<1x8x8x8xbf16, #tpu.memory_space<vmem>>, vector<1x1x8x8xbf16>
    %18 = vector.shape_cast %17 : vector<1x1x8x8xbf16> to vector<8x8xbf16>
    %19 = arith.extf %18 : vector<8x8xbf16> to vector<8x8xf32>
    %20 = arith.addf %16, %19 : vector<8x8xf32>
    %cst_14 = arith.constant dense<0xFF800000> : vector<8xf32>
    %21 = vector.multi_reduction <maximumf>, %20, %cst_14 [1] : vector<8x8xf32> to vector<8xf32>
    %22 = vector.shape_cast %21 : vector<8xf32> to vector<8x1xf32>
    %23 = vector.broadcast %22 : vector<8x1xf32> to vector<8x8xf32>
    %24 = arith.subf %20, %23 : vector<8x8xf32>
    %25 = math.exp %24 : vector<8x8xf32>
    %cst_15 = arith.constant dense<0.000000e+00> : vector<8xf32>
    %26 = vector.multi_reduction <add>, %25, %cst_15 [1] : vector<8x8xf32> to vector<8xf32>
    %27 = vector.shape_cast %26 : vector<8xf32> to vector<8x1xf32>
    %28 = tpu.reciprocal %27 {approx = true} : vector<8x1xf32> -> vector<8x1xf32>
    %29 = vector.broadcast %28 : vector<8x1xf32> to vector<8x8xf32>
    %30 = arith.mulf %25, %29 : vector<8x8xf32>
    %31 = arith.truncf %30 : vector<8x8xf32> to vector<8x8xbf16>
    %cst_16 = arith.constant dense<0.000000e+00> : vector<8x4xf32>
    %32 = tpu.matmul %31, %13, %cst_16 {dimension_numbers = #tpu.dot_dimension_numbers<[1], [0], [0], [1], [0, 0, 1, 1], [], []>} : vector<8x8xbf16>, vector<8x4xbf16>, vector<8x4xf32> -> vector<8x4xf32>
    %33 = arith.truncf %32 : vector<8x4xf32> to vector<8x4xbf16>
    %34 = vector.extract_strided_slice %5 {offsets = [0, 0], sizes = [4, 32], strides = [1, 1]} : vector<32x32xbf16> to vector<4x32xbf16>
    %cst_17 = arith.constant dense<0.000000e+00> : vector<8x32xf32>
    %35 = tpu.matmul %33, %34, %cst_17 {dimension_numbers = #tpu.dot_dimension_numbers<[1], [0], [0], [1], [0, 0, 1, 1], [], []>} : vector<8x4xbf16>, vector<4x32xbf16>, vector<8x32xf32> -> vector<8x32xf32>
    %36 = arith.addf %10, %35 : vector<8x32xf32>
    %37 = vector.extract_strided_slice %2 {offsets = [0, 4], sizes = [8, 4], strides = [1, 1]} : vector<8x32xbf16> to vector<8x4xbf16>
    %38 = vector.extract_strided_slice %3 {offsets = [0, 4], sizes = [8, 4], strides = [1, 1]} : vector<8x32xbf16> to vector<8x4xbf16>
    %39 = vector.extract_strided_slice %4 {offsets = [0, 4], sizes = [8, 4], strides = [1, 1]} : vector<8x32xbf16> to vector<8x4xbf16>
    %cst_18 = arith.constant dense<0.000000e+00> : vector<8x8xf32>
    %40 = tpu.matmul %37, %38, %cst_18 {dimension_numbers = #tpu.dot_dimension_numbers<[1], [1], [0], [0], [0, 0, 1, 0], [], []>} : vector<8x4xbf16>, vector<8x4xbf16>, vector<8x8xf32> -> vector<8x8xf32>
    %cst_19 = arith.constant 5.000000e-01 : f32
    %41 = vector.broadcast %cst_19 : f32 to vector<8x8xf32>
    %42 = arith.mulf %40, %41 : vector<8x8xf32>
    %c0_20 = arith.constant 0 : index
    %c1 = arith.constant 1 : index
    %c0_21 = arith.constant 0 : index
    %c0_22 = arith.constant 0 : index
    %43 = vector.load %arg2[%c0_20, %c1, %c0_21, %c0_22] : memref<1x8x8x8xbf16, #tpu.memory_space<vmem>>, vector<1x1x8x8xbf16>
    %44 = vector.shape_cast %43 : vector<1x1x8x8xbf16> to vector<8x8xbf16>
    %45 = arith.extf %44 : vector<8x8xbf16> to vector<8x8xf32>
    %46 = arith.addf %42, %45 : vector<8x8xf32>
    %cst_23 = arith.constant dense<0xFF800000> : vector<8xf32>
    %47 = vector.multi_reduction <maximumf>, %46, %cst_23 [1] : vector<8x8xf32> to vector<8xf32>
    %48 = vector.shape_cast %47 : vector<8xf32> to vector<8x1xf32>
    %49 = vector.broadcast %48 : vector<8x1xf32> to vector<8x8xf32>
    %50 = arith.subf %46, %49 : vector<8x8xf32>
    %51 = math.exp %50 : vector<8x8xf32>
    %cst_24 = arith.constant dense<0.000000e+00> : vector<8xf32>
    %52 = vector.multi_reduction <add>, %51, %cst_24 [1] : vector<8x8xf32> to vector<8xf32>
    %53 = vector.shape_cast %52 : vector<8xf32> to vector<8x1xf32>
    %54 = tpu.reciprocal %53 {approx = true} : vector<8x1xf32> -> vector<8x1xf32>
    %55 = vector.broadcast %54 : vector<8x1xf32> to vector<8x8xf32>
    %56 = arith.mulf %51, %55 : vector<8x8xf32>
    %57 = arith.truncf %56 : vector<8x8xf32> to vector<8x8xbf16>
    %cst_25 = arith.constant dense<0.000000e+00> : vector<8x4xf32>
    %58 = tpu.matmul %57, %39, %cst_25 {dimension_numbers = #tpu.dot_dimension_numbers<[1], [0], [0], [1], [0, 0, 1, 1], [], []>} : vector<8x8xbf16>, vector<8x4xbf16>, vector<8x4xf32> -> vector<8x4xf32>
    %59 = arith.truncf %58 : vector<8x4xf32> to vector<8x4xbf16>
    %60 = vector.extract_strided_slice %5 {offsets = [4, 0], sizes = [4, 32], strides = [1, 1]} : vector<32x32xbf16> to vector<4x32xbf16>
    %cst_26 = arith.constant dense<0.000000e+00> : vector<8x32xf32>
    %61 = tpu.matmul %59, %60, %cst_26 {dimension_numbers = #tpu.dot_dimension_numbers<[1], [0], [0], [1], [0, 0, 1, 1], [], []>} : vector<8x4xbf16>, vector<4x32xbf16>, vector<8x32xf32> -> vector<8x32xf32>
    %62 = arith.addf %36, %61 : vector<8x32xf32>
    %63 = vector.extract_strided_slice %2 {offsets = [0, 8], sizes = [8, 4], strides = [1, 1]} : vector<8x32xbf16> to vector<8x4xbf16>
    %64 = vector.extract_strided_slice %3 {offsets = [0, 8], sizes = [8, 4], strides = [1, 1]} : vector<8x32xbf16> to vector<8x4xbf16>
    %65 = vector.extract_strided_slice %4 {offsets = [0, 8], sizes = [8, 4], strides = [1, 1]} : vector<8x32xbf16> to vector<8x4xbf16>
    %cst_27 = arith.constant dense<0.000000e+00> : vector<8x8xf32>
    %66 = tpu.matmul %63, %64, %cst_27 {dimension_numbers = #tpu.dot_dimension_numbers<[1], [1], [0], [0], [0, 0, 1, 0], [], []>} : vector<8x4xbf16>, vector<8x4xbf16>, vector<8x8xf32> -> vector<8x8xf32>
    %cst_28 = arith.constant 5.000000e-01 : f32
    %67 = vector.broadcast %cst_28 : f32 to vector<8x8xf32>
    %68 = arith.mulf %66, %67 : vector<8x8xf32>
    %c0_29 = arith.constant 0 : index
    %c2 = arith.constant 2 : index
    %c0_30 = arith.constant 0 : index
    %c0_31 = arith.constant 0 : index
    %69 = vector.load %arg2[%c0_29, %c2, %c0_30, %c0_31] : memref<1x8x8x8xbf16, #tpu.memory_space<vmem>>, vector<1x1x8x8xbf16>
    %70 = vector.shape_cast %69 : vector<1x1x8x8xbf16> to vector<8x8xbf16>
    %71 = arith.extf %70 : vector<8x8xbf16> to vector<8x8xf32>
    %72 = arith.addf %68, %71 : vector<8x8xf32>
    %cst_32 = arith.constant dense<0xFF800000> : vector<8xf32>
    %73 = vector.multi_reduction <maximumf>, %72, %cst_32 [1] : vector<8x8xf32> to vector<8xf32>
    %74 = vector.shape_cast %73 : vector<8xf32> to vector<8x1xf32>
    %75 = vector.broadcast %74 : vector<8x1xf32> to vector<8x8xf32>
    %76 = arith.subf %72, %75 : vector<8x8xf32>
    %77 = math.exp %76 : vector<8x8xf32>
    %cst_33 = arith.constant dense<0.000000e+00> : vector<8xf32>
    %78 = vector.multi_reduction <add>, %77, %cst_33 [1] : vector<8x8xf32> to vector<8xf32>
    %79 = vector.shape_cast %78 : vector<8xf32> to vector<8x1xf32>
    %80 = tpu.reciprocal %79 {approx = true} : vector<8x1xf32> -> vector<8x1xf32>
    %81 = vector.broadcast %80 : vector<8x1xf32> to vector<8x8xf32>
    %82 = arith.mulf %77, %81 : vector<8x8xf32>
    %83 = arith.truncf %82 : vector<8x8xf32> to vector<8x8xbf16>
    %cst_34 = arith.constant dense<0.000000e+00> : vector<8x4xf32>
    %84 = tpu.matmul %83, %65, %cst_34 {dimension_numbers = #tpu.dot_dimension_numbers<[1], [0], [0], [1], [0, 0, 1, 1], [], []>} : vector<8x8xbf16>, vector<8x4xbf16>, vector<8x4xf32> -> vector<8x4xf32>
    %85 = arith.truncf %84 : vector<8x4xf32> to vector<8x4xbf16>
    %86 = vector.extract_strided_slice %5 {offsets = [8, 0], sizes = [4, 32], strides = [1, 1]} : vector<32x32xbf16> to vector<4x32xbf16>
    %cst_35 = arith.constant dense<0.000000e+00> : vector<8x32xf32>
    %87 = tpu.matmul %85, %86, %cst_35 {dimension_numbers = #tpu.dot_dimension_numbers<[1], [0], [0], [1], [0, 0, 1, 1], [], []>} : vector<8x4xbf16>, vector<4x32xbf16>, vector<8x32xf32> -> vector<8x32xf32>
    %88 = arith.addf %62, %87 : vector<8x32xf32>
    %89 = vector.extract_strided_slice %2 {offsets = [0, 12], sizes = [8, 4], strides = [1, 1]} : vector<8x32xbf16> to vector<8x4xbf16>
    %90 = vector.extract_strided_slice %3 {offsets = [0, 12], sizes = [8, 4], strides = [1, 1]} : vector<8x32xbf16> to vector<8x4xbf16>
    %91 = vector.extract_strided_slice %4 {offsets = [0, 12], sizes = [8, 4], strides = [1, 1]} : vector<8x32xbf16> to vector<8x4xbf16>
    %cst_36 = arith.constant dense<0.000000e+00> : vector<8x8xf32>
    %92 = tpu.matmul %89, %90, %cst_36 {dimension_numbers = #tpu.dot_dimension_numbers<[1], [1], [0], [0], [0, 0, 1, 0], [], []>} : vector<8x4xbf16>, vector<8x4xbf16>, vector<8x8xf32> -> vector<8x8xf32>
    %cst_37 = arith.constant 5.000000e-01 : f32
    %93 = vector.broadcast %cst_37 : f32 to vector<8x8xf32>
    %94 = arith.mulf %92, %93 : vector<8x8xf32>
    %c0_38 = arith.constant 0 : index
    %c3 = arith.constant 3 : index
    %c0_39 = arith.constant 0 : index
    %c0_40 = arith.constant 0 : index
    %95 = vector.load %arg2[%c0_38, %c3, %c0_39, %c0_40] : memref<1x8x8x8xbf16, #tpu.memory_space<vmem>>, vector<1x1x8x8xbf16>
    %96 = vector.shape_cast %95 : vector<1x1x8x8xbf16> to vector<8x8xbf16>
    %97 = arith.extf %96 : vector<8x8xbf16> to vector<8x8xf32>
    %98 = arith.addf %94, %97 : vector<8x8xf32>
    %cst_41 = arith.constant dense<0xFF800000> : vector<8xf32>
    %99 = vector.multi_reduction <maximumf>, %98, %cst_41 [1] : vector<8x8xf32> to vector<8xf32>
    %100 = vector.shape_cast %99 : vector<8xf32> to vector<8x1xf32>
    %101 = vector.broadcast %100 : vector<8x1xf32> to vector<8x8xf32>
    %102 = arith.subf %98, %101 : vector<8x8xf32>
    %103 = math.exp %102 : vector<8x8xf32>
    %cst_42 = arith.constant dense<0.000000e+00> : vector<8xf32>
    %104 = vector.multi_reduction <add>, %103, %cst_42 [1] : vector<8x8xf32> to vector<8xf32>
    %105 = vector.shape_cast %104 : vector<8xf32> to vector<8x1xf32>
    %106 = tpu.reciprocal %105 {approx = true} : vector<8x1xf32> -> vector<8x1xf32>
    %107 = vector.broadcast %106 : vector<8x1xf32> to vector<8x8xf32>
    %108 = arith.mulf %103, %107 : vector<8x8xf32>
    %109 = arith.truncf %108 : vector<8x8xf32> to vector<8x8xbf16>
    %cst_43 = arith.constant dense<0.000000e+00> : vector<8x4xf32>
    %110 = tpu.matmul %109, %91, %cst_43 {dimension_numbers = #tpu.dot_dimension_numbers<[1], [0], [0], [1], [0, 0, 1, 1], [], []>} : vector<8x8xbf16>, vector<8x4xbf16>, vector<8x4xf32> -> vector<8x4xf32>
    %111 = arith.truncf %110 : vector<8x4xf32> to vector<8x4xbf16>
    %112 = vector.extract_strided_slice %5 {offsets = [12, 0], sizes = [4, 32], strides = [1, 1]} : vector<32x32xbf16> to vector<4x32xbf16>
    %cst_44 = arith.constant dense<0.000000e+00> : vector<8x32xf32>
    %113 = tpu.matmul %111, %112, %cst_44 {dimension_numbers = #tpu.dot_dimension_numbers<[1], [0], [0], [1], [0, 0, 1, 1], [], []>} : vector<8x4xbf16>, vector<4x32xbf16>, vector<8x32xf32> -> vector<8x32xf32>
    %114 = arith.addf %88, %113 : vector<8x32xf32>
    %115 = vector.extract_strided_slice %2 {offsets = [0, 16], sizes = [8, 4], strides = [1, 1]} : vector<8x32xbf16> to vector<8x4xbf16>
    %116 = vector.extract_strided_slice %3 {offsets = [0, 16], sizes = [8, 4], strides = [1, 1]} : vector<8x32xbf16> to vector<8x4xbf16>
    %117 = vector.extract_strided_slice %4 {offsets = [0, 16], sizes = [8, 4], strides = [1, 1]} : vector<8x32xbf16> to vector<8x4xbf16>
    %cst_45 = arith.constant dense<0.000000e+00> : vector<8x8xf32>
    %118 = tpu.matmul %115, %116, %cst_45 {dimension_numbers = #tpu.dot_dimension_numbers<[1], [1], [0], [0], [0, 0, 1, 0], [], []>} : vector<8x4xbf16>, vector<8x4xbf16>, vector<8x8xf32> -> vector<8x8xf32>
    %cst_46 = arith.constant 5.000000e-01 : f32
    %119 = vector.broadcast %cst_46 : f32 to vector<8x8xf32>
    %120 = arith.mulf %118, %119 : vector<8x8xf32>
    %c0_47 = arith.constant 0 : index
    %c4 = arith.constant 4 : index
    %c0_48 = arith.constant 0 : index
    %c0_49 = arith.constant 0 : index
    %121 = vector.load %arg2[%c0_47, %c4, %c0_48, %c0_49] : memref<1x8x8x8xbf16, #tpu.memory_space<vmem>>, vector<1x1x8x8xbf16>
    %122 = vector.shape_cast %121 : vector<1x1x8x8xbf16> to vector<8x8xbf16>
    %123 = arith.extf %122 : vector<8x8xbf16> to vector<8x8xf32>
    %124 = arith.addf %120, %123 : vector<8x8xf32>
    %cst_50 = arith.constant dense<0xFF800000> : vector<8xf32>
    %125 = vector.multi_reduction <maximumf>, %124, %cst_50 [1] : vector<8x8xf32> to vector<8xf32>
    %126 = vector.shape_cast %125 : vector<8xf32> to vector<8x1xf32>
    %127 = vector.broadcast %126 : vector<8x1xf32> to vector<8x8xf32>
    %128 = arith.subf %124, %127 : vector<8x8xf32>
    %129 = math.exp %128 : vector<8x8xf32>
    %cst_51 = arith.constant dense<0.000000e+00> : vector<8xf32>
    %130 = vector.multi_reduction <add>, %129, %cst_51 [1] : vector<8x8xf32> to vector<8xf32>
    %131 = vector.shape_cast %130 : vector<8xf32> to vector<8x1xf32>
    %132 = tpu.reciprocal %131 {approx = true} : vector<8x1xf32> -> vector<8x1xf32>
    %133 = vector.broadcast %132 : vector<8x1xf32> to vector<8x8xf32>
    %134 = arith.mulf %129, %133 : vector<8x8xf32>
    %135 = arith.truncf %134 : vector<8x8xf32> to vector<8x8xbf16>
    %cst_52 = arith.constant dense<0.000000e+00> : vector<8x4xf32>
    %136 = tpu.matmul %135, %117, %cst_52 {dimension_numbers = #tpu.dot_dimension_numbers<[1], [0], [0], [1], [0, 0, 1, 1], [], []>} : vector<8x8xbf16>, vector<8x4xbf16>, vector<8x4xf32> -> vector<8x4xf32>
    %137 = arith.truncf %136 : vector<8x4xf32> to vector<8x4xbf16>
    %138 = vector.extract_strided_slice %5 {offsets = [16, 0], sizes = [4, 32], strides = [1, 1]} : vector<32x32xbf16> to vector<4x32xbf16>
    %cst_53 = arith.constant dense<0.000000e+00> : vector<8x32xf32>
    %139 = tpu.matmul %137, %138, %cst_53 {dimension_numbers = #tpu.dot_dimension_numbers<[1], [0], [0], [1], [0, 0, 1, 1], [], []>} : vector<8x4xbf16>, vector<4x32xbf16>, vector<8x32xf32> -> vector<8x32xf32>
    %140 = arith.addf %114, %139 : vector<8x32xf32>
    %141 = vector.extract_strided_slice %2 {offsets = [0, 20], sizes = [8, 4], strides = [1, 1]} : vector<8x32xbf16> to vector<8x4xbf16>
    %142 = vector.extract_strided_slice %3 {offsets = [0, 20], sizes = [8, 4], strides = [1, 1]} : vector<8x32xbf16> to vector<8x4xbf16>
    %143 = vector.extract_strided_slice %4 {offsets = [0, 20], sizes = [8, 4], strides = [1, 1]} : vector<8x32xbf16> to vector<8x4xbf16>
    %cst_54 = arith.constant dense<0.000000e+00> : vector<8x8xf32>
    %144 = tpu.matmul %141, %142, %cst_54 {dimension_numbers = #tpu.dot_dimension_numbers<[1], [1], [0], [0], [0, 0, 1, 0], [], []>} : vector<8x4xbf16>, vector<8x4xbf16>, vector<8x8xf32> -> vector<8x8xf32>
    %cst_55 = arith.constant 5.000000e-01 : f32
    %145 = vector.broadcast %cst_55 : f32 to vector<8x8xf32>
    %146 = arith.mulf %144, %145 : vector<8x8xf32>
    %c0_56 = arith.constant 0 : index
    %c5 = arith.constant 5 : index
    %c0_57 = arith.constant 0 : index
    %c0_58 = arith.constant 0 : index
    %147 = vector.load %arg2[%c0_56, %c5, %c0_57, %c0_58] : memref<1x8x8x8xbf16, #tpu.memory_space<vmem>>, vector<1x1x8x8xbf16>
    %148 = vector.shape_cast %147 : vector<1x1x8x8xbf16> to vector<8x8xbf16>
    %149 = arith.extf %148 : vector<8x8xbf16> to vector<8x8xf32>
    %150 = arith.addf %146, %149 : vector<8x8xf32>
    %cst_59 = arith.constant dense<0xFF800000> : vector<8xf32>
    %151 = vector.multi_reduction <maximumf>, %150, %cst_59 [1] : vector<8x8xf32> to vector<8xf32>
    %152 = vector.shape_cast %151 : vector<8xf32> to vector<8x1xf32>
    %153 = vector.broadcast %152 : vector<8x1xf32> to vector<8x8xf32>
    %154 = arith.subf %150, %153 : vector<8x8xf32>
    %155 = math.exp %154 : vector<8x8xf32>
    %cst_60 = arith.constant dense<0.000000e+00> : vector<8xf32>
    %156 = vector.multi_reduction <add>, %155, %cst_60 [1] : vector<8x8xf32> to vector<8xf32>
    %157 = vector.shape_cast %156 : vector<8xf32> to vector<8x1xf32>
    %158 = tpu.reciprocal %157 {approx = true} : vector<8x1xf32> -> vector<8x1xf32>
    %159 = vector.broadcast %158 : vector<8x1xf32> to vector<8x8xf32>
    %160 = arith.mulf %155, %159 : vector<8x8xf32>
    %161 = arith.truncf %160 : vector<8x8xf32> to vector<8x8xbf16>
    %cst_61 = arith.constant dense<0.000000e+00> : vector<8x4xf32>
    %162 = tpu.matmul %161, %143, %cst_61 {dimension_numbers = #tpu.dot_dimension_numbers<[1], [0], [0], [1], [0, 0, 1, 1], [], []>} : vector<8x8xbf16>, vector<8x4xbf16>, vector<8x4xf32> -> vector<8x4xf32>
    %163 = arith.truncf %162 : vector<8x4xf32> to vector<8x4xbf16>
    %164 = vector.extract_strided_slice %5 {offsets = [20, 0], sizes = [4, 32], strides = [1, 1]} : vector<32x32xbf16> to vector<4x32xbf16>
    %cst_62 = arith.constant dense<0.000000e+00> : vector<8x32xf32>
    %165 = tpu.matmul %163, %164, %cst_62 {dimension_numbers = #tpu.dot_dimension_numbers<[1], [0], [0], [1], [0, 0, 1, 1], [], []>} : vector<8x4xbf16>, vector<4x32xbf16>, vector<8x32xf32> -> vector<8x32xf32>
    %166 = arith.addf %140, %165 : vector<8x32xf32>
    %167 = vector.extract_strided_slice %2 {offsets = [0, 24], sizes = [8, 4], strides = [1, 1]} : vector<8x32xbf16> to vector<8x4xbf16>
    %168 = vector.extract_strided_slice %3 {offsets = [0, 24], sizes = [8, 4], strides = [1, 1]} : vector<8x32xbf16> to vector<8x4xbf16>
    %169 = vector.extract_strided_slice %4 {offsets = [0, 24], sizes = [8, 4], strides = [1, 1]} : vector<8x32xbf16> to vector<8x4xbf16>
    %cst_63 = arith.constant dense<0.000000e+00> : vector<8x8xf32>
    %170 = tpu.matmul %167, %168, %cst_63 {dimension_numbers = #tpu.dot_dimension_numbers<[1], [1], [0], [0], [0, 0, 1, 0], [], []>} : vector<8x4xbf16>, vector<8x4xbf16>, vector<8x8xf32> -> vector<8x8xf32>
    %cst_64 = arith.constant 5.000000e-01 : f32
    %171 = vector.broadcast %cst_64 : f32 to vector<8x8xf32>
    %172 = arith.mulf %170, %171 : vector<8x8xf32>
    %c0_65 = arith.constant 0 : index
    %c6 = arith.constant 6 : index
    %c0_66 = arith.constant 0 : index
    %c0_67 = arith.constant 0 : index
    %173 = vector.load %arg2[%c0_65, %c6, %c0_66, %c0_67] : memref<1x8x8x8xbf16, #tpu.memory_space<vmem>>, vector<1x1x8x8xbf16>
    %174 = vector.shape_cast %173 : vector<1x1x8x8xbf16> to vector<8x8xbf16>
    %175 = arith.extf %174 : vector<8x8xbf16> to vector<8x8xf32>
    %176 = arith.addf %172, %175 : vector<8x8xf32>
    %cst_68 = arith.constant dense<0xFF800000> : vector<8xf32>
    %177 = vector.multi_reduction <maximumf>, %176, %cst_68 [1] : vector<8x8xf32> to vector<8xf32>
    %178 = vector.shape_cast %177 : vector<8xf32> to vector<8x1xf32>
    %179 = vector.broadcast %178 : vector<8x1xf32> to vector<8x8xf32>
    %180 = arith.subf %176, %179 : vector<8x8xf32>
    %181 = math.exp %180 : vector<8x8xf32>
    %cst_69 = arith.constant dense<0.000000e+00> : vector<8xf32>
    %182 = vector.multi_reduction <add>, %181, %cst_69 [1] : vector<8x8xf32> to vector<8xf32>
    %183 = vector.shape_cast %182 : vector<8xf32> to vector<8x1xf32>
    %184 = tpu.reciprocal %183 {approx = true} : vector<8x1xf32> -> vector<8x1xf32>
    %185 = vector.broadcast %184 : vector<8x1xf32> to vector<8x8xf32>
    %186 = arith.mulf %181, %185 : vector<8x8xf32>
    %187 = arith.truncf %186 : vector<8x8xf32> to vector<8x8xbf16>
    %cst_70 = arith.constant dense<0.000000e+00> : vector<8x4xf32>
    %188 = tpu.matmul %187, %169, %cst_70 {dimension_numbers = #tpu.dot_dimension_numbers<[1], [0], [0], [1], [0, 0, 1, 1], [], []>} : vector<8x8xbf16>, vector<8x4xbf16>, vector<8x4xf32> -> vector<8x4xf32>
    %189 = arith.truncf %188 : vector<8x4xf32> to vector<8x4xbf16>
    %190 = vector.extract_strided_slice %5 {offsets = [24, 0], sizes = [4, 32], strides = [1, 1]} : vector<32x32xbf16> to vector<4x32xbf16>
    %cst_71 = arith.constant dense<0.000000e+00> : vector<8x32xf32>
    %191 = tpu.matmul %189, %190, %cst_71 {dimension_numbers = #tpu.dot_dimension_numbers<[1], [0], [0], [1], [0, 0, 1, 1], [], []>} : vector<8x4xbf16>, vector<4x32xbf16>, vector<8x32xf32> -> vector<8x32xf32>
    %192 = arith.addf %166, %191 : vector<8x32xf32>
    %193 = vector.extract_strided_slice %2 {offsets = [0, 28], sizes = [8, 4], strides = [1, 1]} : vector<8x32xbf16> to vector<8x4xbf16>
    %194 = vector.extract_strided_slice %3 {offsets = [0, 28], sizes = [8, 4], strides = [1, 1]} : vector<8x32xbf16> to vector<8x4xbf16>
    %195 = vector.extract_strided_slice %4 {offsets = [0, 28], sizes = [8, 4], strides = [1, 1]} : vector<8x32xbf16> to vector<8x4xbf16>
    %cst_72 = arith.constant dense<0.000000e+00> : vector<8x8xf32>
    %196 = tpu.matmul %193, %194, %cst_72 {dimension_numbers = #tpu.dot_dimension_numbers<[1], [1], [0], [0], [0, 0, 1, 0], [], []>} : vector<8x4xbf16>, vector<8x4xbf16>, vector<8x8xf32> -> vector<8x8xf32>
    %cst_73 = arith.constant 5.000000e-01 : f32
    %197 = vector.broadcast %cst_73 : f32 to vector<8x8xf32>
    %198 = arith.mulf %196, %197 : vector<8x8xf32>
    %c0_74 = arith.constant 0 : index
    %c7 = arith.constant 7 : index
    %c0_75 = arith.constant 0 : index
    %c0_76 = arith.constant 0 : index
    %199 = vector.load %arg2[%c0_74, %c7, %c0_75, %c0_76] : memref<1x8x8x8xbf16, #tpu.memory_space<vmem>>, vector<1x1x8x8xbf16>
    %200 = vector.shape_cast %199 : vector<1x1x8x8xbf16> to vector<8x8xbf16>
    %201 = arith.extf %200 : vector<8x8xbf16> to vector<8x8xf32>
    %202 = arith.addf %198, %201 : vector<8x8xf32>
    %cst_77 = arith.constant dense<0xFF800000> : vector<8xf32>
    %203 = vector.multi_reduction <maximumf>, %202, %cst_77 [1] : vector<8x8xf32> to vector<8xf32>
    %204 = vector.shape_cast %203 : vector<8xf32> to vector<8x1xf32>
    %205 = vector.broadcast %204 : vector<8x1xf32> to vector<8x8xf32>
    %206 = arith.subf %202, %205 : vector<8x8xf32>
    %207 = math.exp %206 : vector<8x8xf32>
    %cst_78 = arith.constant dense<0.000000e+00> : vector<8xf32>
    %208 = vector.multi_reduction <add>, %207, %cst_78 [1] : vector<8x8xf32> to vector<8xf32>
    %209 = vector.shape_cast %208 : vector<8xf32> to vector<8x1xf32>
    %210 = tpu.reciprocal %209 {approx = true} : vector<8x1xf32> -> vector<8x1xf32>
    %211 = vector.broadcast %210 : vector<8x1xf32> to vector<8x8xf32>
    %212 = arith.mulf %207, %211 : vector<8x8xf32>
    %213 = arith.truncf %212 : vector<8x8xf32> to vector<8x8xbf16>
    %cst_79 = arith.constant dense<0.000000e+00> : vector<8x4xf32>
    %214 = tpu.matmul %213, %195, %cst_79 {dimension_numbers = #tpu.dot_dimension_numbers<[1], [0], [0], [1], [0, 0, 1, 1], [], []>} : vector<8x8xbf16>, vector<8x4xbf16>, vector<8x4xf32> -> vector<8x4xf32>
    %215 = arith.truncf %214 : vector<8x4xf32> to vector<8x4xbf16>
    %216 = vector.extract_strided_slice %5 {offsets = [28, 0], sizes = [4, 32], strides = [1, 1]} : vector<32x32xbf16> to vector<4x32xbf16>
    %cst_80 = arith.constant dense<0.000000e+00> : vector<8x32xf32>
    %217 = tpu.matmul %215, %216, %cst_80 {dimension_numbers = #tpu.dot_dimension_numbers<[1], [0], [0], [1], [0, 0, 1, 1], [], []>} : vector<8x4xbf16>, vector<4x32xbf16>, vector<8x32xf32> -> vector<8x32xf32>
    %218 = arith.addf %192, %217 : vector<8x32xf32>
    %c0_81 = arith.constant 0 : index
    %c0_82 = arith.constant 0 : index
    %c0_83 = arith.constant 0 : index
    %219 = vector.load %arg6[%c0_81, %c0_82, %c0_83] : memref<1x8x32xf32, #tpu.memory_space<vmem>>, vector<1x8x32xf32>
    %220 = vector.shape_cast %219 : vector<1x8x32xf32> to vector<8x32xf32>
    %221 = vector.shape_cast %218 : vector<8x32xf32> to vector<1x8x32xf32>
    tpu.vector_store %arg6[%c0_81, %c0_82, %c0_83], %221 {strides = array<i32>} : memref<1x8x32xf32, #tpu.memory_space<vmem>>, vector<1x8x32xf32>,
    return
  }
  func.func @transform_0(%arg0: i32) -> (i32, i32, i32) {
    %c0_i32 = arith.constant 0 : i32
    %c0_i32_0 = arith.constant 0 : i32
    %c0_i32_1 = arith.constant 0 : i32
    return %arg0, %c0_i32, %c0_i32_0 : i32, i32, i32
  }
  func.func @transform_1(%arg0: i32) -> (i32, i32, i32, i32) {
    %c0_i32 = arith.constant 0 : i32
    %c0_i32_0 = arith.constant 0 : i32
    %c0_i32_1 = arith.constant 0 : i32
    %c0_i32_2 = arith.constant 0 : i32
    %c0_i32_3 = arith.constant 0 : i32
    return %c0_i32, %c0_i32_0, %c0_i32_1, %c0_i32_2 : i32, i32, i32, i32
  }
  func.func @transform_2(%arg0: i32) -> (i32, i32) {
    %c0_i32 = arith.constant 0 : i32
    %c0_i32_0 = arith.constant 0 : i32
    %c0_i32_1 = arith.constant 0 : i32
    return %c0_i32, %c0_i32_0 : i32, i32
  }
  func.func @transform_3(%arg0: i32) -> (i32, i32) {
    %c0_i32 = arith.constant 0 : i32
    %c0_i32_0 = arith.constant 0 : i32
    %c0_i32_1 = arith.constant 0 : i32
    return %c0_i32, %c0_i32_0 : i32, i32
  }
  func.func @transform_4(%arg0: i32) -> (i32, i32, i32) {
    %c0_i32 = arith.constant 0 : i32
    %c0_i32_0 = arith.constant 0 : i32
    %c0_i32_1 = arith.constant 0 : i32
    return %arg0, %c0_i32, %c0_i32_0 : i32, i32, i32
  }
  func.func @transform_5(%arg0: i32) -> (i32, i32, i32) {
    %c0_i32 = arith.constant 0 : i32
    %c0_i32_0 = arith.constant 0 : i32
    %c0_i32_1 = arith.constant 0 : i32
    return %arg0, %c0_i32, %c0_i32_0 : i32, i32, i32
  }
}

module attributes {stable_mosaic.version = 11 : i64} {
  func.func @_ln_matmul_kernel(%arg0: i32, %arg1: i32, %arg2: memref<32x32xf32, #tpu.memory_space<vmem>>, %arg3: memref<1x32xf32, #tpu.memory_space<vmem>>, %arg4: memref<1x32xf32, #tpu.memory_space<vmem>>, %arg5: memref<32x64xbf16, #tpu.memory_space<vmem>>, %arg6: memref<32x64xbf16, #tpu.memory_space<vmem>>, %arg7: memref<32x32xbf16, #tpu.memory_space<vmem>>) attributes {dimension_semantics = [#tpu.dimension_semantics<parallel>, #tpu.dimension_semantics<arbitrary>], iteration_bounds = array<i64: 1, 1>, scalar_prefetch = 0 : i64, scratch_operands = 1 : i64, tpu.core_type = #tpu.core_type<tc>, window_params = [{transform_indices = @transform_0, window_bounds = array<i64: 32, 32>}, {pipeline_mode = #tpu.pipeline_mode<synchronous>, transform_indices = @transform_1, window_bounds = array<i64: 1, 32>}, {pipeline_mode = #tpu.pipeline_mode<synchronous>, transform_indices = @transform_2, window_bounds = array<i64: 1, 32>}, {transform_indices = @transform_3, window_bounds = array<i64: 32, 64>}, {transform_indices = @transform_4, window_bounds = array<i64: 32, 64>}]} {
    %c0_i32 = arith.constant 0 : i32
    %0 = arith.cmpi eq, %arg1, %c0_i32 : i32
    %1 = arith.extui %0 : i1 to i32
    %c0_i32_0 = arith.constant 0 : i32
    %2 = arith.cmpi ne, %1, %c0_i32_0 : i32
    scf.if %2 {
      %c0_6 = arith.constant 0 : index
      %c0_7 = arith.constant 0 : index
      %8 = vector.load %arg2[%c0_6, %c0_7] : memref<32x32xf32, #tpu.memory_space<vmem>>, vector<32x32xf32>
      %c0_8 = arith.constant 0 : index
      %c0_9 = arith.constant 0 : index
      %9 = vector.load %arg3[%c0_8, %c0_9] : memref<1x32xf32, #tpu.memory_space<vmem>>, vector<1x32xf32>
      %c0_10 = arith.constant 0 : index
      %c0_11 = arith.constant 0 : index
      %10 = vector.load %arg4[%c0_10, %c0_11] : memref<1x32xf32, #tpu.memory_space<vmem>>, vector<1x32xf32>
      %cst_12 = arith.constant dense<0.000000e+00> : vector<32xf32>
      %11 = vector.multi_reduction <add>, %8, %cst_12 [1] : vector<32x32xf32> to vector<32xf32>
      %12 = vector.shape_cast %11 : vector<32xf32> to vector<32x1xf32>
      %cst_13 = arith.constant 3.200000e+01 : f32
      %13 = vector.broadcast %cst_13 : f32 to vector<32x1xf32>
      %14 = arith.divf %12, %13 : vector<32x1xf32>
      %15 = vector.broadcast %14 : vector<32x1xf32> to vector<32x32xf32>
      %16 = arith.subf %8, %15 : vector<32x32xf32>
      %17 = arith.mulf %16, %16 : vector<32x32xf32>
      %cst_14 = arith.constant dense<0.000000e+00> : vector<32xf32>
      %18 = vector.multi_reduction <add>, %17, %cst_14 [1] : vector<32x32xf32> to vector<32xf32>
      %19 = vector.shape_cast %18 : vector<32xf32> to vector<32x1xf32>
      %cst_15 = arith.constant 3.200000e+01 : f32
      %20 = vector.broadcast %cst_15 : f32 to vector<32x1xf32>
      %21 = arith.divf %19, %20 : vector<32x1xf32>
      %cst_16 = arith.constant 9.99999974E-6 : f32
      %22 = vector.broadcast %cst_16 : f32 to vector<32x1xf32>
      %23 = arith.addf %21, %22 : vector<32x1xf32>
      %24 = math.rsqrt %23 : vector<32x1xf32>
      %25 = vector.broadcast %24 : vector<32x1xf32> to vector<32x32xf32>
      %26 = arith.mulf %16, %25 : vector<32x32xf32>
      %27 = vector.broadcast %9 : vector<1x32xf32> to vector<32x32xf32>
      %28 = arith.mulf %26, %27 : vector<32x32xf32>
      %29 = vector.broadcast %10 : vector<1x32xf32> to vector<32x32xf32>
      %30 = arith.addf %28, %29 : vector<32x32xf32>
      %31 = arith.truncf %30 : vector<32x32xf32> to vector<32x32xbf16>
      %c0_17 = arith.constant 0 : index
      %c0_18 = arith.constant 0 : index
      %32 = vector.load %arg7[%c0_17, %c0_18] : memref<32x32xbf16, #tpu.memory_space<vmem>>, vector<32x32xbf16>
      tpu.vector_store %arg7[%c0_17, %c0_18], %31 {strides = array<i32>} : memref<32x32xbf16, #tpu.memory_space<vmem>>, vector<32x32xbf16>,
    } else {
    }
    %c0 = arith.constant 0 : index
    %c0_1 = arith.constant 0 : index
    %3 = vector.load %arg7[%c0, %c0_1] : memref<32x32xbf16, #tpu.memory_space<vmem>>, vector<32x32xbf16>
    %c0_2 = arith.constant 0 : index
    %c0_3 = arith.constant 0 : index
    %4 = vector.load %arg5[%c0_2, %c0_3] : memref<32x64xbf16, #tpu.memory_space<vmem>>, vector<32x64xbf16>
    %cst = arith.constant dense<0.000000e+00> : vector<32x64xf32>
    %5 = tpu.matmul %3, %4, %cst {dimension_numbers = #tpu.dot_dimension_numbers<[1], [0], [0], [1], [0, 0, 1, 1], [], []>} : vector<32x32xbf16>, vector<32x64xbf16>, vector<32x64xf32> -> vector<32x64xf32>
    %6 = arith.truncf %5 : vector<32x64xf32> to vector<32x64xbf16>
    %c0_4 = arith.constant 0 : index
    %c0_5 = arith.constant 0 : index
    %7 = vector.load %arg6[%c0_4, %c0_5] : memref<32x64xbf16, #tpu.memory_space<vmem>>, vector<32x64xbf16>
    tpu.vector_store %arg6[%c0_4, %c0_5], %6 {strides = array<i32>} : memref<32x64xbf16, #tpu.memory_space<vmem>>, vector<32x64xbf16>,
    return
  }
  func.func @transform_0(%arg0: i32, %arg1: i32) -> (i32, i32) {
    %c0_i32 = arith.constant 0 : i32
    %c0_i32_0 = arith.constant 0 : i32
    return %arg0, %c0_i32 : i32, i32
  }
  func.func @transform_1(%arg0: i32, %arg1: i32) -> (i32, i32) {
    %c0_i32 = arith.constant 0 : i32
    %c0_i32_0 = arith.constant 0 : i32
    %c0_i32_1 = arith.constant 0 : i32
    return %c0_i32, %c0_i32_0 : i32, i32
  }
  func.func @transform_2(%arg0: i32, %arg1: i32) -> (i32, i32) {
    %c0_i32 = arith.constant 0 : i32
    %c0_i32_0 = arith.constant 0 : i32
    %c0_i32_1 = arith.constant 0 : i32
    return %c0_i32, %c0_i32_0 : i32, i32
  }
  func.func @transform_3(%arg0: i32, %arg1: i32) -> (i32, i32) {
    %c0_i32 = arith.constant 0 : i32
    %c0_i32_0 = arith.constant 0 : i32
    return %c0_i32, %arg1 : i32, i32
  }
  func.func @transform_4(%arg0: i32, %arg1: i32) -> (i32, i32) {
    %c0_i32 = arith.constant 0 : i32
    return %arg0, %arg1 : i32, i32
  }
}

module attributes {stable_mosaic.version = 11 : i64} {
  func.func @_ln_matmul_gelu_kernel(%arg0: i32, %arg1: i32, %arg2: memref<16x32xf32, #tpu.memory_space<vmem>>, %arg3: memref<1x32xf32, #tpu.memory_space<vmem>>, %arg4: memref<1x32xf32, #tpu.memory_space<vmem>>, %arg5: memref<32x128xbf16, #tpu.memory_space<vmem>>, %arg6: memref<1x128xf32, #tpu.memory_space<vmem>>, %arg7: memref<16x128xbf16, #tpu.memory_space<vmem>>, %arg8: memref<16x32xbf16, #tpu.memory_space<vmem>>) attributes {dimension_semantics = [#tpu.dimension_semantics<parallel>, #tpu.dimension_semantics<arbitrary>], iteration_bounds = array<i64: 1, 1>, scalar_prefetch = 0 : i64, scratch_operands = 1 : i64, tpu.core_type = #tpu.core_type<tc>, window_params = [{transform_indices = @transform_0, window_bounds = array<i64: 16, 32>}, {pipeline_mode = #tpu.pipeline_mode<synchronous>, transform_indices = @transform_1, window_bounds = array<i64: 1, 32>}, {pipeline_mode = #tpu.pipeline_mode<synchronous>, transform_indices = @transform_2, window_bounds = array<i64: 1, 32>}, {transform_indices = @transform_3, window_bounds = array<i64: 32, 128>}, {transform_indices = @transform_4, window_bounds = array<i64: 1, 128>}, {transform_indices = @transform_5, window_bounds = array<i64: 16, 128>}]} {
    %c0_i32 = arith.constant 0 : i32
    %0 = arith.cmpi eq, %arg1, %c0_i32 : i32
    %1 = arith.extui %0 : i1 to i32
    %c0_i32_0 = arith.constant 0 : i32
    %2 = arith.cmpi ne, %1, %c0_i32_0 : i32
    scf.if %2 {
      %c0_23 = arith.constant 0 : index
      %c0_24 = arith.constant 0 : index
      %51 = vector.load %arg2[%c0_23, %c0_24] : memref<16x32xf32, #tpu.memory_space<vmem>>, vector<16x32xf32>
      %c0_25 = arith.constant 0 : index
      %c0_26 = arith.constant 0 : index
      %52 = vector.load %arg3[%c0_25, %c0_26] : memref<1x32xf32, #tpu.memory_space<vmem>>, vector<1x32xf32>
      %c0_27 = arith.constant 0 : index
      %c0_28 = arith.constant 0 : index
      %53 = vector.load %arg4[%c0_27, %c0_28] : memref<1x32xf32, #tpu.memory_space<vmem>>, vector<1x32xf32>
      %cst_29 = arith.constant dense<0.000000e+00> : vector<16xf32>
      %54 = vector.multi_reduction <add>, %51, %cst_29 [1] : vector<16x32xf32> to vector<16xf32>
      %55 = vector.shape_cast %54 : vector<16xf32> to vector<16x1xf32>
      %cst_30 = arith.constant 3.200000e+01 : f32
      %56 = vector.broadcast %cst_30 : f32 to vector<16x1xf32>
      %57 = arith.divf %55, %56 : vector<16x1xf32>
      %58 = vector.broadcast %57 : vector<16x1xf32> to vector<16x32xf32>
      %59 = arith.subf %51, %58 : vector<16x32xf32>
      %60 = arith.mulf %59, %59 : vector<16x32xf32>
      %cst_31 = arith.constant dense<0.000000e+00> : vector<16xf32>
      %61 = vector.multi_reduction <add>, %60, %cst_31 [1] : vector<16x32xf32> to vector<16xf32>
      %62 = vector.shape_cast %61 : vector<16xf32> to vector<16x1xf32>
      %cst_32 = arith.constant 3.200000e+01 : f32
      %63 = vector.broadcast %cst_32 : f32 to vector<16x1xf32>
      %64 = arith.divf %62, %63 : vector<16x1xf32>
      %cst_33 = arith.constant 9.99999974E-6 : f32
      %65 = vector.broadcast %cst_33 : f32 to vector<16x1xf32>
      %66 = arith.addf %64, %65 : vector<16x1xf32>
      %67 = math.rsqrt %66 : vector<16x1xf32>
      %68 = vector.broadcast %67 : vector<16x1xf32> to vector<16x32xf32>
      %69 = arith.mulf %59, %68 : vector<16x32xf32>
      %70 = vector.broadcast %52 : vector<1x32xf32> to vector<16x32xf32>
      %71 = arith.mulf %69, %70 : vector<16x32xf32>
      %72 = vector.broadcast %53 : vector<1x32xf32> to vector<16x32xf32>
      %73 = arith.addf %71, %72 : vector<16x32xf32>
      %74 = arith.truncf %73 : vector<16x32xf32> to vector<16x32xbf16>
      %c0_34 = arith.constant 0 : index
      %c0_35 = arith.constant 0 : index
      %75 = vector.load %arg8[%c0_34, %c0_35] : memref<16x32xbf16, #tpu.memory_space<vmem>>, vector<16x32xbf16>
      tpu.vector_store %arg8[%c0_34, %c0_35], %74 {strides = array<i32>} : memref<16x32xbf16, #tpu.memory_space<vmem>>, vector<16x32xbf16>,
    } else {
    }
    %c0 = arith.constant 0 : index
    %c0_1 = arith.constant 0 : index
    %3 = vector.load %arg8[%c0, %c0_1] : memref<16x32xbf16, #tpu.memory_space<vmem>>, vector<16x32xbf16>
    %c0_2 = arith.constant 0 : index
    %c0_3 = arith.constant 0 : index
    %4 = vector.load %arg5[%c0_2, %c0_3] : memref<32x128xbf16, #tpu.memory_space<vmem>>, vector<32x128xbf16>
    %cst = arith.constant dense<0.000000e+00> : vector<16x128xf32>
    %5 = tpu.matmul %3, %4, %cst {dimension_numbers = #tpu.dot_dimension_numbers<[1], [0], [0], [1], [0, 0, 1, 1], [], []>} : vector<16x32xbf16>, vector<32x128xbf16>, vector<16x128xf32> -> vector<16x128xf32>
    %c0_4 = arith.constant 0 : index
    %c0_5 = arith.constant 0 : index
    %6 = vector.load %arg6[%c0_4, %c0_5] : memref<1x128xf32, #tpu.memory_space<vmem>>, vector<1x128xf32>
    %7 = vector.broadcast %6 : vector<1x128xf32> to vector<16x128xf32>
    %8 = arith.addf %5, %7 : vector<16x128xf32>
    %cst_6 = arith.constant 5.000000e-01 : f32
    %9 = vector.broadcast %cst_6 : f32 to vector<16x128xf32>
    %10 = arith.mulf %9, %8 : vector<16x128xf32>
    %cst_7 = arith.constant 0.707106769 : f32
    %11 = vector.broadcast %cst_7 : f32 to vector<16x128xf32>
    %12 = arith.mulf %8, %11 : vector<16x128xf32>
    %13 = math.absf %12 : vector<16x128xf32>
    %cst_8 = arith.constant 0.327591091 : f32
    %14 = vector.broadcast %cst_8 : f32 to vector<16x128xf32>
    %15 = arith.mulf %14, %13 : vector<16x128xf32>
    %cst_9 = arith.constant 1.000000e+00 : f32
    %16 = vector.broadcast %cst_9 : f32 to vector<16x128xf32>
    %17 = arith.addf %16, %15 : vector<16x128xf32>
    %cst_10 = arith.constant 1.000000e+00 : f32
    %18 = vector.broadcast %cst_10 : f32 to vector<16x128xf32>
    %19 = arith.divf %18, %17 : vector<16x128xf32>
    %cst_11 = arith.constant 1.06140542 : f32
    %20 = vector.broadcast %cst_11 : f32 to vector<16x128xf32>
    %21 = arith.mulf %19, %20 : vector<16x128xf32>
    %cst_12 = arith.constant -1.45315206 : f32
    %22 = vector.broadcast %cst_12 : f32 to vector<16x128xf32>
    %23 = arith.addf %22, %21 : vector<16x128xf32>
    %24 = arith.mulf %19, %23 : vector<16x128xf32>
    %cst_13 = arith.constant 1.42141378 : f32
    %25 = vector.broadcast %cst_13 : f32 to vector<16x128xf32>
    %26 = arith.addf %25, %24 : vector<16x128xf32>
    %27 = arith.mulf %19, %26 : vector<16x128xf32>
    %cst_14 = arith.constant -0.284496725 : f32
    %28 = vector.broadcast %cst_14 : f32 to vector<16x128xf32>
    %29 = arith.addf %28, %27 : vector<16x128xf32>
    %30 = arith.mulf %19, %29 : vector<16x128xf32>
    %cst_15 = arith.constant 0.254829586 : f32
    %31 = vector.broadcast %cst_15 : f32 to vector<16x128xf32>
    %32 = arith.addf %31, %30 : vector<16x128xf32>
    %33 = arith.mulf %19, %32 : vector<16x128xf32>
    %cst_16 = arith.constant 0.000000e+00 : f32
    %34 = vector.broadcast %cst_16 : f32 to vector<16x128xf32>
    %35 = arith.subf %34, %13 : vector<16x128xf32>
    %36 = arith.mulf %35, %13 : vector<16x128xf32>
    %37 = math.exp %36 : vector<16x128xf32>
    %38 = arith.mulf %33, %37 : vector<16x128xf32>
    %cst_17 = arith.constant 1.000000e+00 : f32
    %39 = vector.broadcast %cst_17 : f32 to vector<16x128xf32>
    %40 = arith.subf %39, %38 : vector<16x128xf32>
    %cst_18 = arith.constant 0.000000e+00 : f32
    %41 = vector.broadcast %cst_18 : f32 to vector<16x128xf32>
    %42 = arith.cmpf oge, %12, %41 : vector<16x128xf32>
    %cst_19 = arith.constant 0.000000e+00 : f32
    %43 = vector.broadcast %cst_19 : f32 to vector<16x128xf32>
    %44 = arith.subf %43, %40 : vector<16x128xf32>
    %45 = arith.select %42, %40, %44 : vector<16x128xi1>, vector<16x128xf32>
    %cst_20 = arith.constant 1.000000e+00 : f32
    %46 = vector.broadcast %cst_20 : f32 to vector<16x128xf32>
    %47 = arith.addf %46, %45 : vector<16x128xf32>
    %48 = arith.mulf %10, %47 : vector<16x128xf32>
    %49 = arith.truncf %48 : vector<16x128xf32> to vector<16x128xbf16>
    %c0_21 = arith.constant 0 : index
    %c0_22 = arith.constant 0 : index
    %50 = vector.load %arg7[%c0_21, %c0_22] : memref<16x128xbf16, #tpu.memory_space<vmem>>, vector<16x128xbf16>
    tpu.vector_store %arg7[%c0_21, %c0_22], %49 {strides = array<i32>} : memref<16x128xbf16, #tpu.memory_space<vmem>>, vector<16x128xbf16>,
    return
  }
  func.func @transform_0(%arg0: i32, %arg1: i32) -> (i32, i32) {
    %c0_i32 = arith.constant 0 : i32
    %c0_i32_0 = arith.constant 0 : i32
    return %arg0, %c0_i32 : i32, i32
  }
  func.func @transform_1(%arg0: i32, %arg1: i32) -> (i32, i32) {
    %c0_i32 = arith.constant 0 : i32
    %c0_i32_0 = arith.constant 0 : i32
    %c0_i32_1 = arith.constant 0 : i32
    return %c0_i32, %c0_i32_0 : i32, i32
  }
  func.func @transform_2(%arg0: i32, %arg1: i32) -> (i32, i32) {
    %c0_i32 = arith.constant 0 : i32
    %c0_i32_0 = arith.constant 0 : i32
    %c0_i32_1 = arith.constant 0 : i32
    return %c0_i32, %c0_i32_0 : i32, i32
  }
  func.func @transform_3(%arg0: i32, %arg1: i32) -> (i32, i32) {
    %c0_i32 = arith.constant 0 : i32
    %c0_i32_0 = arith.constant 0 : i32
    return %c0_i32, %arg1 : i32, i32
  }
  func.func @transform_4(%arg0: i32, %arg1: i32) -> (i32, i32) {
    %c0_i32 = arith.constant 0 : i32
    %c0_i32_0 = arith.constant 0 : i32
    return %c0_i32, %arg1 : i32, i32
  }
  func.func @transform_5(%arg0: i32, %arg1: i32) -> (i32, i32) {
    %c0_i32 = arith.constant 0 : i32
    return %arg0, %arg1 : i32, i32
  }
}

module attributes {stable_mosaic.version = 11 : i64} {
  func.func @_cross_attn_kernel(%arg0: i32, %arg1: memref<1x8x32xbf16, #tpu.memory_space<vmem>>, %arg2: memref<1x16x64xbf16, #tpu.memory_space<vmem>>, %arg3: memref<1x8x8x16xbf16, #tpu.memory_space<vmem>>, %arg4: memref<32x32xbf16, #tpu.memory_space<vmem>>, %arg5: memref<1x32xf32, #tpu.memory_space<vmem>>, %arg6: memref<1x8x32xf32, #tpu.memory_space<vmem>>, %arg7: memref<1x8x32xf32, #tpu.memory_space<vmem>>) attributes {dimension_semantics = [#tpu.dimension_semantics<parallel>], iteration_bounds = array<i64: 2>, scalar_prefetch = 0 : i64, scratch_operands = 0 : i64, tpu.core_type = #tpu.core_type<tc>, window_params = [{transform_indices = @transform_0, window_bounds = array<i64: 1, 8, 32>}, {transform_indices = @transform_1, window_bounds = array<i64: 1, 16, 64>}, {pipeline_mode = #tpu.pipeline_mode<synchronous>, transform_indices = @transform_2, window_bounds = array<i64: 1, 8, 8, 16>}, {pipeline_mode = #tpu.pipeline_mode<synchronous>, transform_indices = @transform_3, window_bounds = array<i64: 32, 32>}, {pipeline_mode = #tpu.pipeline_mode<synchronous>, transform_indices = @transform_4, window_bounds = array<i64: 1, 32>}, {transform_indices = @transform_5, window_bounds = array<i64: 1, 8, 32>}, {transform_indices = @transform_6, window_bounds = array<i64: 1, 8, 32>}]} {
    %c0 = arith.constant 0 : index
    %c0_0 = arith.constant 0 : index
    %c0_1 = arith.constant 0 : index
    %0 = vector.load %arg1[%c0, %c0_0, %c0_1] : memref<1x8x32xbf16, #tpu.memory_space<vmem>>, vector<1x8x32xbf16>
    %1 = vector.shape_cast %0 : vector<1x8x32xbf16> to vector<8x32xbf16>
    %c0_2 = arith.constant 0 : index
    %c0_3 = arith.constant 0 : index
    %c0_4 = arith.constant 0 : index
    %2 = vector.load %arg2[%c0_2, %c0_3, %c0_4] : memref<1x16x64xbf16, #tpu.memory_space<vmem>>, vector<1x16x64xbf16>
    %3 = vector.shape_cast %2 : vector<1x16x64xbf16> to vector<16x64xbf16>
    %4 = vector.extract_strided_slice %3 {offsets = [0, 0], sizes = [16, 32], strides = [1, 1]} : vector<16x64xbf16> to vector<16x32xbf16>
    %5 = vector.extract_strided_slice %3 {offsets = [0, 32], sizes = [16, 32], strides = [1, 1]} : vector<16x64xbf16> to vector<16x32xbf16>
    %c0_5 = arith.constant 0 : index
    %c0_6 = arith.constant 0 : index
    %6 = vector.load %arg4[%c0_5, %c0_6] : memref<32x32xbf16, #tpu.memory_space<vmem>>, vector<32x32xbf16>
    %c0_7 = arith.constant 0 : index
    %c0_8 = arith.constant 0 : index
    %c0_9 = arith.constant 0 : index
    %7 = vector.load %arg6[%c0_7, %c0_8, %c0_9] : memref<1x8x32xf32, #tpu.memory_space<vmem>>, vector<1x8x32xf32>
    %8 = vector.shape_cast %7 : vector<1x8x32xf32> to vector<8x32xf32>
    %c0_10 = arith.constant 0 : index
    %c0_11 = arith.constant 0 : index
    %9 = vector.load %arg5[%c0_10, %c0_11] : memref<1x32xf32, #tpu.memory_space<vmem>>, vector<1x32xf32>
    %10 = vector.broadcast %9 : vector<1x32xf32> to vector<8x32xf32>
    %11 = arith.addf %8, %10 : vector<8x32xf32>
    %12 = vector.extract_strided_slice %1 {offsets = [0, 0], sizes = [8, 4], strides = [1, 1]} : vector<8x32xbf16> to vector<8x4xbf16>
    %13 = vector.extract_strided_slice %4 {offsets = [0, 0], sizes = [16, 4], strides = [1, 1]} : vector<16x32xbf16> to vector<16x4xbf16>
    %14 = vector.extract_strided_slice %5 {offsets = [0, 0], sizes = [16, 4], strides = [1, 1]} : vector<16x32xbf16> to vector<16x4xbf16>
    %cst = arith.constant dense<0.000000e+00> : vector<8x16xf32>
    %15 = tpu.matmul %12, %13, %cst {dimension_numbers = #tpu.dot_dimension_numbers<[1], [1], [0], [0], [0, 0, 1, 0], [], []>} : vector<8x4xbf16>, vector<16x4xbf16>, vector<8x16xf32> -> vector<8x16xf32>
    %cst_12 = arith.constant 5.000000e-01 : f32
    %16 = vector.broadcast %cst_12 : f32 to vector<8x16xf32>
    %17 = arith.mulf %15, %16 : vector<8x16xf32>
    %c0_13 = arith.constant 0 : index
    %c0_14 = arith.constant 0 : index
    %c0_15 = arith.constant 0 : index
    %c0_16 = arith.constant 0 : index
    %18 = vector.load %arg3[%c0_13, %c0_14, %c0_15, %c0_16] : memref<1x8x8x16xbf16, #tpu.memory_space<vmem>>, vector<1x1x8x16xbf16>
    %19 = vector.shape_cast %18 : vector<1x1x8x16xbf16> to vector<8x16xbf16>
    %20 = arith.extf %19 : vector<8x16xbf16> to vector<8x16xf32>
    %21 = arith.addf %17, %20 : vector<8x16xf32>
    %cst_17 = arith.constant dense<0xFF800000> : vector<8xf32>
    %22 = vector.multi_reduction <maximumf>, %21, %cst_17 [1] : vector<8x16xf32> to vector<8xf32>
    %23 = vector.shape_cast %22 : vector<8xf32> to vector<8x1xf32>
    %24 = vector.broadcast %23 : vector<8x1xf32> to vector<8x16xf32>
    %25 = arith.subf %21, %24 : vector<8x16xf32>
    %26 = math.exp %25 : vector<8x16xf32>
    %cst_18 = arith.constant dense<0.000000e+00> : vector<8xf32>
    %27 = vector.multi_reduction <add>, %26, %cst_18 [1] : vector<8x16xf32> to vector<8xf32>
    %28 = vector.shape_cast %27 : vector<8xf32> to vector<8x1xf32>
    %29 = tpu.reciprocal %28 {approx = true} : vector<8x1xf32> -> vector<8x1xf32>
    %30 = vector.broadcast %29 : vector<8x1xf32> to vector<8x16xf32>
    %31 = arith.mulf %26, %30 : vector<8x16xf32>
    %32 = arith.truncf %31 : vector<8x16xf32> to vector<8x16xbf16>
    %cst_19 = arith.constant dense<0.000000e+00> : vector<8x4xf32>
    %33 = tpu.matmul %32, %14, %cst_19 {dimension_numbers = #tpu.dot_dimension_numbers<[1], [0], [0], [1], [0, 0, 1, 1], [], []>} : vector<8x16xbf16>, vector<16x4xbf16>, vector<8x4xf32> -> vector<8x4xf32>
    %34 = arith.truncf %33 : vector<8x4xf32> to vector<8x4xbf16>
    %35 = vector.extract_strided_slice %6 {offsets = [0, 0], sizes = [4, 32], strides = [1, 1]} : vector<32x32xbf16> to vector<4x32xbf16>
    %cst_20 = arith.constant dense<0.000000e+00> : vector<8x32xf32>
    %36 = tpu.matmul %34, %35, %cst_20 {dimension_numbers = #tpu.dot_dimension_numbers<[1], [0], [0], [1], [0, 0, 1, 1], [], []>} : vector<8x4xbf16>, vector<4x32xbf16>, vector<8x32xf32> -> vector<8x32xf32>
    %37 = arith.addf %11, %36 : vector<8x32xf32>
    %38 = vector.extract_strided_slice %1 {offsets = [0, 4], sizes = [8, 4], strides = [1, 1]} : vector<8x32xbf16> to vector<8x4xbf16>
    %39 = vector.extract_strided_slice %4 {offsets = [0, 4], sizes = [16, 4], strides = [1, 1]} : vector<16x32xbf16> to vector<16x4xbf16>
    %40 = vector.extract_strided_slice %5 {offsets = [0, 4], sizes = [16, 4], strides = [1, 1]} : vector<16x32xbf16> to vector<16x4xbf16>
    %cst_21 = arith.constant dense<0.000000e+00> : vector<8x16xf32>
    %41 = tpu.matmul %38, %39, %cst_21 {dimension_numbers = #tpu.dot_dimension_numbers<[1], [1], [0], [0], [0, 0, 1, 0], [], []>} : vector<8x4xbf16>, vector<16x4xbf16>, vector<8x16xf32> -> vector<8x16xf32>
    %cst_22 = arith.constant 5.000000e-01 : f32
    %42 = vector.broadcast %cst_22 : f32 to vector<8x16xf32>
    %43 = arith.mulf %41, %42 : vector<8x16xf32>
    %c0_23 = arith.constant 0 : index
    %c1 = arith.constant 1 : index
    %c0_24 = arith.constant 0 : index
    %c0_25 = arith.constant 0 : index
    %44 = vector.load %arg3[%c0_23, %c1, %c0_24, %c0_25] : memref<1x8x8x16xbf16, #tpu.memory_space<vmem>>, vector<1x1x8x16xbf16>
    %45 = vector.shape_cast %44 : vector<1x1x8x16xbf16> to vector<8x16xbf16>
    %46 = arith.extf %45 : vector<8x16xbf16> to vector<8x16xf32>
    %47 = arith.addf %43, %46 : vector<8x16xf32>
    %cst_26 = arith.constant dense<0xFF800000> : vector<8xf32>
    %48 = vector.multi_reduction <maximumf>, %47, %cst_26 [1] : vector<8x16xf32> to vector<8xf32>
    %49 = vector.shape_cast %48 : vector<8xf32> to vector<8x1xf32>
    %50 = vector.broadcast %49 : vector<8x1xf32> to vector<8x16xf32>
    %51 = arith.subf %47, %50 : vector<8x16xf32>
    %52 = math.exp %51 : vector<8x16xf32>
    %cst_27 = arith.constant dense<0.000000e+00> : vector<8xf32>
    %53 = vector.multi_reduction <add>, %52, %cst_27 [1] : vector<8x16xf32> to vector<8xf32>
    %54 = vector.shape_cast %53 : vector<8xf32> to vector<8x1xf32>
    %55 = tpu.reciprocal %54 {approx = true} : vector<8x1xf32> -> vector<8x1xf32>
    %56 = vector.broadcast %55 : vector<8x1xf32> to vector<8x16xf32>
    %57 = arith.mulf %52, %56 : vector<8x16xf32>
    %58 = arith.truncf %57 : vector<8x16xf32> to vector<8x16xbf16>
    %cst_28 = arith.constant dense<0.000000e+00> : vector<8x4xf32>
    %59 = tpu.matmul %58, %40, %cst_28 {dimension_numbers = #tpu.dot_dimension_numbers<[1], [0], [0], [1], [0, 0, 1, 1], [], []>} : vector<8x16xbf16>, vector<16x4xbf16>, vector<8x4xf32> -> vector<8x4xf32>
    %60 = arith.truncf %59 : vector<8x4xf32> to vector<8x4xbf16>
    %61 = vector.extract_strided_slice %6 {offsets = [4, 0], sizes = [4, 32], strides = [1, 1]} : vector<32x32xbf16> to vector<4x32xbf16>
    %cst_29 = arith.constant dense<0.000000e+00> : vector<8x32xf32>
    %62 = tpu.matmul %60, %61, %cst_29 {dimension_numbers = #tpu.dot_dimension_numbers<[1], [0], [0], [1], [0, 0, 1, 1], [], []>} : vector<8x4xbf16>, vector<4x32xbf16>, vector<8x32xf32> -> vector<8x32xf32>
    %63 = arith.addf %37, %62 : vector<8x32xf32>
    %64 = vector.extract_strided_slice %1 {offsets = [0, 8], sizes = [8, 4], strides = [1, 1]} : vector<8x32xbf16> to vector<8x4xbf16>
    %65 = vector.extract_strided_slice %4 {offsets = [0, 8], sizes = [16, 4], strides = [1, 1]} : vector<16x32xbf16> to vector<16x4xbf16>
    %66 = vector.extract_strided_slice %5 {offsets = [0, 8], sizes = [16, 4], strides = [1, 1]} : vector<16x32xbf16> to vector<16x4xbf16>
    %cst_30 = arith.constant dense<0.000000e+00> : vector<8x16xf32>
    %67 = tpu.matmul %64, %65, %cst_30 {dimension_numbers = #tpu.dot_dimension_numbers<[1], [1], [0], [0], [0, 0, 1, 0], [], []>} : vector<8x4xbf16>, vector<16x4xbf16>, vector<8x16xf32> -> vector<8x16xf32>
    %cst_31 = arith.constant 5.000000e-01 : f32
    %68 = vector.broadcast %cst_31 : f32 to vector<8x16xf32>
    %69 = arith.mulf %67, %68 : vector<8x16xf32>
    %c0_32 = arith.constant 0 : index
    %c2 = arith.constant 2 : index
    %c0_33 = arith.constant 0 : index
    %c0_34 = arith.constant 0 : index
    %70 = vector.load %arg3[%c0_32, %c2, %c0_33, %c0_34] : memref<1x8x8x16xbf16, #tpu.memory_space<vmem>>, vector<1x1x8x16xbf16>
    %71 = vector.shape_cast %70 : vector<1x1x8x16xbf16> to vector<8x16xbf16>
    %72 = arith.extf %71 : vector<8x16xbf16> to vector<8x16xf32>
    %73 = arith.addf %69, %72 : vector<8x16xf32>
    %cst_35 = arith.constant dense<0xFF800000> : vector<8xf32>
    %74 = vector.multi_reduction <maximumf>, %73, %cst_35 [1] : vector<8x16xf32> to vector<8xf32>
    %75 = vector.shape_cast %74 : vector<8xf32> to vector<8x1xf32>
    %76 = vector.broadcast %75 : vector<8x1xf32> to vector<8x16xf32>
    %77 = arith.subf %73, %76 : vector<8x16xf32>
    %78 = math.exp %77 : vector<8x16xf32>
    %cst_36 = arith.constant dense<0.000000e+00> : vector<8xf32>
    %79 = vector.multi_reduction <add>, %78, %cst_36 [1] : vector<8x16xf32> to vector<8xf32>
    %80 = vector.shape_cast %79 : vector<8xf32> to vector<8x1xf32>
    %81 = tpu.reciprocal %80 {approx = true} : vector<8x1xf32> -> vector<8x1xf32>
    %82 = vector.broadcast %81 : vector<8x1xf32> to vector<8x16xf32>
    %83 = arith.mulf %78, %82 : vector<8x16xf32>
    %84 = arith.truncf %83 : vector<8x16xf32> to vector<8x16xbf16>
    %cst_37 = arith.constant dense<0.000000e+00> : vector<8x4xf32>
    %85 = tpu.matmul %84, %66, %cst_37 {dimension_numbers = #tpu.dot_dimension_numbers<[1], [0], [0], [1], [0, 0, 1, 1], [], []>} : vector<8x16xbf16>, vector<16x4xbf16>, vector<8x4xf32> -> vector<8x4xf32>
    %86 = arith.truncf %85 : vector<8x4xf32> to vector<8x4xbf16>
    %87 = vector.extract_strided_slice %6 {offsets = [8, 0], sizes = [4, 32], strides = [1, 1]} : vector<32x32xbf16> to vector<4x32xbf16>
    %cst_38 = arith.constant dense<0.000000e+00> : vector<8x32xf32>
    %88 = tpu.matmul %86, %87, %cst_38 {dimension_numbers = #tpu.dot_dimension_numbers<[1], [0], [0], [1], [0, 0, 1, 1], [], []>} : vector<8x4xbf16>, vector<4x32xbf16>, vector<8x32xf32> -> vector<8x32xf32>
    %89 = arith.addf %63, %88 : vector<8x32xf32>
    %90 = vector.extract_strided_slice %1 {offsets = [0, 12], sizes = [8, 4], strides = [1, 1]} : vector<8x32xbf16> to vector<8x4xbf16>
    %91 = vector.extract_strided_slice %4 {offsets = [0, 12], sizes = [16, 4], strides = [1, 1]} : vector<16x32xbf16> to vector<16x4xbf16>
    %92 = vector.extract_strided_slice %5 {offsets = [0, 12], sizes = [16, 4], strides = [1, 1]} : vector<16x32xbf16> to vector<16x4xbf16>
    %cst_39 = arith.constant dense<0.000000e+00> : vector<8x16xf32>
    %93 = tpu.matmul %90, %91, %cst_39 {dimension_numbers = #tpu.dot_dimension_numbers<[1], [1], [0], [0], [0, 0, 1, 0], [], []>} : vector<8x4xbf16>, vector<16x4xbf16>, vector<8x16xf32> -> vector<8x16xf32>
    %cst_40 = arith.constant 5.000000e-01 : f32
    %94 = vector.broadcast %cst_40 : f32 to vector<8x16xf32>
    %95 = arith.mulf %93, %94 : vector<8x16xf32>
    %c0_41 = arith.constant 0 : index
    %c3 = arith.constant 3 : index
    %c0_42 = arith.constant 0 : index
    %c0_43 = arith.constant 0 : index
    %96 = vector.load %arg3[%c0_41, %c3, %c0_42, %c0_43] : memref<1x8x8x16xbf16, #tpu.memory_space<vmem>>, vector<1x1x8x16xbf16>
    %97 = vector.shape_cast %96 : vector<1x1x8x16xbf16> to vector<8x16xbf16>
    %98 = arith.extf %97 : vector<8x16xbf16> to vector<8x16xf32>
    %99 = arith.addf %95, %98 : vector<8x16xf32>
    %cst_44 = arith.constant dense<0xFF800000> : vector<8xf32>
    %100 = vector.multi_reduction <maximumf>, %99, %cst_44 [1] : vector<8x16xf32> to vector<8xf32>
    %101 = vector.shape_cast %100 : vector<8xf32> to vector<8x1xf32>
    %102 = vector.broadcast %101 : vector<8x1xf32> to vector<8x16xf32>
    %103 = arith.subf %99, %102 : vector<8x16xf32>
    %104 = math.exp %103 : vector<8x16xf32>
    %cst_45 = arith.constant dense<0.000000e+00> : vector<8xf32>
    %105 = vector.multi_reduction <add>, %104, %cst_45 [1] : vector<8x16xf32> to vector<8xf32>
    %106 = vector.shape_cast %105 : vector<8xf32> to vector<8x1xf32>
    %107 = tpu.reciprocal %106 {approx = true} : vector<8x1xf32> -> vector<8x1xf32>
    %108 = vector.broadcast %107 : vector<8x1xf32> to vector<8x16xf32>
    %109 = arith.mulf %104, %108 : vector<8x16xf32>
    %110 = arith.truncf %109 : vector<8x16xf32> to vector<8x16xbf16>
    %cst_46 = arith.constant dense<0.000000e+00> : vector<8x4xf32>
    %111 = tpu.matmul %110, %92, %cst_46 {dimension_numbers = #tpu.dot_dimension_numbers<[1], [0], [0], [1], [0, 0, 1, 1], [], []>} : vector<8x16xbf16>, vector<16x4xbf16>, vector<8x4xf32> -> vector<8x4xf32>
    %112 = arith.truncf %111 : vector<8x4xf32> to vector<8x4xbf16>
    %113 = vector.extract_strided_slice %6 {offsets = [12, 0], sizes = [4, 32], strides = [1, 1]} : vector<32x32xbf16> to vector<4x32xbf16>
    %cst_47 = arith.constant dense<0.000000e+00> : vector<8x32xf32>
    %114 = tpu.matmul %112, %113, %cst_47 {dimension_numbers = #tpu.dot_dimension_numbers<[1], [0], [0], [1], [0, 0, 1, 1], [], []>} : vector<8x4xbf16>, vector<4x32xbf16>, vector<8x32xf32> -> vector<8x32xf32>
    %115 = arith.addf %89, %114 : vector<8x32xf32>
    %116 = vector.extract_strided_slice %1 {offsets = [0, 16], sizes = [8, 4], strides = [1, 1]} : vector<8x32xbf16> to vector<8x4xbf16>
    %117 = vector.extract_strided_slice %4 {offsets = [0, 16], sizes = [16, 4], strides = [1, 1]} : vector<16x32xbf16> to vector<16x4xbf16>
    %118 = vector.extract_strided_slice %5 {offsets = [0, 16], sizes = [16, 4], strides = [1, 1]} : vector<16x32xbf16> to vector<16x4xbf16>
    %cst_48 = arith.constant dense<0.000000e+00> : vector<8x16xf32>
    %119 = tpu.matmul %116, %117, %cst_48 {dimension_numbers = #tpu.dot_dimension_numbers<[1], [1], [0], [0], [0, 0, 1, 0], [], []>} : vector<8x4xbf16>, vector<16x4xbf16>, vector<8x16xf32> -> vector<8x16xf32>
    %cst_49 = arith.constant 5.000000e-01 : f32
    %120 = vector.broadcast %cst_49 : f32 to vector<8x16xf32>
    %121 = arith.mulf %119, %120 : vector<8x16xf32>
    %c0_50 = arith.constant 0 : index
    %c4 = arith.constant 4 : index
    %c0_51 = arith.constant 0 : index
    %c0_52 = arith.constant 0 : index
    %122 = vector.load %arg3[%c0_50, %c4, %c0_51, %c0_52] : memref<1x8x8x16xbf16, #tpu.memory_space<vmem>>, vector<1x1x8x16xbf16>
    %123 = vector.shape_cast %122 : vector<1x1x8x16xbf16> to vector<8x16xbf16>
    %124 = arith.extf %123 : vector<8x16xbf16> to vector<8x16xf32>
    %125 = arith.addf %121, %124 : vector<8x16xf32>
    %cst_53 = arith.constant dense<0xFF800000> : vector<8xf32>
    %126 = vector.multi_reduction <maximumf>, %125, %cst_53 [1] : vector<8x16xf32> to vector<8xf32>
    %127 = vector.shape_cast %126 : vector<8xf32> to vector<8x1xf32>
    %128 = vector.broadcast %127 : vector<8x1xf32> to vector<8x16xf32>
    %129 = arith.subf %125, %128 : vector<8x16xf32>
    %130 = math.exp %129 : vector<8x16xf32>
    %cst_54 = arith.constant dense<0.000000e+00> : vector<8xf32>
    %131 = vector.multi_reduction <add>, %130, %cst_54 [1] : vector<8x16xf32> to vector<8xf32>
    %132 = vector.shape_cast %131 : vector<8xf32> to vector<8x1xf32>
    %133 = tpu.reciprocal %132 {approx = true} : vector<8x1xf32> -> vector<8x1xf32>
    %134 = vector.broadcast %133 : vector<8x1xf32> to vector<8x16xf32>
    %135 = arith.mulf %130, %134 : vector<8x16xf32>
    %136 = arith.truncf %135 : vector<8x16xf32> to vector<8x16xbf16>
    %cst_55 = arith.constant dense<0.000000e+00> : vector<8x4xf32>
    %137 = tpu.matmul %136, %118, %cst_55 {dimension_numbers = #tpu.dot_dimension_numbers<[1], [0], [0], [1], [0, 0, 1, 1], [], []>} : vector<8x16xbf16>, vector<16x4xbf16>, vector<8x4xf32> -> vector<8x4xf32>
    %138 = arith.truncf %137 : vector<8x4xf32> to vector<8x4xbf16>
    %139 = vector.extract_strided_slice %6 {offsets = [16, 0], sizes = [4, 32], strides = [1, 1]} : vector<32x32xbf16> to vector<4x32xbf16>
    %cst_56 = arith.constant dense<0.000000e+00> : vector<8x32xf32>
    %140 = tpu.matmul %138, %139, %cst_56 {dimension_numbers = #tpu.dot_dimension_numbers<[1], [0], [0], [1], [0, 0, 1, 1], [], []>} : vector<8x4xbf16>, vector<4x32xbf16>, vector<8x32xf32> -> vector<8x32xf32>
    %141 = arith.addf %115, %140 : vector<8x32xf32>
    %142 = vector.extract_strided_slice %1 {offsets = [0, 20], sizes = [8, 4], strides = [1, 1]} : vector<8x32xbf16> to vector<8x4xbf16>
    %143 = vector.extract_strided_slice %4 {offsets = [0, 20], sizes = [16, 4], strides = [1, 1]} : vector<16x32xbf16> to vector<16x4xbf16>
    %144 = vector.extract_strided_slice %5 {offsets = [0, 20], sizes = [16, 4], strides = [1, 1]} : vector<16x32xbf16> to vector<16x4xbf16>
    %cst_57 = arith.constant dense<0.000000e+00> : vector<8x16xf32>
    %145 = tpu.matmul %142, %143, %cst_57 {dimension_numbers = #tpu.dot_dimension_numbers<[1], [1], [0], [0], [0, 0, 1, 0], [], []>} : vector<8x4xbf16>, vector<16x4xbf16>, vector<8x16xf32> -> vector<8x16xf32>
    %cst_58 = arith.constant 5.000000e-01 : f32
    %146 = vector.broadcast %cst_58 : f32 to vector<8x16xf32>
    %147 = arith.mulf %145, %146 : vector<8x16xf32>
    %c0_59 = arith.constant 0 : index
    %c5 = arith.constant 5 : index
    %c0_60 = arith.constant 0 : index
    %c0_61 = arith.constant 0 : index
    %148 = vector.load %arg3[%c0_59, %c5, %c0_60, %c0_61] : memref<1x8x8x16xbf16, #tpu.memory_space<vmem>>, vector<1x1x8x16xbf16>
    %149 = vector.shape_cast %148 : vector<1x1x8x16xbf16> to vector<8x16xbf16>
    %150 = arith.extf %149 : vector<8x16xbf16> to vector<8x16xf32>
    %151 = arith.addf %147, %150 : vector<8x16xf32>
    %cst_62 = arith.constant dense<0xFF800000> : vector<8xf32>
    %152 = vector.multi_reduction <maximumf>, %151, %cst_62 [1] : vector<8x16xf32> to vector<8xf32>
    %153 = vector.shape_cast %152 : vector<8xf32> to vector<8x1xf32>
    %154 = vector.broadcast %153 : vector<8x1xf32> to vector<8x16xf32>
    %155 = arith.subf %151, %154 : vector<8x16xf32>
    %156 = math.exp %155 : vector<8x16xf32>
    %cst_63 = arith.constant dense<0.000000e+00> : vector<8xf32>
    %157 = vector.multi_reduction <add>, %156, %cst_63 [1] : vector<8x16xf32> to vector<8xf32>
    %158 = vector.shape_cast %157 : vector<8xf32> to vector<8x1xf32>
    %159 = tpu.reciprocal %158 {approx = true} : vector<8x1xf32> -> vector<8x1xf32>
    %160 = vector.broadcast %159 : vector<8x1xf32> to vector<8x16xf32>
    %161 = arith.mulf %156, %160 : vector<8x16xf32>
    %162 = arith.truncf %161 : vector<8x16xf32> to vector<8x16xbf16>
    %cst_64 = arith.constant dense<0.000000e+00> : vector<8x4xf32>
    %163 = tpu.matmul %162, %144, %cst_64 {dimension_numbers = #tpu.dot_dimension_numbers<[1], [0], [0], [1], [0, 0, 1, 1], [], []>} : vector<8x16xbf16>, vector<16x4xbf16>, vector<8x4xf32> -> vector<8x4xf32>
    %164 = arith.truncf %163 : vector<8x4xf32> to vector<8x4xbf16>
    %165 = vector.extract_strided_slice %6 {offsets = [20, 0], sizes = [4, 32], strides = [1, 1]} : vector<32x32xbf16> to vector<4x32xbf16>
    %cst_65 = arith.constant dense<0.000000e+00> : vector<8x32xf32>
    %166 = tpu.matmul %164, %165, %cst_65 {dimension_numbers = #tpu.dot_dimension_numbers<[1], [0], [0], [1], [0, 0, 1, 1], [], []>} : vector<8x4xbf16>, vector<4x32xbf16>, vector<8x32xf32> -> vector<8x32xf32>
    %167 = arith.addf %141, %166 : vector<8x32xf32>
    %168 = vector.extract_strided_slice %1 {offsets = [0, 24], sizes = [8, 4], strides = [1, 1]} : vector<8x32xbf16> to vector<8x4xbf16>
    %169 = vector.extract_strided_slice %4 {offsets = [0, 24], sizes = [16, 4], strides = [1, 1]} : vector<16x32xbf16> to vector<16x4xbf16>
    %170 = vector.extract_strided_slice %5 {offsets = [0, 24], sizes = [16, 4], strides = [1, 1]} : vector<16x32xbf16> to vector<16x4xbf16>
    %cst_66 = arith.constant dense<0.000000e+00> : vector<8x16xf32>
    %171 = tpu.matmul %168, %169, %cst_66 {dimension_numbers = #tpu.dot_dimension_numbers<[1], [1], [0], [0], [0, 0, 1, 0], [], []>} : vector<8x4xbf16>, vector<16x4xbf16>, vector<8x16xf32> -> vector<8x16xf32>
    %cst_67 = arith.constant 5.000000e-01 : f32
    %172 = vector.broadcast %cst_67 : f32 to vector<8x16xf32>
    %173 = arith.mulf %171, %172 : vector<8x16xf32>
    %c0_68 = arith.constant 0 : index
    %c6 = arith.constant 6 : index
    %c0_69 = arith.constant 0 : index
    %c0_70 = arith.constant 0 : index
    %174 = vector.load %arg3[%c0_68, %c6, %c0_69, %c0_70] : memref<1x8x8x16xbf16, #tpu.memory_space<vmem>>, vector<1x1x8x16xbf16>
    %175 = vector.shape_cast %174 : vector<1x1x8x16xbf16> to vector<8x16xbf16>
    %176 = arith.extf %175 : vector<8x16xbf16> to vector<8x16xf32>
    %177 = arith.addf %173, %176 : vector<8x16xf32>
    %cst_71 = arith.constant dense<0xFF800000> : vector<8xf32>
    %178 = vector.multi_reduction <maximumf>, %177, %cst_71 [1] : vector<8x16xf32> to vector<8xf32>
    %179 = vector.shape_cast %178 : vector<8xf32> to vector<8x1xf32>
    %180 = vector.broadcast %179 : vector<8x1xf32> to vector<8x16xf32>
    %181 = arith.subf %177, %180 : vector<8x16xf32>
    %182 = math.exp %181 : vector<8x16xf32>
    %cst_72 = arith.constant dense<0.000000e+00> : vector<8xf32>
    %183 = vector.multi_reduction <add>, %182, %cst_72 [1] : vector<8x16xf32> to vector<8xf32>
    %184 = vector.shape_cast %183 : vector<8xf32> to vector<8x1xf32>
    %185 = tpu.reciprocal %184 {approx = true} : vector<8x1xf32> -> vector<8x1xf32>
    %186 = vector.broadcast %185 : vector<8x1xf32> to vector<8x16xf32>
    %187 = arith.mulf %182, %186 : vector<8x16xf32>
    %188 = arith.truncf %187 : vector<8x16xf32> to vector<8x16xbf16>
    %cst_73 = arith.constant dense<0.000000e+00> : vector<8x4xf32>
    %189 = tpu.matmul %188, %170, %cst_73 {dimension_numbers = #tpu.dot_dimension_numbers<[1], [0], [0], [1], [0, 0, 1, 1], [], []>} : vector<8x16xbf16>, vector<16x4xbf16>, vector<8x4xf32> -> vector<8x4xf32>
    %190 = arith.truncf %189 : vector<8x4xf32> to vector<8x4xbf16>
    %191 = vector.extract_strided_slice %6 {offsets = [24, 0], sizes = [4, 32], strides = [1, 1]} : vector<32x32xbf16> to vector<4x32xbf16>
    %cst_74 = arith.constant dense<0.000000e+00> : vector<8x32xf32>
    %192 = tpu.matmul %190, %191, %cst_74 {dimension_numbers = #tpu.dot_dimension_numbers<[1], [0], [0], [1], [0, 0, 1, 1], [], []>} : vector<8x4xbf16>, vector<4x32xbf16>, vector<8x32xf32> -> vector<8x32xf32>
    %193 = arith.addf %167, %192 : vector<8x32xf32>
    %194 = vector.extract_strided_slice %1 {offsets = [0, 28], sizes = [8, 4], strides = [1, 1]} : vector<8x32xbf16> to vector<8x4xbf16>
    %195 = vector.extract_strided_slice %4 {offsets = [0, 28], sizes = [16, 4], strides = [1, 1]} : vector<16x32xbf16> to vector<16x4xbf16>
    %196 = vector.extract_strided_slice %5 {offsets = [0, 28], sizes = [16, 4], strides = [1, 1]} : vector<16x32xbf16> to vector<16x4xbf16>
    %cst_75 = arith.constant dense<0.000000e+00> : vector<8x16xf32>
    %197 = tpu.matmul %194, %195, %cst_75 {dimension_numbers = #tpu.dot_dimension_numbers<[1], [1], [0], [0], [0, 0, 1, 0], [], []>} : vector<8x4xbf16>, vector<16x4xbf16>, vector<8x16xf32> -> vector<8x16xf32>
    %cst_76 = arith.constant 5.000000e-01 : f32
    %198 = vector.broadcast %cst_76 : f32 to vector<8x16xf32>
    %199 = arith.mulf %197, %198 : vector<8x16xf32>
    %c0_77 = arith.constant 0 : index
    %c7 = arith.constant 7 : index
    %c0_78 = arith.constant 0 : index
    %c0_79 = arith.constant 0 : index
    %200 = vector.load %arg3[%c0_77, %c7, %c0_78, %c0_79] : memref<1x8x8x16xbf16, #tpu.memory_space<vmem>>, vector<1x1x8x16xbf16>
    %201 = vector.shape_cast %200 : vector<1x1x8x16xbf16> to vector<8x16xbf16>
    %202 = arith.extf %201 : vector<8x16xbf16> to vector<8x16xf32>
    %203 = arith.addf %199, %202 : vector<8x16xf32>
    %cst_80 = arith.constant dense<0xFF800000> : vector<8xf32>
    %204 = vector.multi_reduction <maximumf>, %203, %cst_80 [1] : vector<8x16xf32> to vector<8xf32>
    %205 = vector.shape_cast %204 : vector<8xf32> to vector<8x1xf32>
    %206 = vector.broadcast %205 : vector<8x1xf32> to vector<8x16xf32>
    %207 = arith.subf %203, %206 : vector<8x16xf32>
    %208 = math.exp %207 : vector<8x16xf32>
    %cst_81 = arith.constant dense<0.000000e+00> : vector<8xf32>
    %209 = vector.multi_reduction <add>, %208, %cst_81 [1] : vector<8x16xf32> to vector<8xf32>
    %210 = vector.shape_cast %209 : vector<8xf32> to vector<8x1xf32>
    %211 = tpu.reciprocal %210 {approx = true} : vector<8x1xf32> -> vector<8x1xf32>
    %212 = vector.broadcast %211 : vector<8x1xf32> to vector<8x16xf32>
    %213 = arith.mulf %208, %212 : vector<8x16xf32>
    %214 = arith.truncf %213 : vector<8x16xf32> to vector<8x16xbf16>
    %cst_82 = arith.constant dense<0.000000e+00> : vector<8x4xf32>
    %215 = tpu.matmul %214, %196, %cst_82 {dimension_numbers = #tpu.dot_dimension_numbers<[1], [0], [0], [1], [0, 0, 1, 1], [], []>} : vector<8x16xbf16>, vector<16x4xbf16>, vector<8x4xf32> -> vector<8x4xf32>
    %216 = arith.truncf %215 : vector<8x4xf32> to vector<8x4xbf16>
    %217 = vector.extract_strided_slice %6 {offsets = [28, 0], sizes = [4, 32], strides = [1, 1]} : vector<32x32xbf16> to vector<4x32xbf16>
    %cst_83 = arith.constant dense<0.000000e+00> : vector<8x32xf32>
    %218 = tpu.matmul %216, %217, %cst_83 {dimension_numbers = #tpu.dot_dimension_numbers<[1], [0], [0], [1], [0, 0, 1, 1], [], []>} : vector<8x4xbf16>, vector<4x32xbf16>, vector<8x32xf32> -> vector<8x32xf32>
    %219 = arith.addf %193, %218 : vector<8x32xf32>
    %c0_84 = arith.constant 0 : index
    %c0_85 = arith.constant 0 : index
    %c0_86 = arith.constant 0 : index
    %220 = vector.load %arg7[%c0_84, %c0_85, %c0_86] : memref<1x8x32xf32, #tpu.memory_space<vmem>>, vector<1x8x32xf32>
    %221 = vector.shape_cast %220 : vector<1x8x32xf32> to vector<8x32xf32>
    %222 = vector.shape_cast %219 : vector<8x32xf32> to vector<1x8x32xf32>
    tpu.vector_store %arg7[%c0_84, %c0_85, %c0_86], %222 {strides = array<i32>} : memref<1x8x32xf32, #tpu.memory_space<vmem>>, vector<1x8x32xf32>,
    return
  }
  func.func @transform_0(%arg0: i32) -> (i32, i32, i32) {
    %c0_i32 = arith.constant 0 : i32
    %c0_i32_0 = arith.constant 0 : i32
    %c0_i32_1 = arith.constant 0 : i32
    return %arg0, %c0_i32, %c0_i32_0 : i32, i32, i32
  }
  func.func @transform_1(%arg0: i32) -> (i32, i32, i32) {
    %c0_i32 = arith.constant 0 : i32
    %c0_i32_0 = arith.constant 0 : i32
    %c0_i32_1 = arith.constant 0 : i32
    return %arg0, %c0_i32, %c0_i32_0 : i32, i32, i32
  }
  func.func @transform_2(%arg0: i32) -> (i32, i32, i32, i32) {
    %c0_i32 = arith.constant 0 : i32
    %c0_i32_0 = arith.constant 0 : i32
    %c0_i32_1 = arith.constant 0 : i32
    %c0_i32_2 = arith.constant 0 : i32
    %c0_i32_3 = arith.constant 0 : i32
    return %c0_i32, %c0_i32_0, %c0_i32_1, %c0_i32_2 : i32, i32, i32, i32
  }
  func.func @transform_3(%arg0: i32) -> (i32, i32) {
    %c0_i32 = arith.constant 0 : i32
    %c0_i32_0 = arith.constant 0 : i32
    %c0_i32_1 = arith.constant 0 : i32
    return %c0_i32, %c0_i32_0 : i32, i32
  }
  func.func @transform_4(%arg0: i32) -> (i32, i32) {
    %c0_i32 = arith.constant 0 : i32
    %c0_i32_0 = arith.constant 0 : i32
    %c0_i32_1 = arith.constant 0 : i32
    return %c0_i32, %c0_i32_0 : i32, i32
  }
  func.func @transform_5(%arg0: i32) -> (i32, i32, i32) {
    %c0_i32 = arith.constant 0 : i32
    %c0_i32_0 = arith.constant 0 : i32
    %c0_i32_1 = arith.constant 0 : i32
    return %arg0, %c0_i32, %c0_i32_0 : i32, i32, i32
  }
  func.func @transform_6(%arg0: i32) -> (i32, i32, i32) {
    %c0_i32 = arith.constant 0 : i32
    %c0_i32_0 = arith.constant 0 : i32
    %c0_i32_1 = arith.constant 0 : i32
    return %arg0, %c0_i32, %c0_i32_0 : i32, i32, i32
  }
}

module attributes {stable_mosaic.version = 11 : i64} {
  func.func @_ln_kernel(%arg0: i32, %arg1: memref<16x32xf32, #tpu.memory_space<vmem>>, %arg2: memref<1x32xf32, #tpu.memory_space<vmem>>, %arg3: memref<1x32xf32, #tpu.memory_space<vmem>>, %arg4: memref<16x32xf32, #tpu.memory_space<vmem>>) attributes {dimension_semantics = [#tpu.dimension_semantics<parallel>], iteration_bounds = array<i64: 1>, scalar_prefetch = 0 : i64, scratch_operands = 0 : i64, tpu.core_type = #tpu.core_type<tc>, window_params = [{transform_indices = @transform_0, window_bounds = array<i64: 16, 32>}, {pipeline_mode = #tpu.pipeline_mode<synchronous>, transform_indices = @transform_1, window_bounds = array<i64: 1, 32>}, {pipeline_mode = #tpu.pipeline_mode<synchronous>, transform_indices = @transform_2, window_bounds = array<i64: 1, 32>}, {transform_indices = @transform_3, window_bounds = array<i64: 16, 32>}]} {
    %c0 = arith.constant 0 : index
    %c0_0 = arith.constant 0 : index
    %0 = vector.load %arg1[%c0, %c0_0] : memref<16x32xf32, #tpu.memory_space<vmem>>, vector<16x32xf32>
    %c0_1 = arith.constant 0 : index
    %c0_2 = arith.constant 0 : index
    %1 = vector.load %arg2[%c0_1, %c0_2] : memref<1x32xf32, #tpu.memory_space<vmem>>, vector<1x32xf32>
    %c0_3 = arith.constant 0 : index
    %c0_4 = arith.constant 0 : index
    %2 = vector.load %arg3[%c0_3, %c0_4] : memref<1x32xf32, #tpu.memory_space<vmem>>, vector<1x32xf32>
    %cst = arith.constant dense<0.000000e+00> : vector<16xf32>
    %3 = vector.multi_reduction <add>, %0, %cst [1] : vector<16x32xf32> to vector<16xf32>
    %4 = vector.shape_cast %3 : vector<16xf32> to vector<16x1xf32>
    %cst_5 = arith.constant 3.200000e+01 : f32
    %5 = vector.broadcast %cst_5 : f32 to vector<16x1xf32>
    %6 = arith.divf %4, %5 : vector<16x1xf32>
    %7 = vector.broadcast %6 : vector<16x1xf32> to vector<16x32xf32>
    %8 = arith.subf %0, %7 : vector<16x32xf32>
    %9 = arith.mulf %8, %8 : vector<16x32xf32>
    %cst_6 = arith.constant dense<0.000000e+00> : vector<16xf32>
    %10 = vector.multi_reduction <add>, %9, %cst_6 [1] : vector<16x32xf32> to vector<16xf32>
    %11 = vector.shape_cast %10 : vector<16xf32> to vector<16x1xf32>
    %cst_7 = arith.constant 3.200000e+01 : f32
    %12 = vector.broadcast %cst_7 : f32 to vector<16x1xf32>
    %13 = arith.divf %11, %12 : vector<16x1xf32>
    %cst_8 = arith.constant 9.99999974E-6 : f32
    %14 = vector.broadcast %cst_8 : f32 to vector<16x1xf32>
    %15 = arith.addf %13, %14 : vector<16x1xf32>
    %16 = math.rsqrt %15 : vector<16x1xf32>
    %17 = vector.broadcast %16 : vector<16x1xf32> to vector<16x32xf32>
    %18 = arith.mulf %8, %17 : vector<16x32xf32>
    %19 = vector.broadcast %1 : vector<1x32xf32> to vector<16x32xf32>
    %20 = arith.mulf %18, %19 : vector<16x32xf32>
    %21 = vector.broadcast %2 : vector<1x32xf32> to vector<16x32xf32>
    %22 = arith.addf %20, %21 : vector<16x32xf32>
    %c0_9 = arith.constant 0 : index
    %c0_10 = arith.constant 0 : index
    %23 = vector.load %arg4[%c0_9, %c0_10] : memref<16x32xf32, #tpu.memory_space<vmem>>, vector<16x32xf32>
    tpu.vector_store %arg4[%c0_9, %c0_10], %22 {strides = array<i32>} : memref<16x32xf32, #tpu.memory_space<vmem>>, vector<16x32xf32>,
    return
  }
  func.func @transform_0(%arg0: i32) -> (i32, i32) {
    %c0_i32 = arith.constant 0 : i32
    %c0_i32_0 = arith.constant 0 : i32
    return %arg0, %c0_i32 : i32, i32
  }
  func.func @transform_1(%arg0: i32) -> (i32, i32) {
    %c0_i32 = arith.constant 0 : i32
    %c0_i32_0 = arith.constant 0 : i32
    %c0_i32_1 = arith.constant 0 : i32
    return %c0_i32, %c0_i32_0 : i32, i32
  }
  func.func @transform_2(%arg0: i32) -> (i32, i32) {
    %c0_i32 = arith.constant 0 : i32
    %c0_i32_0 = arith.constant 0 : i32
    %c0_i32_1 = arith.constant 0 : i32
    return %c0_i32, %c0_i32_0 : i32, i32
  }
  func.func @transform_3(%arg0: i32) -> (i32, i32) {
    %c0_i32 = arith.constant 0 : i32
    %c0_i32_0 = arith.constant 0 : i32
    return %arg0, %c0_i32 : i32, i32
  }
}

module attributes {stable_mosaic.version = 11 : i64} {
  func.func @_matmul_bias_res_kernel(%arg0: i32, %arg1: i32, %arg2: i32, %arg3: memref<16x128xbf16, #tpu.memory_space<vmem>>, %arg4: memref<128x32xbf16, #tpu.memory_space<vmem>>, %arg5: memref<1x32xf32, #tpu.memory_space<vmem>>, %arg6: memref<16x32xf32, #tpu.memory_space<vmem>>, %arg7: memref<16x32xf32, #tpu.memory_space<vmem>>, %arg8: memref<16x32xf32, #tpu.memory_space<vmem>>) attributes {dimension_semantics = [#tpu.dimension_semantics<parallel>, #tpu.dimension_semantics<parallel>, #tpu.dimension_semantics<arbitrary>], iteration_bounds = array<i64: 1, 1, 1>, scalar_prefetch = 0 : i64, scratch_operands = 1 : i64, tpu.core_type = #tpu.core_type<tc>, window_params = [{transform_indices = @transform_0, window_bounds = array<i64: 16, 128>}, {transform_indices = @transform_1, window_bounds = array<i64: 128, 32>}, {transform_indices = @transform_2, window_bounds = array<i64: 1, 32>}, {transform_indices = @transform_3, window_bounds = array<i64: 16, 32>}, {transform_indices = @transform_4, window_bounds = array<i64: 16, 32>}]} {
    %c0_i32 = arith.constant 0 : i32
    %0 = arith.cmpi eq, %arg2, %c0_i32 : i32
    %1 = arith.extui %0 : i1 to i32
    %c0_i32_0 = arith.constant 0 : i32
    %2 = arith.cmpi ne, %1, %c0_i32_0 : i32
    scf.if %2 {
      %cst_10 = arith.constant 0.000000e+00 : f32
      %12 = vector.broadcast %cst_10 : f32 to vector<16x32xf32>
      %c0_11 = arith.constant 0 : index
      %c0_12 = arith.constant 0 : index
      %13 = vector.load %arg8[%c0_11, %c0_12] : memref<16x32xf32, #tpu.memory_space<vmem>>, vector<16x32xf32>
      tpu.vector_store %arg8[%c0_11, %c0_12], %12 {strides = array<i32>} : memref<16x32xf32, #tpu.memory_space<vmem>>, vector<16x32xf32>,
    } else {
    }
    %c0 = arith.constant 0 : index
    %c0_1 = arith.constant 0 : index
    %3 = vector.load %arg8[%c0, %c0_1] : memref<16x32xf32, #tpu.memory_space<vmem>>, vector<16x32xf32>
    %c0_2 = arith.constant 0 : index
    %c0_3 = arith.constant 0 : index
    %4 = vector.load %arg3[%c0_2, %c0_3] : memref<16x128xbf16, #tpu.memory_space<vmem>>, vector<16x128xbf16>
    %c0_4 = arith.constant 0 : index
    %c0_5 = arith.constant 0 : index
    %5 = vector.load %arg4[%c0_4, %c0_5] : memref<128x32xbf16, #tpu.memory_space<vmem>>, vector<128x32xbf16>
    %cst = arith.constant dense<0.000000e+00> : vector<16x32xf32>
    %6 = tpu.matmul %4, %5, %cst {dimension_numbers = #tpu.dot_dimension_numbers<[1], [0], [0], [1], [0, 0, 1, 1], [], []>} : vector<16x128xbf16>, vector<128x32xbf16>, vector<16x32xf32> -> vector<16x32xf32>
    %7 = arith.addf %3, %6 : vector<16x32xf32>
    %c0_6 = arith.constant 0 : index
    %c0_7 = arith.constant 0 : index
    %8 = vector.load %arg8[%c0_6, %c0_7] : memref<16x32xf32, #tpu.memory_space<vmem>>, vector<16x32xf32>
    tpu.vector_store %arg8[%c0_6, %c0_7], %7 {strides = array<i32>} : memref<16x32xf32, #tpu.memory_space<vmem>>, vector<16x32xf32>,
    %c0_i32_8 = arith.constant 0 : i32
    %9 = arith.cmpi eq, %arg2, %c0_i32_8 : i32
    %10 = arith.extui %9 : i1 to i32
    %c0_i32_9 = arith.constant 0 : i32
    %11 = arith.cmpi ne, %10, %c0_i32_9 : i32
    scf.if %11 {
      %c0_10 = arith.constant 0 : index
      %c0_11 = arith.constant 0 : index
      %12 = vector.load %arg8[%c0_10, %c0_11] : memref<16x32xf32, #tpu.memory_space<vmem>>, vector<16x32xf32>
      %c0_12 = arith.constant 0 : index
      %c0_13 = arith.constant 0 : index
      %13 = vector.load %arg5[%c0_12, %c0_13] : memref<1x32xf32, #tpu.memory_space<vmem>>, vector<1x32xf32>
      %14 = vector.broadcast %13 : vector<1x32xf32> to vector<16x32xf32>
      %15 = arith.addf %12, %14 : vector<16x32xf32>
      %c0_14 = arith.constant 0 : index
      %c0_15 = arith.constant 0 : index
      %16 = vector.load %arg6[%c0_14, %c0_15] : memref<16x32xf32, #tpu.memory_space<vmem>>, vector<16x32xf32>
      %17 = arith.addf %15, %16 : vector<16x32xf32>
      %c0_16 = arith.constant 0 : index
      %c0_17 = arith.constant 0 : index
      %18 = vector.load %arg7[%c0_16, %c0_17] : memref<16x32xf32, #tpu.memory_space<vmem>>, vector<16x32xf32>
      tpu.vector_store %arg7[%c0_16, %c0_17], %17 {strides = array<i32>} : memref<16x32xf32, #tpu.memory_space<vmem>>, vector<16x32xf32>,
    } else {
    }
    return
  }
  func.func @transform_0(%arg0: i32, %arg1: i32, %arg2: i32) -> (i32, i32) {
    %c0_i32 = arith.constant 0 : i32
    return %arg0, %arg2 : i32, i32
  }
  func.func @transform_1(%arg0: i32, %arg1: i32, %arg2: i32) -> (i32, i32) {
    %c0_i32 = arith.constant 0 : i32
    return %arg2, %arg1 : i32, i32
  }
  func.func @transform_2(%arg0: i32, %arg1: i32, %arg2: i32) -> (i32, i32) {
    %c0_i32 = arith.constant 0 : i32
    %c0_i32_0 = arith.constant 0 : i32
    return %c0_i32, %arg1 : i32, i32
  }
  func.func @transform_3(%arg0: i32, %arg1: i32, %arg2: i32) -> (i32, i32) {
    %c0_i32 = arith.constant 0 : i32
    return %arg0, %arg1 : i32, i32
  }
  func.func @transform_4(%arg0: i32, %arg1: i32, %arg2: i32) -> (i32, i32) {
    %c0_i32 = arith.constant 0 : i32
    return %arg0, %arg1 : i32, i32
  }
}

</mosaic_0001>

<bundles_post_ra>
// kernel: base_transformer_cross_attn.17
= control target key start
LH: loop header
LB: loop body
LE: loop exit
PB: predicated region body
PF: predicated region fallthrough
CT: control target
= control target key end

     0   :  { %vm26_vm0 = vcmask 261120   ;;  %v168_v4 = vmov 32.0   ;;  %vm90_vm6 = vcmask 257024   ;;  %s227_s0 = inlined_call_operand.vmem [shape: f32[16,32], index: 0, kind: input, shape index: {}]   ;;  %s228_s1 = inlined_call_operand.vmem [shape: f32[1,32], index: 1, kind: input, shape index: {}]   ;;  %s229_s2 = inlined_call_operand.vmem [shape: f32[1,32], index: 2, kind: input, shape index: {}]   ;;  %s230_s3 = inlined_call_operand.vmem [shape: bf16[32,32], index: 3, kind: input, shape index: {}]   ;;  %s231_s4 = inlined_call_operand.vmem [shape: bf16[16,32], index: 4, kind: output, shape index: {}]  }
   0x1   :  { %v22_v0 = vld [vmem:[%s227_s0] sm:$0xff]  ;;  %v23_v2 = vld [vmem:[%s227_s0 + $0x8] sm:$0xff]  ;;  %162 = vrcp.f32 %v168_v4 }
   0x2   :  { %v27_v1 = vsel %vm26_vm0, %v22_v0, 0.0  ;;  %v30_v3 = vsel %vm26_vm0, %v23_v2, 0.0  ;;  %v158_v24 = vld [vmem:[%s230_s3 + $0x8] sm:$0xff]  ;;  %v157_v27 = vld [vmem:[%s230_s3] sm:$0xff] }
   0x3   :  { %28 = vadd.xlane.f32.xlu0 %v27_v1  ;;  %126 = vmatpush.bf16.msra.mxu0 %v158_v24  ;;  %v160_v37 = vld [vmem:[%s228_s1] ss:$0 sm:$0xff] }
   0x4   :  { %v161_v40 = vld [vmem:[%s229_s2] ss:$0 sm:$0xff] }
   0x7   :  { %v163_v5 = vpop.eup %162  ;;  %127 = vmatpush.bf16.msra.mxu0 %v157_v27 }
   0x8   :  { %v34_v6 = vmul.f32 32.0, %v163_v5  ;;  %vm38_vm1 = vweird.f32 %v163_v5 }
   0xa   :  { %v35_v7 = vsub.f32 1.0, %v34_v6 }
   0xb   :  { %31 = vadd.xlane.f32.xlu0 %v30_v3 }
   0xc   :  { %v36_v8 = vmul.f32 %v163_v5, %v35_v7 }
   0xe   :  { %v37_v9 = vadd.f32 %v163_v5, %v36_v8 }
  0x10   :  { %v39_v10 = vsel %vm38_vm1, %v163_v5, %v37_v9 }
  0x76   :  { %v29_v11 = vpop.xlane.xlu0 %28 }
  0x77   :  { %v40_v12 = vmul.f32 %v39_v10, %v29_v11 }
  0x79   :  { %v42_v13 = vsub.f32 %v22_v0, %v40_v12 }
  0x7b   :  { %v44_v14 = vmul.f32 %v42_v13, %v42_v13 }
  0x7d   :  { %v46_v15 = vsel %vm26_vm0, %v44_v14, 0.0 }
  0x7e   :  { %47 = vadd.xlane.f32.xlu1 %v46_v15  ;;  %v32_v16 = vpop.xlane.xlu0 %31 }
  0x7f   :  { %v41_v17 = vmul.f32 %v39_v10, %v32_v16 }
  0x81   :  { %v43_v18 = vsub.f32 %v23_v2, %v41_v17 }
  0x83   :  { %v45_v19 = vmul.f32 %v43_v18, %v43_v18 }
  0x85   :  { %v49_v20 = vsel %vm26_vm0, %v45_v19, 0.0 }
  0x86   :  { %50 = vadd.xlane.f32.xlu1 %v49_v20 }
  0xf1   :  { %v48_v21 = vpop.xlane.xlu1 %47 }
  0xf2   :  { %v52_v22 = vmul.f32 %v48_v21, %v39_v10 }
  0xf4   :  { %v54_v23 = vadd.f32 1e-05, %v52_v22 }
  0xf6   :  { %164 = vrsqrt.f32 %v54_v23  ;;  %vm62_vm3 = vweird.f32 %v54_v23 }
  0xf9   :  { %v51_v25 = vpop.xlane.xlu1 %50 }
  0xfa   :  { %v53_v26 = vmul.f32 %v51_v25, %v39_v10 }
  0xfc   :  { %v165_v28 = vpop.eup %164  ;;  %v55_v29 = vadd.f32 1e-05, %v53_v26 }
  0xfd   :  { %v57_v30 = vmul.f32 %v165_v28, %v54_v23  ;;  %vm63_vm2 = vweird.f32 %v165_v28 }
  0xfe   :  { %166 = vrsqrt.f32 %v55_v29  ;;  %vm64_vm4 = vmor %vm62_vm3, %vm63_vm2  ;;  %vm72_vm7 = vweird.f32 %v55_v29 }
  0xff   :  { %v58_v31 = vmul.f32 %v165_v28, %v57_v30 }
 0x101   :  { %v59_v32 = vmul.f32 0.5, %v58_v31 }
 0x103   :  { %v60_v33 = vsub.f32 1.5, %v59_v32 }
 0x104   :  { %v167_v34 = vpop.eup %166 }
 0x105   :  { %v61_v35 = vmul.f32 %v165_v28, %v60_v33  ;;  %v67_v36 = vmul.f32 %v167_v34, %v55_v29  ;;  %vm73_vm5 = vweird.f32 %v167_v34 }
 0x106   :  { %vm74_vm8 = vmor %vm72_vm7, %vm73_vm5 }
 0x107   :  { %v65_v38 = vsel %vm64_vm4, %v165_v28, %v61_v35  ;;  %v68_v39 = vmul.f32 %v167_v34, %v67_v36 }
 0x108   :  { %v76_v41 = vmul.f32 %v65_v38, %v42_v13 }
 0x109   :  { %v69_v42 = vmul.f32 0.5, %v68_v39 }
 0x10a   :  { %v81_v43 = vmul.f32 %v160_v37, %v76_v41 }
 0x10b   :  { %v70_v44 = vsub.f32 1.5, %v69_v42 }
 0x10c   :  { %v86_v45 = vadd.f32 %v161_v40, %v81_v43 }
 0x10d   :  { %v71_v46 = vmul.f32 %v167_v34, %v70_v44 }
 0x10e   :  { %v88_v47 = vpack.c.bf16 %v86_v45, %v86_v45 }
 0x10f   :  { %v75_v48 = vsel %vm74_vm8, %v167_v34, %v71_v46 }
 0x110   :  { %91 = vst.msk [vmem:[#allocation2] sm:$0xf] %vm90_vm6, %v88_v47  ;;  %v77_v49 = vmul.f32 %v75_v48, %v43_v18 }
 0x112   :  { %v82_v50 = vmul.f32 %v160_v37, %v77_v49 }
 0x114   :  { %v87_v51 = vadd.f32 %v161_v40, %v82_v50 }
 0x116   :  { %v89_v52 = vpack.c.bf16 %v87_v51, %v87_v51 }
 0x118   :  { %92 = vst.msk [vmem:[#allocation2 + $0x4] sm:$0xf] %vm90_vm6, %v89_v52 }
 0x11f   :  { %v156_v53 = vld [vmem:[#allocation2] sm:$0xff] }
 0x120   :  { %155 = vmatmul.msk.bf16.vlgmr.msra.gmra.mxu0 %vm26_vm0, %v156_v53 }
 0x19d   :  { %v129_v54 = vpop.f32.mrf.mxu0 }
 0x19e   :  { %v134_v55 = vpack.c.bf16 %v129_v54, %v129_v54 }
 0x1a0   :  { %137 = vst.msk [vmem:[%s231_s4] sm:$0xf] %vm90_vm6, %v134_v55 }
 0x1a5   :  { %v131_v56 = vpop.f32.mrf.mxu0 }
 0x1a6   :  { %v135_v57 = vpack.c.bf16 %v131_v56, %v131_v56 }
 0x1a8   :  { %138 = vst.msk [vmem:[%s231_s4 + $0x4] sm:$0xf] %vm90_vm6, %v135_v57 }

// kernel: base_transformer_cross_attn.15
= control target key start
LH: loop header
LB: loop body
LE: loop exit
PB: predicated region body
PF: predicated region fallthrough
CT: control target
= control target key end

     0   :  { %vm26_vm0 = vcmask 261120   ;;  %v168_v4 = vmov 32.0   ;;  %vm90_vm6 = vcmask 257024   ;;  %vm136_vm9 = vcmask 781312   ;;  %s223_s0 = inlined_call_operand.vmem [shape: f32[16,32], index: 0, kind: input, shape index: {}]   ;;  %s224_s1 = inlined_call_operand.vmem [shape: f32[1,32], index: 1, kind: input, shape index: {}]   ;;  %s225_s2 = inlined_call_operand.vmem [shape: f32[1,32], index: 2, kind: input, shape index: {}]   ;;  %s226_s3 = inlined_call_operand.vmem [shape: bf16[32,96], index: 3, kind: input, shape index: {}]   ;;  %s227_s4 = inlined_call_operand.vmem [shape: bf16[16,96], index: 4, kind: output, shape index: {}]  }
   0x1   :  { %v22_v0 = vld [vmem:[%s223_s0] sm:$0xff]  ;;  %v23_v2 = vld [vmem:[%s223_s0 + $0x8] sm:$0xff]  ;;  %162 = vrcp.f32 %v168_v4 }
   0x2   :  { %v27_v1 = vsel %vm26_vm0, %v22_v0, 0.0  ;;  %v30_v3 = vsel %vm26_vm0, %v23_v2, 0.0  ;;  %v158_v24 = vld [vmem:[%s226_s3 + $0x8] sm:$0xff]  ;;  %v157_v27 = vld [vmem:[%s226_s3] sm:$0xff] }
   0x3   :  { %28 = vadd.xlane.f32.xlu0 %v27_v1  ;;  %126 = vmatpush.bf16.msra.mxu0 %v158_v24  ;;  %v160_v37 = vld [vmem:[%s224_s1] ss:$0 sm:$0xff] }
   0x4   :  { %v161_v40 = vld [vmem:[%s225_s2] ss:$0 sm:$0xff] }
   0x7   :  { %v163_v5 = vpop.eup %162  ;;  %127 = vmatpush.bf16.msra.mxu0 %v157_v27 }
   0x8   :  { %v34_v6 = vmul.f32 32.0, %v163_v5  ;;  %vm38_vm1 = vweird.f32 %v163_v5 }
   0xa   :  { %v35_v7 = vsub.f32 1.0, %v34_v6 }
   0xb   :  { %31 = vadd.xlane.f32.xlu0 %v30_v3 }
   0xc   :  { %v36_v8 = vmul.f32 %v163_v5, %v35_v7 }
   0xe   :  { %v37_v9 = vadd.f32 %v163_v5, %v36_v8 }
  0x10   :  { %v39_v10 = vsel %vm38_vm1, %v163_v5, %v37_v9 }
  0x76   :  { %v29_v11 = vpop.xlane.xlu0 %28 }
  0x77   :  { %v40_v12 = vmul.f32 %v39_v10, %v29_v11 }
  0x79   :  { %v42_v13 = vsub.f32 %v22_v0, %v40_v12 }
  0x7b   :  { %v44_v14 = vmul.f32 %v42_v13, %v42_v13 }
  0x7d   :  { %v46_v15 = vsel %vm26_vm0, %v44_v14, 0.0 }
  0x7e   :  { %47 = vadd.xlane.f32.xlu1 %v46_v15  ;;  %v32_v16 = vpop.xlane.xlu0 %31 }
  0x7f   :  { %v41_v17 = vmul.f32 %v39_v10, %v32_v16 }
  0x81   :  { %v43_v18 = vsub.f32 %v23_v2, %v41_v17 }
  0x83   :  { %v45_v19 = vmul.f32 %v43_v18, %v43_v18 }
  0x85   :  { %v49_v20 = vsel %vm26_vm0, %v45_v19, 0.0 }
  0x86   :  { %50 = vadd.xlane.f32.xlu1 %v49_v20 }
  0xf1   :  { %v48_v21 = vpop.xlane.xlu1 %47 }
  0xf2   :  { %v52_v22 = vmul.f32 %v48_v21, %v39_v10 }
  0xf4   :  { %v54_v23 = vadd.f32 1e-05, %v52_v22 }
  0xf6   :  { %164 = vrsqrt.f32 %v54_v23  ;;  %vm62_vm3 = vweird.f32 %v54_v23 }
  0xf9   :  { %v51_v25 = vpop.xlane.xlu1 %50 }
  0xfa   :  { %v53_v26 = vmul.f32 %v51_v25, %v39_v10 }
  0xfc   :  { %v165_v28 = vpop.eup %164  ;;  %v55_v29 = vadd.f32 1e-05, %v53_v26 }
  0xfd   :  { %v57_v30 = vmul.f32 %v165_v28, %v54_v23  ;;  %vm63_vm2 = vweird.f32 %v165_v28 }
  0xfe   :  { %166 = vrsqrt.f32 %v55_v29  ;;  %vm64_vm4 = vmor %vm62_vm3, %vm63_vm2  ;;  %vm72_vm7 = vweird.f32 %v55_v29 }
  0xff   :  { %v58_v31 = vmul.f32 %v165_v28, %v57_v30 }
 0x101   :  { %v59_v32 = vmul.f32 0.5, %v58_v31 }
 0x103   :  { %v60_v33 = vsub.f32 1.5, %v59_v32 }
 0x104   :  { %v167_v34 = vpop.eup %166 }
 0x105   :  { %v61_v35 = vmul.f32 %v165_v28, %v60_v33  ;;  %v67_v36 = vmul.f32 %v167_v34, %v55_v29  ;;  %vm73_vm5 = vweird.f32 %v167_v34 }
 0x106   :  { %vm74_vm8 = vmor %vm72_vm7, %vm73_vm5 }
 0x107   :  { %v65_v38 = vsel %vm64_vm4, %v165_v28, %v61_v35  ;;  %v68_v39 = vmul.f32 %v167_v34, %v67_v36 }
 0x108   :  { %v76_v41 = vmul.f32 %v65_v38, %v42_v13 }
 0x109   :  { %v69_v42 = vmul.f32 0.5, %v68_v39 }
 0x10a   :  { %v81_v43 = vmul.f32 %v160_v37, %v76_v41 }
 0x10b   :  { %v70_v44 = vsub.f32 1.5, %v69_v42 }
 0x10c   :  { %v86_v45 = vadd.f32 %v161_v40, %v81_v43 }
 0x10d   :  { %v71_v46 = vmul.f32 %v167_v34, %v70_v44 }
 0x10e   :  { %v88_v47 = vpack.c.bf16 %v86_v45, %v86_v45 }
 0x10f   :  { %v75_v48 = vsel %vm74_vm8, %v167_v34, %v71_v46 }
 0x110   :  { %91 = vst.msk [vmem:[#allocation2] sm:$0xf] %vm90_vm6, %v88_v47  ;;  %v77_v49 = vmul.f32 %v75_v48, %v43_v18 }
 0x112   :  { %v82_v50 = vmul.f32 %v160_v37, %v77_v49 }
 0x114   :  { %v87_v51 = vadd.f32 %v161_v40, %v82_v50 }
 0x116   :  { %v89_v52 = vpack.c.bf16 %v87_v51, %v87_v51 }
 0x118   :  { %92 = vst.msk [vmem:[#allocation2 + $0x4] sm:$0xf] %vm90_vm6, %v89_v52 }
 0x11f   :  { %v156_v53 = vld [vmem:[#allocation2] sm:$0xff] }
 0x120   :  { %155 = vmatmul.msk.bf16.vlgmr.msra.gmra.mxu0 %vm26_vm0, %v156_v53 }
 0x19d   :  { %v129_v54 = vpop.f32.mrf.mxu0 }
 0x19e   :  { %v134_v55 = vpack.c.bf16 %v129_v54, %v129_v54 }
 0x1a0   :  { %137 = vst.msk [vmem:[%s227_s4] sm:$0xf] %vm136_vm9, %v134_v55 }
 0x1a5   :  { %v131_v56 = vpop.f32.mrf.mxu0 }
 0x1a6   :  { %v135_v57 = vpack.c.bf16 %v131_v56, %v131_v56 }
 0x1a8   :  { %138 = vst.msk [vmem:[%s227_s4 + $0x4] sm:$0xf] %vm136_vm9, %v135_v57 }

// kernel: base_transformer_cross_attn.16
= control target key start
LH: loop header
LB: loop body
LE: loop exit
PB: predicated region body
PF: predicated region fallthrough
CT: control target
= control target key end

     0   :  { %s1158_s18 = smov 0   ;;  %s1318_s0 = inlined_call_operand.vmem [shape: bf16[2,8,96], index: 0, kind: input, shape index: {}]   ;;  %s1319_s1 = inlined_call_operand.vmem [shape: bf16[1,8,8,8], index: 1, kind: input, shape index: {}]   ;;  %s1320_s2 = inlined_call_operand.vmem [shape: bf16[32,32], index: 2, kind: input, shape index: {}]   ;;  %s1321_s3 = inlined_call_operand.vmem [shape: f32[1,32], index: 3, kind: input, shape index: {}]   ;;  %s1322_s4 = inlined_call_operand.vmem [shape: f32[2,8,32], index: 4, kind: input, shape index: {}]   ;;  %s1323_s5 = inlined_call_operand.vmem [shape: f32[2,8,32], index: 5, kind: output, shape index: {}]  }
   0x1 LB: > { %s992_s19 = sadd.s32 4294967295, %s1103_s18   ;;  %p996_p0 = scmp.ge.s32.totalorder %s1103_s18, 1  ;;  %s1103_s18 = sphi %s1158_s18, %s15_s18  }
   0x2   : > { %p195_p1 = scmp.lt.s32.totalorder %s1103_s18, 3 }
   0x4   : > { %p196_p2 = pnand %p996_p0, %p195_p1 }
   0x5   : > { %p225_p3 = scmp.lt.s32.totalorder (!%p196_p2), %s992_s19, 1  ;;  %s1105_s24 = smov (!%p196_p2), 96  }
   0x6   : > { %199 = sbr.rel (%p196_p2) target bundleno = 2449 (0x991), region = 40  ;;  %s1106_s25 = smov (!%p196_p2), 124  }
   0x7   : > { %s1107_s26 = smov (!%p196_p2), 92   ;;  %s1108_s27 = smov (!%p196_p2), 64  }
   0x8   : > { %s1109_s28 = smov (!%p196_p2), 60   ;;  %s1110_s29 = smov (!%p196_p2), 88  }
   0x9   : > { %s1111_s30 = smov (!%p196_p2), 116   ;;  %s1112_s6 = smov (!%p196_p2), 120  }
   0xa   : > { %s1113_s9 = smov (!%p196_p2), 84   ;;  %s1114_s22 = smov (!%p196_p2), 52  }
   0xb   : > { %s1325_s19 = smov (!%p225_p3, %s992_s19), 1  ;;  %vm254_vm0 = vcmask 31744   ;;  %v275_v8 = vld [vmem:[%s1319_s1] sm:$0xff]   ;;  %vm278_vm1 = vcmask 64512   ;;  %vm296_vm2 = vcmask 1043456   ;;  %v1008_v45 = vld [vmem:[%s1319_s1 + $0x8] sm:$0xff]  }
   0xc   : > { %s997_s20 = sshll.u32 %s1325_s19, 2  ;;  %v276_v9 = vunpack.c.l.bf16 %v275_v8  ;;  %v361_v15 = vunpack.c.h.bf16 %v275_v8  ;;  %v447_v47 = vunpack.c.l.bf16 %v1008_v45  ;;  %v239_v54 = vld [vmem:[%s1320_s2] sm:$0xf]  ;;  %vm317_vm3 = vcmask 1041408   ;;  %s998_s14 = sshll.u32 %s1325_s19, 3 }
   0xd   : > { %s228_s23 = scalar_lea.vmem %s1318_s0, %s997_s20  ;;  %v319_v55 = vsel %vm317_vm3, %v239_v54, 0  ;;  %v398_v56 = vunpack.c.l.b16 %v239_v54  ;;  %s232_s17 = scalar_lea.vmem %s1322_s4, %s998_s14  ;;  %vm925_vm4 = vcmask 261120  }
   0xe   : > { %v238_v0 = vld [vmem:[%s228_s23] sm:$0xf]  ;;  %328 = vmatpush.bf16.msra.mxu2 %v319_v55  ;;  %s1115_s23 = smov 80   ;;  %s1121_s10 = smov 100  }
   0xf   : > { %v250_v1 = vunpack.c.l.b16 %v238_v0  ;;  %v399_v57 = vpack.c.b16 %v398_v56, %v398_v56  ;;  %s1122_s11 = smov 68   ;;  %s1123_s12 = smov 44  }
  0x10   : > { %s1124_s13 = smov 104   ;;  %s1125_s15 = smov 72  }
  0x11   : > { %v1172_v2 = vpack.c.b16 %v250_v1, %v250_v1  ;;  %v400_v58 = vrot.slane %v399_v57, 2 }
  0x13   : > { %252 = vrot.lane.b32.xlu0 %v1172_v2, %s1105_s24  ;;  %335 = vrot.lane.b32.xlu1 %v1172_v2, %s1106_s25  ;;  %v405_v59 = vsel %vm317_vm3, %v400_v58, 0  ;;  %s1116_s24 = smov 56   ;;  %s1117_s25 = smov 76  }
  0x14   : > { %414 = vmatpush.bf16.msrb.mxu2 %v405_v59 }
  0x1b   : > { %337 = vrot.lane.b32.xlu0 %v1172_v2, %s1107_s26  ;;  %s1118_s26 = smov 108  }
  0x23   : > { %291 = vrot.lane.b32.xlu0 %v1172_v2, %s1108_s27  ;;  %s1119_s27 = smov 112  }
  0x2b   : > { %375 = vrot.lane.b32.xlu0 %v1172_v2, %s1109_s28  ;;  %s236_s28 = scalar_lea.vmem %s1323_s5, %s998_s14 }
  0x33   : > { %423 = vrot.lane.b32.xlu0 %v1172_v2, %s1110_s29 }
  0x3b   : > { %503 = vrot.lane.b32.xlu0 %v1172_v2, %s1111_s30 }
  0x43   : > { %421 = vrot.lane.b32.xlu0 %v1172_v2, %s1112_s6 }
  0x85   : > { %v253_v3 = vpop.permute.xlu0 %252  ;;  %v336_v7 = vpop.permute.xlu1 %335 }
  0x86   : > { %v259_v4 = vsel %vm254_vm0, %v253_v3, 0 }
  0x87   : > { %268 = vmatpush.bf16.xpose.msra.mxu0 %v259_v4 }
  0x8d   : > { %v338_v5 = vpop.permute.xlu0 %337 }
  0x8e   : > { %1000 = vmatmul.msk.bf16.vlgmr.msra.gmra.mxu0 %vm254_vm0, %v238_v0  ;;  %v343_v6 = vsel %vm254_vm0, %v338_v5, 0 }
  0x8f   : > { %352 = vmatpush.bf16.xpose.msra.mxu3 %v343_v6 }
  0x95   : > { %v292_v21 = vpop.permute.xlu0 %291 }
  0x96   : > { %1003 = vmatmul.msk.bf16.vlgmr.msra.gmra.mxu3 %vm254_vm0, %v336_v7  ;;  %v298_v37 = vsel %vm296_vm2, %v292_v21, 0 }
  0x97   : > { %307 = vmatpush.bf16.msra.mxu1 %v298_v37 }
  0x9d   : > { %v376_v25 = vpop.permute.xlu0 %375 }
  0x9e   : > { %v381_v38 = vsel %vm296_vm2, %v376_v25, 0 }
  0x9f   : > { %390 = vmatpush.bf16.msrb.mxu1 %v381_v38 }
  0xa5   : > { %v424_v27 = vpop.permute.xlu0 %423 }
  0xa6   : > { %v429_v29 = vsel %vm254_vm0, %v424_v27, 0 }
  0xa7   : > { %438 = vmatpush.bf16.xpose.msrb.mxu0 %v429_v29 }
  0xad   : > { %v504_v33 = vpop.permute.xlu0 %503 }
  0xb5   : > { %v422_v36 = vpop.permute.xlu0 %421 }
  0xb6   : > { %1007 = vmatmul.msk.bf16.vlgmr.msrb.gmra.mxu0 %vm254_vm0, %v422_v36 }
 0x10b   : > { %v270_v10 = vpop.f32.mrf.mxu0 }
 0x10c   : > { %v274_v11 = vmul.f32 0.5, %v270_v10 }
 0x10e   : > { %v277_v12 = vadd.f32 %v276_v9, %v274_v11  ;;  %v1064_v11 = vld [vmem:[%s1321_s3] ss:$0 sm:$0xff] }
 0x110   : > { %v279_v13 = vsel %vm278_vm1, %v277_v12, -inf }
 0x111   : > { %280 = vmax.xlane.f32.xlu1 %v279_v13 }
 0x113   : > { %v272_v14 = vpop.f32.mrf.mxu0 }
 0x119   : > { %v354_v16 = vpop.f32.mrf.mxu3 }
 0x11a   : > { %v358_v17 = vmul.f32 0.5, %v354_v16 }
 0x11c   : > { %v362_v18 = vadd.f32 %v361_v15, %v358_v17 }
 0x11e   : > { %v363_v19 = vsel %vm278_vm1, %v362_v18, -inf }
 0x11f   : > { %364 = vmax.xlane.f32.xlu2 %v363_v19  ;;  %v529_v19 = vunpack.c.h.bf16 %v1008_v45 }
 0x121   : > { %v356_v20 = vpop.f32.mrf.mxu3 }
 0x133   : > { %v440_v48 = vpop.f32.mrf.mxu0 }
 0x134   : > { %v444_v50 = vmul.f32 0.5, %v440_v48 }
 0x136   : > { %v448_v51 = vadd.f32 %v447_v47, %v444_v50 }
 0x138   : > { %v449_v52 = vsel %vm278_vm1, %v448_v51, -inf }
 0x13b   : > { %v442_v53 = vpop.f32.mrf.mxu0 }
 0x184   : > { %v281_v22 = vpop.xlane.xlu1 %280 }
 0x185   : > { %v282_v23 = vsub.f32 %v277_v12, %v281_v22  ;;  %v243_v12 = vld [vmem:[%s232_s17] sm:$0xff] }
 0x186   : > { %v248_v14 = vadd.f32 %v1064_v11, %v243_v12 }
 0x187   : > { %v283_v24 = vmul.f32 1.442695, %v282_v23 }
 0x189   : > { %1065 = vpow2.f32 %v283_v24 }
 0x18f   : > { %v1066_v26 = vpop.eup %1065 }
 0x190   : > { %v285_v28 = vsel %vm278_vm1, %v1066_v26, 0.0 }
 0x191   : > { %286 = vadd.xlane.f32.xlu2 %v285_v28 }
 0x192   : > { %v365_v30 = vpop.xlane.xlu2 %364 }
 0x193   : > { %v366_v31 = vsub.f32 %v362_v18, %v365_v30 }
 0x195   : > { %v367_v32 = vmul.f32 1.442695, %v366_v31 }
 0x197   : > { %1067 = vpow2.f32 %v367_v32 }
 0x19d   : > { %v1068_v34 = vpop.eup %1067 }
 0x19e   : > { %v369_v35 = vsel %vm278_vm1, %v1068_v34, 0.0 }
 0x19f   : > { %370 = vadd.xlane.f32.xlu2 %v369_v35 }
 0x1b7   : > { %505 = vrot.lane.b32.xlu2 %v1172_v2, %s1113_s9  ;;  %s1120_s9 = smov 48  }
 0x1e0   : > { %450 = vmax.xlane.f32.xlu2 %v449_v52 }
 0x1f8   : > { %543 = vrot.lane.b32.xlu2 %v1172_v2, %s1114_s22  ;;  %s1126_s22 = smov 40  }
 0x204   : > { %v287_v39 = vpop.xlane.xlu2 %286 }
 0x205   : > { %1069 = vrcp.f32 %v287_v39 }
 0x20b   : > { %v1070_v40 = vpop.eup %1069 }
 0x20c   : > { %v289_v41 = vmul.f32 %v1070_v40, %v1066_v26 }
 0x20e   : > { %v290_v42 = vpack.c.bf16 %v289_v41, %v289_v41 }
 0x210   : > { %1001 = vmatmul.msk.bf16.vlgmr.msra.gmra.mxu1 %vm278_vm1, %v290_v42  ;;  %v240_v42 = vld [vmem:[%s1320_s2 + $0x4] sm:$0xf] }
 0x212   : > { %v371_v43 = vpop.xlane.xlu2 %370 }
 0x213   : > { %1071 = vrcp.f32 %v371_v43  ;;  %v566_v43 = vunpack.c.l.b16 %v240_v42 }
 0x219   : > { %v1072_v44 = vpop.eup %1071 }
 0x21a   : > { %v373_v46 = vmul.f32 %v1072_v44, %v1068_v34  ;;  %v506_v60 = vpop.permute.xlu2 %505  ;;  %v567_v44 = vpack.c.b16 %v566_v43, %v566_v43 }
 0x21b   : > { %v511_v63 = vsel %vm254_vm0, %v506_v60, 0 }
 0x21c   : > { %v374_v49 = vpack.c.bf16 %v373_v46, %v373_v46  ;;  %v568_v45 = vrot.slane %v567_v44, 2 }
 0x21e   : > { %v573_v46 = vsel %vm317_vm3, %v568_v45, 0 }
 0x220   : > { %1005 = vmatmul.msk.bf16.vlgmr.msrb.gmra.mxu1 %vm278_vm1, %v374_v49  ;;  %v487_v49 = vsel %vm317_vm3, %v240_v42, 0 }
 0x221   : > { %496 = vmatpush.bf16.msra.mxu1 %v487_v49 }
 0x253   : > { %v451_v1 = vpop.xlane.xlu2 %450 }
 0x254   : > { %v452_v3 = vsub.f32 %v448_v51, %v451_v1 }
 0x256   : > { %v453_v4 = vmul.f32 1.442695, %v452_v3 }
 0x258   : > { %1073 = vpow2.f32 %v453_v4 }
 0x25b   : > { %v544_v30 = vpop.permute.xlu2 %543 }
 0x25c   : > { %v549_v31 = vsel %vm296_vm2, %v544_v30, 0 }
 0x25d   : > { %558 = vmatpush.bf16.msra.mxu0 %v549_v31 }
 0x25e   : > { %v1074_v7 = vpop.eup %1073 }
 0x25f   : > { %v455_v8 = vsel %vm278_vm1, %v1074_v7, 0.0 }
 0x260   : > { %456 = vadd.xlane.f32.xlu0 %v455_v8 }
 0x274   : > { %591 = vrot.lane.b32.xlu0 %v1172_v2, %s1115_s23  ;;  %s1127_s23 = smov 36  }
 0x28d   : > { %v309_v61 = vpop.f32.mrf.mxu1 }
 0x28e   : > { %v313_v62 = vpack.c.bf16 %v309_v61, %v309_v61 }
 0x290   : > { %1002 = vmatmul.msk.bf16.vlgmr.msra.gmra.mxu2 %vm254_vm0, %v313_v62  ;;  %v1251_v62 = vld [vmem:[%s1319_s1 + $0x14] sm:$0xff]  }
 0x291   : > { %520 = vmatpush.bf16.xpose.msra.mxu2 %v511_v63  ;;  %v697_v63 = vunpack.c.l.bf16 %v1251_v62 }
 0x295   : > { %v311_v0 = vpop.f32.mrf.mxu1 }
 0x29d   : > { %v392_v5 = vpop.f32.mrf.mxu1 }
 0x29e   : > { %v396_v6 = vpack.c.bf16 %v392_v5, %v392_v5 }
 0x2a0   : > { %1006 = vmatmul.msk.bf16.vlgmr.msrb.gmra.mxu2 %vm254_vm0, %v396_v6 }
 0x2a5   : > { %v394_v9 = vpop.f32.mrf.mxu1 }
 0x2b0   : > { %1011 = vmatmul.msk.bf16.vlgmr.msra.gmra.mxu2 %vm254_vm0, %v504_v33 }
 0x2d3   : > { %v457_v36 = vpop.xlane.xlu0 %456 }
 0x2e6   : > { %v592_v50 = vpop.permute.xlu0 %591 }
 0x2e7   : > { %v597_v52 = vsel %vm254_vm0, %v592_v50, 0 }
 0x2e8   : > { %606 = vmatpush.bf16.xpose.msrb.mxu1 %v597_v52 }
 0x313   : > { %v330_v10 = vpop.f32.mrf.mxu2 }
 0x314   : > { %v334_v15 = vadd.f32 %v330_v10, %v248_v14  ;;  %v1016_v10 = vld [vmem:[%s1319_s1 + $0x10] sm:$0xf] }
 0x315   : > { %v615_v11 = vunpack.c.l.bf16 %v1016_v10 }
 0x31b   : > { %v332_v13 = vpop.f32.mrf.mxu2 }
 0x323   : > { %v416_v16 = vpop.f32.mrf.mxu2 }
 0x324   : > { %v1223_v17 = vadd.f32 %v416_v16, %v334_v15 }
 0x32b   : > { %v418_v18 = vpop.f32.mrf.mxu2 }
 0x333   : > { %v522_v20 = vpop.f32.mrf.mxu2 }
 0x334   : > { %v526_v21 = vmul.f32 0.5, %v522_v20 }
 0x336   : > { %v530_v22 = vadd.f32 %v529_v19, %v526_v21 }
 0x338   : > { %v531_v23 = vsel %vm278_vm1, %v530_v22, -inf }
 0x339   : > { %532 = vmax.xlane.f32.xlu1 %v531_v23 }
 0x33b   : > { %v524_v24 = vpop.f32.mrf.mxu2 }
 0x3ac   : > { %v533_v25 = vpop.xlane.xlu1 %532 }
 0x3ad   : > { %v534_v26 = vsub.f32 %v530_v22, %v533_v25 }
 0x3af   : > { %v535_v27 = vmul.f32 1.442695, %v534_v26 }
 0x3b1   : > { %1075 = vpow2.f32 %v535_v27 }
 0x3b7   : > { %v1076_v28 = vpop.eup %1075 }
 0x3b8   : > { %v537_v29 = vsel %vm278_vm1, %v1076_v28, 0.0 }
 0x3b9   : > { %538 = vadd.xlane.f32.xlu1 %v537_v29 }
 0x3d2   : > { %461 = vrot.lane.b32.xlu1 %v1172_v2, %s1116_s24 }
 0x3da   : > { %673 = vrot.lane.b32.xlu1 %v1172_v2, %s1117_s25 }
 0x3e2   : > { %671 = vrot.lane.b32.xlu1 %v1172_v2, %s1118_s26 }
 0x3ea   : > { %589 = vrot.lane.b32.xlu1 %v1172_v2, %s1119_s27 }
 0x42c   : > { %v539_v32 = vpop.xlane.xlu1 %538 }
 0x42d   : > { %1077 = vrcp.f32 %v539_v32 }
 0x42e   : > { %1079 = vrcp.f32 %v457_v36 }
 0x433   : > { %v1078_v33 = vpop.eup %1077 }
 0x434   : > { %v541_v34 = vmul.f32 %v1078_v33, %v1076_v28  ;;  %v1080_v37 = vpop.eup %1079 }
 0x435   : > { %v459_v38 = vmul.f32 %v1080_v37, %v1074_v7 }
 0x436   : > { %v542_v35 = vpack.c.bf16 %v541_v34, %v541_v34 }
 0x437   : > { %v460_v41 = vpack.c.bf16 %v459_v38, %v459_v38 }
 0x438   : > { %1013 = vmatmul.msk.bf16.vlgmr.msra.gmra.mxu0 %vm278_vm1, %v542_v35 }
 0x444   : > { %v462_v39 = vpop.permute.xlu1 %461 }
 0x445   : > { %v467_v40 = vsel %vm296_vm2, %v462_v39, 0  ;;  %v241_v39 = vld [vmem:[%s1320_s2 + $0x8] sm:$0xf] }
 0x446   : > { %476 = vmatpush.bf16.msrb.mxu3 %v467_v40  ;;  %v655_v40 = vsel %vm317_vm3, %v241_v39, 0 }
 0x447   : > { %664 = vmatpush.bf16.msrb.mxu0 %v655_v40 }
 0x449   : > { %1009 = vmatmul.msk.bf16.vlgmr.msrb.gmra.mxu3 %vm278_vm1, %v460_v41  ;;  %v734_v41 = vunpack.c.l.b16 %v241_v39 }
 0x44a   : > { %582 = vmatpush.bf16.msra.mxu3 %v573_v46 }
 0x44b   : > { %v735_v42 = vpack.c.b16 %v734_v41, %v734_v41 }
 0x44c   : > { %v674_v47 = vpop.permute.xlu1 %673 }
 0x44d   : > { %v679_v48 = vsel %vm254_vm0, %v674_v47, 0  ;;  %v736_v43 = vrot.slane %v735_v42, 2 }
 0x44e   : > { %688 = vmatpush.bf16.xpose.msrb.mxu3 %v679_v48 }
 0x44f   : > { %v741_v44 = vsel %vm317_vm3, %v736_v43, 0 }
 0x454   : > { %v672_v55 = vpop.permute.xlu1 %671 }
 0x45c   : > { %v590_v59 = vpop.permute.xlu1 %589 }
 0x4b5   : > { %v560_v51 = vpop.f32.mrf.mxu0 }
 0x4b6   : > { %v564_v53 = vpack.c.bf16 %v560_v51, %v560_v51 }
 0x4b8   : > { %1014 = vmatmul.msk.bf16.vlgmr.msra.gmra.mxu3 %vm254_vm0, %v564_v53 }
 0x4bd   : > { %v562_v54 = vpop.f32.mrf.mxu0 }
 0x4c8   : > { %1019 = vmatmul.msk.bf16.vlgmr.msrb.gmra.mxu3 %vm254_vm0, %v672_v55 }
 0x4cc   : > { %v478_v56 = vpop.f32.mrf.mxu3 }
 0x4cd   : > { %v482_v57 = vpack.c.bf16 %v478_v56, %v478_v56 }
 0x4cf   : > { %1010 = vmatmul.msk.bf16.vlgmr.msra.gmra.mxu1 %vm254_vm0, %v482_v57 }
 0x4d4   : > { %v480_v58 = vpop.f32.mrf.mxu3 }
 0x4df   : > { %1015 = vmatmul.msk.bf16.vlgmr.msrb.gmra.mxu1 %vm254_vm0, %v590_v59 }
 0x53b   : > { %v584_v60 = vpop.f32.mrf.mxu3 }
 0x543   : > { %v586_v61 = vpop.f32.mrf.mxu3 }
 0x54b   : > { %v690_v0 = vpop.f32.mrf.mxu3 }
 0x54c   : > { %v694_v1 = vmul.f32 0.5, %v690_v0  ;;  %v498_v3 = vpop.f32.mrf.mxu1 }
 0x54d   : > { %v502_v4 = vadd.f32 %v498_v3, %v1223_v17 }
 0x54e   : > { %v698_v5 = vadd.f32 %v697_v63, %v694_v1  ;;  %v783_v63 = vunpack.c.h.bf16 %v1251_v62 }
 0x54f   : > { %v1255_v6 = vadd.f32 %v584_v60, %v502_v4 }
 0x550   : > { %v699_v7 = vsel %vm278_vm1, %v698_v5, -inf }
 0x551   : > { %700 = vmax.xlane.f32.xlu1 %v699_v7 }
 0x553   : > { %v692_v8 = vpop.f32.mrf.mxu3 }
 0x554   : > { %v500_v9 = vpop.f32.mrf.mxu1  ;;  %v1028_v8 = vld [vmem:[%s1319_s1 + $0x1c] sm:$0xf] }
 0x555   : > { %v865_v9 = vunpack.c.l.bf16 %v1028_v8 }
 0x55c   : > { %v608_v12 = vpop.f32.mrf.mxu1 }
 0x55d   : > { %v612_v13 = vmul.f32 0.5, %v608_v12 }
 0x55f   : > { %v616_v14 = vadd.f32 %v615_v11, %v612_v13 }
 0x561   : > { %v617_v15 = vsel %vm278_vm1, %v616_v14, -inf }
 0x562   : > { %618 = vmax.xlane.f32.xlu2 %v617_v15 }
 0x564   : > { %v610_v16 = vpop.f32.mrf.mxu1 }
 0x56a   : > { %629 = vrot.lane.b32.xlu1 %v1172_v2, %s1120_s9 }
 0x572   : > { %839 = vrot.lane.b32.xlu1 %v1172_v2, %s1121_s10 }
 0x5c4   : > { %v701_v17 = vpop.xlane.xlu1 %700 }
 0x5c5   : > { %v702_v18 = vsub.f32 %v698_v5, %v701_v17 }
 0x5c7   : > { %v703_v19 = vmul.f32 1.442695, %v702_v18 }
 0x5c9   : > { %1081 = vpow2.f32 %v703_v19 }
 0x5cf   : > { %v1082_v20 = vpop.eup %1081 }
 0x5d0   : > { %v705_v21 = vsel %vm278_vm1, %v1082_v20, 0.0 }
 0x5d1   : > { %706 = vadd.xlane.f32.xlu2 %v705_v21 }
 0x5d5   : > { %v619_v22 = vpop.xlane.xlu2 %618 }
 0x5d6   : > { %v620_v23 = vsub.f32 %v616_v14, %v619_v22 }
 0x5d8   : > { %v621_v24 = vmul.f32 1.442695, %v620_v23 }
 0x5da   : > { %1083 = vpow2.f32 %v621_v24 }
 0x5dc   : > { %v630_v27 = vpop.permute.xlu1 %629 }
 0x5dd   : > { %v635_v28 = vsel %vm296_vm2, %v630_v27, 0 }
 0x5de   : > { %644 = vmatpush.bf16.msrb.mxu2 %v635_v28 }
 0x5e0   : > { %v1084_v25 = vpop.eup %1083 }
 0x5e1   : > { %v623_v26 = vsel %vm278_vm1, %v1084_v25, 0.0 }
 0x5e2   : > { %624 = vadd.xlane.f32.xlu0 %v623_v26  ;;  %750 = vmatpush.bf16.msra.mxu2 %v741_v44 }
 0x5e4   : > { %v840_v56 = vpop.permute.xlu1 %839 }
 0x5e9   : > { %841 = vrot.lane.b32.xlu2 %v1172_v2, %s1122_s11 }
 0x5f1   : > { %757 = vrot.lane.b32.xlu2 %v1172_v2, %s1124_s13 }
 0x5f6   : > { %711 = vrot.lane.b32.xlu0 %v1172_v2, %s1123_s12 }
 0x5fe   : > { %759 = vrot.lane.b32.xlu0 %v1172_v2, %s1125_s15 }
 0x644   : > { %v707_v30 = vpop.xlane.xlu2 %706 }
 0x64c   : > { %v842_v46 = vpop.permute.xlu2 %841 }
 0x64d   : > { %v847_v48 = vsel %vm254_vm0, %v842_v46, 0 }
 0x654   : > { %v758_v55 = vpop.permute.xlu2 %757 }
 0x655   : > { %v625_v29 = vpop.xlane.xlu0 %624 }
 0x656   : > { %1085 = vrcp.f32 %v625_v29 }
 0x657   : > { %1087 = vrcp.f32 %v707_v30 }
 0x65c   : > { %v1086_v31 = vpop.eup %1085 }
 0x65d   : > { %v627_v32 = vmul.f32 %v1086_v31, %v1084_v25  ;;  %v1088_v34 = vpop.eup %1087 }
 0x65e   : > { %v709_v35 = vmul.f32 %v1088_v34, %v1082_v20  ;;  %v242_v34 = vld [vmem:[%s1320_s2 + $0xc] sm:$0xf] }
 0x65f   : > { %v628_v33 = vpack.c.bf16 %v627_v32, %v627_v32 }
 0x660   : > { %v710_v38 = vpack.c.bf16 %v709_v35, %v709_v35  ;;  %v823_v35 = vsel %vm317_vm3, %v242_v34, 0 }
 0x661   : > { %1017 = vmatmul.msk.bf16.vlgmr.msrb.gmra.mxu2 %vm278_vm1, %v628_v33 }
 0x662   : > { %856 = vmatpush.bf16.xpose.msrb.mxu2 %v847_v48 }
 0x668   : > { %v712_v36 = vpop.permute.xlu0 %711 }
 0x669   : > { %v717_v37 = vsel %vm296_vm2, %v712_v36, 0  ;;  %v902_v36 = vunpack.c.l.b16 %v242_v34 }
 0x66a   : > { %726 = vmatpush.bf16.msra.mxu1 %v717_v37 }
 0x66b   : > { %v903_v37 = vpack.c.b16 %v902_v36, %v902_v36 }
 0x66d   : > { %1021 = vmatmul.msk.bf16.vlgmr.msra.gmra.mxu1 %vm278_vm1, %v710_v38  ;;  %v904_v38 = vrot.slane %v903_v37, 2 }
 0x66e   : > { %832 = vmatpush.bf16.msrb.mxu1 %v823_v35 }
 0x66f   : > { %v909_v39 = vsel %vm317_vm3, %v904_v38, 0 }
 0x670   : > { %v760_v45 = vpop.permute.xlu0 %759 }
 0x671   : > { %v765_v47 = vsel %vm254_vm0, %v760_v45, 0 }
 0x672   : > { %774 = vmatpush.bf16.xpose.msra.mxu0 %v765_v47 }
 0x6e4   : > { %v646_v49 = vpop.f32.mrf.mxu2 }
 0x6e5   : > { %v650_v50 = vpack.c.bf16 %v646_v49, %v646_v49 }
 0x6e7   : > { %1018 = vmatmul.msk.bf16.vlgmr.msrb.gmra.mxu0 %vm254_vm0, %v650_v50 }
 0x6ea   : > { %v728_v51 = vpop.f32.mrf.mxu1 }
 0x6eb   : > { %v732_v52 = vpack.c.bf16 %v728_v51, %v728_v51 }
 0x6ec   : > { %v648_v53 = vpop.f32.mrf.mxu2 }
 0x6ed   : > { %1022 = vmatmul.msk.bf16.vlgmr.msra.gmra.mxu2 %vm254_vm0, %v732_v52 }
 0x6f2   : > { %v730_v54 = vpop.f32.mrf.mxu1 }
 0x6f7   : > { %1023 = vmatmul.msk.bf16.vlgmr.msra.gmra.mxu0 %vm254_vm0, %v758_v55 }
 0x6fd   : > { %1027 = vmatmul.msk.bf16.vlgmr.msrb.gmra.mxu2 %vm254_vm0, %v840_v56 }
 0x764   : > { %v666_v57 = vpop.f32.mrf.mxu0 }
 0x765   : > { %v670_v58 = vadd.f32 %v666_v57, %v1255_v6 }
 0x76c   : > { %v668_v59 = vpop.f32.mrf.mxu0 }
 0x770   : > { %v752_v60 = vpop.f32.mrf.mxu2 }
 0x771   : > { %v1286_v61 = vadd.f32 %v752_v60, %v670_v58 }
 0x774   : > { %v776_v0 = vpop.f32.mrf.mxu0 }
 0x775   : > { %v780_v1 = vmul.f32 0.5, %v776_v0 }
 0x777   : > { %v784_v3 = vadd.f32 %v783_v63, %v780_v1 }
 0x778   : > { %v754_v4 = vpop.f32.mrf.mxu2 }
 0x779   : > { %v785_v5 = vsel %vm278_vm1, %v784_v3, -inf }
 0x77a   : > { %786 = vmax.xlane.f32.xlu0 %v785_v5 }
 0x77c   : > { %v778_v7 = vpop.f32.mrf.mxu0 }
 0x780   : > { %v858_v6 = vpop.f32.mrf.mxu2 }
 0x781   : > { %v862_v10 = vmul.f32 0.5, %v858_v6 }
 0x783   : > { %v866_v11 = vadd.f32 %v865_v9, %v862_v10 }
 0x785   : > { %v867_v12 = vsel %vm278_vm1, %v866_v11, -inf }
 0x786   : > { %868 = vmax.xlane.f32.xlu1 %v867_v12 }
 0x788   : > { %v860_v62 = vpop.f32.mrf.mxu2 }
 0x79f   : > { %797 = vrot.lane.b32.xlu1 %v1172_v2, %s1126_s22 }
 0x7ed   : > { %v787_v13 = vpop.xlane.xlu0 %786 }
 0x7ee   : > { %v788_v14 = vsub.f32 %v784_v3, %v787_v13 }
 0x7f0   : > { %v789_v15 = vmul.f32 1.442695, %v788_v14 }
 0x7f2   : > { %1089 = vpow2.f32 %v789_v15 }
 0x7f8   : > { %v1090_v16 = vpop.eup %1089 }
 0x7f9   : > { %v869_v17 = vpop.xlane.xlu1 %868  ;;  %v791_v18 = vsel %vm278_vm1, %v1090_v16, 0.0 }
 0x7fa   : > { %v870_v19 = vsub.f32 %v866_v11, %v869_v17  ;;  %792 = vadd.xlane.f32.xlu2 %v791_v18 }
 0x7fc   : > { %v871_v20 = vmul.f32 1.442695, %v870_v19 }
 0x7fe   : > { %1091 = vpow2.f32 %v871_v20 }
 0x804   : > { %v1092_v21 = vpop.eup %1091 }
 0x805   : > { %v873_v22 = vsel %vm278_vm1, %v1092_v21, 0.0 }
 0x806   : > { %874 = vadd.xlane.f32.xlu0 %v873_v22 }
 0x811   : > { %v798_v23 = vpop.permute.xlu1 %797 }
 0x812   : > { %879 = vrot.lane.b32.xlu2 %v1172_v2, %s1127_s23  ;;  %v803_v24 = vsel %vm296_vm2, %v798_v23, 0 }
 0x813   : > { %812 = vmatpush.bf16.msra.mxu3 %v803_v24 }
 0x817   : > { %918 = vmatpush.bf16.msrb.mxu3 %v909_v39 }
 0x86d   : > { %v793_v25 = vpop.xlane.xlu2 %792 }
 0x86e   : > { %1093 = vrcp.f32 %v793_v25 }
 0x874   : > { %v1094_v26 = vpop.eup %1093 }
 0x875   : > { %v795_v27 = vmul.f32 %v1094_v26, %v1090_v16  ;;  %v880_v28 = vpop.permute.xlu2 %879 }
 0x876   : > { %v885_v29 = vsel %vm296_vm2, %v880_v28, 0 }
 0x877   : > { %v796_v30 = vpack.c.bf16 %v795_v27, %v795_v27  ;;  %894 = vmatpush.bf16.msrb.mxu0 %v885_v29 }
 0x879   : > { %1025 = vmatmul.msk.bf16.vlgmr.msra.gmra.mxu3 %vm278_vm1, %v796_v30  ;;  %v875_v31 = vpop.xlane.xlu0 %874 }
 0x87a   : > { %1095 = vrcp.f32 %v875_v31 }
 0x880   : > { %v1096_v32 = vpop.eup %1095 }
 0x881   : > { %v877_v33 = vmul.f32 %v1096_v32, %v1092_v21 }
 0x883   : > { %v878_v2 = vpack.c.bf16 %v877_v33, %v877_v33 }
 0x885   : > { %1029 = vmatmul.msk.bf16.vlgmr.msrb.gmra.mxu0 %vm278_vm1, %v878_v2 }
 0x8fc   : > { %v814_v40 = vpop.f32.mrf.mxu3 }
 0x8fd   : > { %v818_v41 = vpack.c.bf16 %v814_v40, %v814_v40 }
 0x8ff   : > { %1026 = vmatmul.msk.bf16.vlgmr.msrb.gmra.mxu1 %vm254_vm0, %v818_v41 }
 0x902   : > { %v896_v42 = vpop.f32.mrf.mxu0 }
 0x903   : > { %v900_v43 = vpack.c.bf16 %v896_v42, %v896_v42 }
 0x904   : > { %v816_v44 = vpop.f32.mrf.mxu3 }
 0x905   : > { %1030 = vmatmul.msk.bf16.vlgmr.msrb.gmra.mxu3 %vm254_vm0, %v900_v43 }
 0x90a   : > { %v898_v45 = vpop.f32.mrf.mxu0 }
 0x97c   : > { %v834_v46 = vpop.f32.mrf.mxu1 }
 0x97d   : > { %v838_v48 = vadd.f32 %v834_v46, %v1286_v61 }
 0x984   : > { %v836_v47 = vpop.f32.mrf.mxu1 }
 0x988   : > { %v920_v49 = vpop.f32.mrf.mxu3 }
 0x989   : > { %v924_v50 = vadd.f32 %v920_v49, %v838_v48 }
 0x98b   : > { %926 = vst.msk [vmem:[%s236_s28] sm:$0xff] %vm925_vm4, %v924_v50 }
 0x990   : > { %v922_v51 = vpop.f32.mrf.mxu3 }
 0x991 PF: > { %s15_s18 = sadd.s32 1, %s1103_s18  }
 0x992   : > { %p12_p4 = scmp.ge.s32.totalorder %s15_s18, 4  }
 0x994   :  { %14 = sbr.rel (!%p12_p4) target bundleno = 1 (0x1), region = 80 }

// kernel: base_transformer_cross_attn.18
= control target key start
LH: loop header
LB: loop body
LE: loop exit
PB: predicated region body
PF: predicated region fallthrough
CT: control target
= control target key end

     0   :  { %vm28_vm0 = vcmask 261120   ;;  %v253_v8 = vmov 32.0   ;;  %vm142_vm10 = vcmask 257024   ;;  %vm207_vm15 = vcmask 519168   ;;  %s349_s0 = inlined_call_operand.vmem [shape: f32[32,32], index: 0, kind: input, shape index: {}]   ;;  %s350_s1 = inlined_call_operand.vmem [shape: f32[1,32], index: 1, kind: input, shape index: {}]   ;;  %s351_s2 = inlined_call_operand.vmem [shape: f32[1,32], index: 2, kind: input, shape index: {}]   ;;  %s352_s3 = inlined_call_operand.vmem [shape: bf16[32,64], index: 3, kind: input, shape index: {}]   ;;  %s353_s4 = inlined_call_operand.vmem [shape: bf16[32,64], index: 4, kind: output, shape index: {}]  }
   0x1   :  { %v24_v0 = vld [vmem:[%s349_s0 + $0x10] sm:$0xff]  ;;  %v22_v1 = vld [vmem:[%s349_s0] sm:$0xff]  ;;  %v25_v4 = vld [vmem:[%s349_s0 + $0x18] sm:$0xff]  ;;  %243 = vrcp.f32 %v253_v8 }
   0x2   :  { %v35_v2 = vsel %vm28_vm0, %v24_v0, 0.0  ;;  %v29_v3 = vsel %vm28_vm0, %v22_v1, 0.0  ;;  %v23_v5 = vld [vmem:[%s349_s0 + $0x8] sm:$0xff]  ;;  %v38_v6 = vsel %vm28_vm0, %v25_v4, 0.0  ;;  %v236_v46 = vld [vmem:[%s352_s3] sm:$0xff] }
   0x3   :  { %36 = vadd.xlane.f32.xlu1 %v35_v2  ;;  %30 = vadd.xlane.f32.xlu0 %v29_v3  ;;  %v32_v7 = vsel %vm28_vm0, %v23_v5, 0.0  ;;  %v237_v43 = vld [vmem:[%s352_s3 + $0x8] sm:$0xff]  ;;  %v241_v63 = vld [vmem:[%s350_s1] ss:$0 sm:$0xff] }
   0x4   :  { %190 = vmatpush.bf16.msra.mxu0 %v237_v43  ;;  %238 = vmatpush.bf16.msra.mxu1 %v237_v43 }
   0x7   :  { %v244_v9 = vpop.eup %243 }
   0x8   :  { %v42_v10 = vmul.f32 32.0, %v244_v9  ;;  %vm46_vm1 = vweird.f32 %v244_v9  ;;  %191 = vmatpush.bf16.msra.mxu0 %v236_v46  ;;  %239 = vmatpush.bf16.msra.mxu1 %v236_v46 }
   0xa   :  { %v43_v11 = vsub.f32 1.0, %v42_v10 }
   0xb   :  { %39 = vadd.xlane.f32.xlu1 %v38_v6  ;;  %33 = vadd.xlane.f32.xlu0 %v32_v7 }
   0xc   :  { %v44_v12 = vmul.f32 %v244_v9, %v43_v11 }
   0xe   :  { %v45_v13 = vadd.f32 %v244_v9, %v44_v12 }
  0x10   :  { %v47_v14 = vsel %vm46_vm1, %v244_v9, %v45_v13 }
  0x76   :  { %v37_v15 = vpop.xlane.xlu1 %36  ;;  %v31_v16 = vpop.xlane.xlu0 %30 }
  0x77   :  { %v50_v17 = vmul.f32 %v47_v14, %v37_v15  ;;  %v48_v18 = vmul.f32 %v47_v14, %v31_v16 }
  0x79   :  { %v295_v19 = vsub.f32 %v24_v0, %v50_v17  ;;  %v297_v20 = vsub.f32 %v22_v1, %v48_v18 }
  0x7b   :  { %v58_v21 = vmul.f32 %v295_v19, %v295_v19  ;;  %v56_v22 = vmul.f32 %v297_v20, %v297_v20 }
  0x7d   :  { %v66_v23 = vsel %vm28_vm0, %v58_v21, 0.0  ;;  %v60_v24 = vsel %vm28_vm0, %v56_v22, 0.0 }
  0x7e   :  { %v40_v25 = vpop.xlane.xlu1 %39  ;;  %67 = vadd.xlane.f32.xlu0 %v66_v23  ;;  %61 = vadd.xlane.f32.xlu2 %v60_v24  ;;  %v34_v26 = vpop.xlane.xlu0 %33 }
  0x7f   :  { %v51_v27 = vmul.f32 %v47_v14, %v40_v25  ;;  %v49_v28 = vmul.f32 %v47_v14, %v34_v26 }
  0x81   :  { %v305_v29 = vsub.f32 %v25_v4, %v51_v27  ;;  %v307_v30 = vsub.f32 %v23_v5, %v49_v28  ;;  %v242_v4 = vld [vmem:[%s351_s2] ss:$0 sm:$0xff] }
  0x83   :  { %v59_v31 = vmul.f32 %v305_v29, %v305_v29  ;;  %v57_v32 = vmul.f32 %v307_v30, %v307_v30 }
  0x85   :  { %v69_v33 = vsel %vm28_vm0, %v59_v31, 0.0  ;;  %v63_v34 = vsel %vm28_vm0, %v57_v32, 0.0 }
  0x86   :  { %70 = vadd.xlane.f32.xlu1 %v69_v33  ;;  %64 = vadd.xlane.f32.xlu2 %v63_v34 }
  0xf1   :  { %v62_v35 = vpop.xlane.xlu2 %61  ;;  %v68_v36 = vpop.xlane.xlu0 %67 }
  0xf2   :  { %v72_v37 = vmul.f32 %v62_v35, %v47_v14  ;;  %v74_v38 = vmul.f32 %v68_v36, %v47_v14 }
  0xf4   :  { %v76_v39 = vadd.f32 1e-05, %v72_v37  ;;  %v78_v40 = vadd.f32 1e-05, %v74_v38 }
  0xf6   :  { %245 = vrsqrt.f32 %v76_v39  ;;  %vm86_vm4 = vweird.f32 %v76_v39  ;;  %vm106_vm6 = vweird.f32 %v78_v40 }
  0xf7   :  { %247 = vrsqrt.f32 %v78_v40 }
  0xf9   :  { %v71_v41 = vpop.xlane.xlu1 %70  ;;  %v65_v42 = vpop.xlane.xlu2 %64 }
  0xfa   :  { %v75_v44 = vmul.f32 %v71_v41, %v47_v14  ;;  %v73_v45 = vmul.f32 %v65_v42, %v47_v14 }
  0xfc   :  { %v246_v47 = vpop.eup %245  ;;  %v79_v48 = vadd.f32 1e-05, %v75_v44  ;;  %v77_v49 = vadd.f32 1e-05, %v73_v45 }
  0xfd   :  { %v248_v50 = vpop.eup %247  ;;  %v81_v51 = vmul.f32 %v246_v47, %v76_v39  ;;  %vm87_vm2 = vweird.f32 %v246_v47 }
  0xfe   :  { %v101_v52 = vmul.f32 %v248_v50, %v78_v40  ;;  %249 = vrsqrt.f32 %v79_v48  ;;  %vm107_vm3 = vweird.f32 %v248_v50  ;;  %vm88_vm5 = vmor %vm86_vm4, %vm87_vm2  ;;  %vm116_vm11 = vweird.f32 %v79_v48 }
  0xff   :  { %v82_v53 = vmul.f32 %v246_v47, %v81_v51  ;;  %251 = vrsqrt.f32 %v77_v49  ;;  %vm108_vm7 = vmor %vm106_vm6, %vm107_vm3  ;;  %vm96_vm13 = vweird.f32 %v77_v49 }
 0x100   :  { %v102_v54 = vmul.f32 %v248_v50, %v101_v52 }
 0x101   :  { %v83_v55 = vmul.f32 0.5, %v82_v53 }
 0x102   :  { %v103_v56 = vmul.f32 0.5, %v102_v54 }
 0x103   :  { %v84_v57 = vsub.f32 1.5, %v83_v55 }
 0x104   :  { %v250_v58 = vpop.eup %249  ;;  %v104_v59 = vsub.f32 1.5, %v103_v56 }
 0x105   :  { %v252_v60 = vpop.eup %251  ;;  %v85_v61 = vmul.f32 %v246_v47, %v84_v57  ;;  %v111_v62 = vmul.f32 %v250_v58, %v79_v48  ;;  %vm117_vm8 = vweird.f32 %v250_v58 }
 0x106   :  { %v105_v0 = vmul.f32 %v248_v50, %v104_v59  ;;  %v91_v1 = vmul.f32 %v252_v60, %v77_v49  ;;  %vm97_vm9 = vweird.f32 %v252_v60  ;;  %vm118_vm12 = vmor %vm116_vm11, %vm117_vm8 }
 0x107   :  { %v89_v2 = vsel %vm88_vm5, %v246_v47, %v85_v61  ;;  %v112_v3 = vmul.f32 %v250_v58, %v111_v62  ;;  %vm98_vm14 = vmor %vm96_vm13, %vm97_vm9 }
 0x108   :  { %v120_v5 = vmul.f32 %v89_v2, %v297_v20  ;;  %v109_v6 = vsel %vm108_vm7, %v248_v50, %v105_v0  ;;  %v92_v7 = vmul.f32 %v252_v60, %v91_v1 }
 0x109   :  { %v122_v8 = vmul.f32 %v109_v6, %v295_v19  ;;  %v113_v9 = vmul.f32 0.5, %v112_v3 }
 0x10a   :  { %v127_v10 = vmul.f32 %v241_v63, %v120_v5  ;;  %v93_v11 = vmul.f32 0.5, %v92_v7 }
 0x10b   :  { %v129_v12 = vmul.f32 %v241_v63, %v122_v8  ;;  %v114_v13 = vsub.f32 1.5, %v113_v9 }
 0x10c   :  { %v134_v14 = vadd.f32 %v242_v4, %v127_v10  ;;  %v94_v15 = vsub.f32 1.5, %v93_v11 }
 0x10d   :  { %v136_v16 = vadd.f32 %v242_v4, %v129_v12  ;;  %v115_v17 = vmul.f32 %v250_v58, %v114_v13 }
 0x10e   :  { %v138_v18 = vpack.c.bf16 %v134_v14, %v134_v14  ;;  %v95_v20 = vmul.f32 %v252_v60, %v94_v15 }
 0x10f   :  { %v140_v21 = vpack.c.bf16 %v136_v16, %v136_v16  ;;  %v119_v22 = vsel %vm118_vm12, %v250_v58, %v115_v17 }
 0x110   :  { %143 = vst.msk [vmem:[#allocation2] sm:$0xf] %vm142_vm10, %v138_v18  ;;  %v123_v19 = vmul.f32 %v119_v22, %v305_v29  ;;  %v99_v23 = vsel %vm98_vm14, %v252_v60, %v95_v20 }
 0x111   :  { %145 = vst.msk [vmem:[#allocation2 + $0x8] sm:$0xf] %vm142_vm10, %v140_v21  ;;  %v121_v24 = vmul.f32 %v99_v23, %v307_v30 }
 0x112   :  { %v130_v25 = vmul.f32 %v241_v63, %v123_v19 }
 0x113   :  { %v128_v26 = vmul.f32 %v241_v63, %v121_v24 }
 0x114   :  { %v137_v27 = vadd.f32 %v242_v4, %v130_v25 }
 0x115   :  { %v135_v28 = vadd.f32 %v242_v4, %v128_v26 }
 0x116   :  { %v141_v31 = vpack.c.bf16 %v137_v27, %v137_v27 }
 0x117   :  { %v139_v32 = vpack.c.bf16 %v135_v28, %v135_v28 }
 0x118   :  { %146 = vst.msk [vmem:[#allocation2 + $0xc] sm:$0xf] %vm142_vm10, %v141_v31 }
 0x119   :  { %144 = vst.msk [vmem:[#allocation2 + $0x4] sm:$0xf] %vm142_vm10, %v139_v32 }
 0x11f   :  { %v235_v33 = vld [vmem:[#allocation2 + $0x8] sm:$0xff] }
 0x120   :  { %v234_v34 = vld [vmem:[#allocation2] sm:$0xff]  ;;  %233 = vmatmul.msk.bf16.vlgmr.msra.gmra.mxu1 %vm28_vm0, %v235_v33 }
 0x121   :  { %232 = vmatmul.msk.bf16.vlgmr.msra.gmra.mxu0 %vm28_vm0, %v234_v34 }
 0x19d   :  { %v198_v29 = vpop.f32.mrf.mxu1 }
 0x19e   :  { %v193_v35 = vpop.f32.mrf.mxu0  ;;  %v205_v30 = vpack.c.bf16 %v198_v29, %v198_v29 }
 0x19f   :  { %v203_v36 = vpack.c.bf16 %v193_v35, %v193_v35 }
 0x1a0   :  { %210 = vst.msk [vmem:[%s353_s4 + $0x8] sm:$0xf] %vm207_vm15, %v205_v30 }
 0x1a1   :  { %208 = vst.msk [vmem:[%s353_s4] sm:$0xf] %vm207_vm15, %v203_v36 }
 0x1a5   :  { %v200_v37 = vpop.f32.mrf.mxu1 }
 0x1a6   :  { %v195_v38 = vpop.f32.mrf.mxu0  ;;  %v206_v39 = vpack.c.bf16 %v200_v37, %v200_v37 }
 0x1a7   :  { %v204_v40 = vpack.c.bf16 %v195_v38, %v195_v38 }
 0x1a8   :  { %211 = vst.msk [vmem:[%s353_s4 + $0xc] sm:$0xf] %vm207_vm15, %v206_v39 }
 0x1a9   :  { %209 = vst.msk [vmem:[%s353_s4 + $0x4] sm:$0xf] %vm207_vm15, %v204_v40 }

// kernel: base_transformer_cross_attn.20
= control target key start
LH: loop header
LB: loop body
LE: loop exit
PB: predicated region body
PF: predicated region fallthrough
CT: control target
= control target key end

     0   :  { %vm29_vm0 = vcmask 261120   ;;  %v268_v4 = vmov 32.0   ;;  %vm93_vm6 = vcmask 257024   ;;  %s344_s0 = inlined_call_operand.vmem [shape: f32[16,32], index: 0, kind: input, shape index: {}]   ;;  %s345_s1 = inlined_call_operand.vmem [shape: f32[1,32], index: 1, kind: input, shape index: {}]   ;;  %s346_s2 = inlined_call_operand.vmem [shape: f32[1,32], index: 2, kind: input, shape index: {}]   ;;  %s347_s4 = inlined_call_operand.vmem [shape: f32[1,128], index: 4, kind: input, shape index: {}]   ;;  %s348_s3 = inlined_call_operand.vmem [shape: bf16[32,128], index: 3, kind: input, shape index: {}]   ;;  %s349_s5 = inlined_call_operand.vmem [shape: bf16[16,128], index: 5, kind: output, shape index: {}]  }
   0x1   :  { %v25_v0 = vld [vmem:[%s344_s0] sm:$0xff]  ;;  %v26_v2 = vld [vmem:[%s344_s0 + $0x8] sm:$0xff]  ;;  %254 = vrcp.f32 %v268_v4 }
   0x2   :  { %v30_v1 = vsel %vm29_vm0, %v25_v0, 0.0  ;;  %v33_v3 = vsel %vm29_vm0, %v26_v2, 0.0  ;;  %v244_v24 = vld [vmem:[%s348_s3 + $0x8] sm:$0xff]  ;;  %v243_v27 = vld [vmem:[%s348_s3] sm:$0xff] }
   0x3   :  { %31 = vadd.xlane.f32.xlu0 %v30_v1  ;;  %133 = vmatpush.bf16.msra.mxu0 %v244_v24  ;;  %v251_v37 = vld [vmem:[%s345_s1] ss:$0 sm:$0xff] }
   0x4   :  { %v252_v40 = vld [vmem:[%s346_s2] ss:$0 sm:$0xff] }
   0x5   :  { %v253_v54 = vld [vmem:[%s347_s4] ss:$0 sm:$0xff] }
   0x7   :  { %v255_v5 = vpop.eup %254  ;;  %134 = vmatpush.bf16.msra.mxu0 %v243_v27 }
   0x8   :  { %v37_v6 = vmul.f32 32.0, %v255_v5  ;;  %vm41_vm1 = vweird.f32 %v255_v5 }
   0xa   :  { %v38_v7 = vsub.f32 1.0, %v37_v6 }
   0xb   :  { %34 = vadd.xlane.f32.xlu0 %v33_v3 }
   0xc   :  { %v39_v8 = vmul.f32 %v255_v5, %v38_v7 }
   0xe   :  { %v40_v9 = vadd.f32 %v255_v5, %v39_v8 }
  0x10   :  { %v42_v10 = vsel %vm41_vm1, %v255_v5, %v40_v9 }
  0x76   :  { %v32_v11 = vpop.xlane.xlu0 %31 }
  0x77   :  { %v43_v12 = vmul.f32 %v42_v10, %v32_v11 }
  0x79   :  { %v45_v13 = vsub.f32 %v25_v0, %v43_v12 }
  0x7b   :  { %v47_v14 = vmul.f32 %v45_v13, %v45_v13 }
  0x7d   :  { %v49_v15 = vsel %vm29_vm0, %v47_v14, 0.0 }
  0x7e   :  { %50 = vadd.xlane.f32.xlu1 %v49_v15  ;;  %v35_v16 = vpop.xlane.xlu0 %34 }
  0x7f   :  { %v44_v17 = vmul.f32 %v42_v10, %v35_v16 }
  0x81   :  { %v46_v18 = vsub.f32 %v26_v2, %v44_v17 }
  0x83   :  { %v48_v19 = vmul.f32 %v46_v18, %v46_v18 }
  0x85   :  { %v52_v20 = vsel %vm29_vm0, %v48_v19, 0.0 }
  0x86   :  { %53 = vadd.xlane.f32.xlu1 %v52_v20 }
  0xf1   :  { %v51_v21 = vpop.xlane.xlu1 %50 }
  0xf2   :  { %v55_v22 = vmul.f32 %v51_v21, %v42_v10 }
  0xf4   :  { %v57_v23 = vadd.f32 1e-05, %v55_v22 }
  0xf6   :  { %256 = vrsqrt.f32 %v57_v23  ;;  %vm65_vm3 = vweird.f32 %v57_v23 }
  0xf9   :  { %v54_v25 = vpop.xlane.xlu1 %53 }
  0xfa   :  { %v56_v26 = vmul.f32 %v54_v25, %v42_v10 }
  0xfc   :  { %v257_v28 = vpop.eup %256  ;;  %v58_v29 = vadd.f32 1e-05, %v56_v26 }
  0xfd   :  { %v60_v30 = vmul.f32 %v257_v28, %v57_v23  ;;  %vm66_vm2 = vweird.f32 %v257_v28 }
  0xfe   :  { %258 = vrsqrt.f32 %v58_v29  ;;  %vm67_vm4 = vmor %vm65_vm3, %vm66_vm2  ;;  %vm75_vm7 = vweird.f32 %v58_v29 }
  0xff   :  { %v61_v31 = vmul.f32 %v257_v28, %v60_v30 }
 0x101   :  { %v62_v32 = vmul.f32 0.5, %v61_v31 }
 0x103   :  { %v63_v33 = vsub.f32 1.5, %v62_v32 }
 0x104   :  { %v259_v34 = vpop.eup %258 }
 0x105   :  { %v64_v35 = vmul.f32 %v257_v28, %v63_v33  ;;  %v70_v36 = vmul.f32 %v259_v34, %v58_v29  ;;  %vm76_vm5 = vweird.f32 %v259_v34 }
 0x106   :  { %vm77_vm8 = vmor %vm75_vm7, %vm76_vm5 }
 0x107   :  { %v68_v38 = vsel %vm67_vm4, %v257_v28, %v64_v35  ;;  %v71_v39 = vmul.f32 %v259_v34, %v70_v36 }
 0x108   :  { %v79_v41 = vmul.f32 %v68_v38, %v45_v13 }
 0x109   :  { %v72_v42 = vmul.f32 0.5, %v71_v39 }
 0x10a   :  { %v84_v43 = vmul.f32 %v251_v37, %v79_v41 }
 0x10b   :  { %v73_v44 = vsub.f32 1.5, %v72_v42 }
 0x10c   :  { %v89_v45 = vadd.f32 %v252_v40, %v84_v43 }
 0x10d   :  { %v74_v46 = vmul.f32 %v259_v34, %v73_v44 }
 0x10e   :  { %v91_v47 = vpack.c.bf16 %v89_v45, %v89_v45 }
 0x10f   :  { %v78_v48 = vsel %vm77_vm8, %v259_v34, %v74_v46 }
 0x110   :  { %94 = vst.msk [vmem:[#allocation2] sm:$0xf] %vm93_vm6, %v91_v47  ;;  %v80_v49 = vmul.f32 %v78_v48, %v46_v18 }
 0x112   :  { %v85_v50 = vmul.f32 %v251_v37, %v80_v49 }
 0x114   :  { %v90_v51 = vadd.f32 %v252_v40, %v85_v50 }
 0x116   :  { %v92_v52 = vpack.c.bf16 %v90_v51, %v90_v51 }
 0x118   :  { %95 = vst.msk [vmem:[#allocation2 + $0x4] sm:$0xf] %vm93_vm6, %v92_v52 }
 0x11f   :  { %v242_v53 = vld [vmem:[#allocation2] sm:$0xff] }
 0x120   :  { %241 = vmatmul.msk.bf16.vlgmr.msra.gmra.mxu0 %vm29_vm0, %v242_v53 }
 0x19d   :  { %v136_v55 = vpop.f32.mrf.mxu0 }
 0x19e   :  { %v325_v56 = vadd.f32 %v253_v54, %v136_v55 }
 0x1a0   :  { %v328_v57 = vmul.f32 0.70710677, %v325_v56 }
 0x1a2   :  { %v145_v58 = vand.u32 2147483647, %v328_v57  ;;  %vm211_vm1 = vcmp.ge.f32.partialorder %v328_v57, 0.0 }
 0x1a4   :  { %v147_v59 = vmul.f32 0.3275911, %v145_v58  ;;  %v199_v14 = vsub.f32 0.0, %v145_v58 }
 0x1a5   :  { %v138_v60 = vpop.f32.mrf.mxu0 }
 0x1a6   :  { %v149_v61 = vadd.f32 1.0, %v147_v59  ;;  %v331_v62 = vadd.f32 %v253_v54, %v138_v60  ;;  %v201_v20 = vmul.f32 %v199_v14, %v145_v58  ;;  %v141_v60 = vmul.f32 0.5, %v325_v56 }
 0x1a8   :  { %260 = vrcp.f32 %v149_v61  ;;  %v334_v63 = vmul.f32 0.70710677, %v331_v62  ;;  %v162_v6 = vand.u32 2147483648, %v149_v61  ;;  %v160_v8 = vand.u32 2147483647, %v149_v61 }
 0x1a9   :  { %vm156_vm10 = vweird.f32 %v149_v61  ;;  %v203_v27 = vmul.f32 1.442695, %v201_v20 }
 0x1aa   :  { %v146_v0 = vand.u32 2147483647, %v334_v63  ;;  %v163_v10 = vor.u32 1.1754944e-38, %v162_v6  ;;  %vm161_vm12 = vcmp.eq.f32.partialorder %v160_v8, 8.507059e+37  ;;  %vm212_vm2 = vcmp.ge.f32.partialorder %v334_v63, 0.0 }
 0x1ac   :  { %v148_v1 = vmul.f32 0.3275911, %v146_v0  ;;  %v200_v31 = vsub.f32 0.0, %v146_v0 }
 0x1ae   :  { %v261_v2 = vpop.eup %260  ;;  %v150_v4 = vadd.f32 1.0, %v148_v1  ;;  %v202_v36 = vmul.f32 %v200_v31, %v146_v0 }
 0x1af   :  { %v152_v3 = vmul.f32 %v261_v2, %v149_v61  ;;  %vm157_vm9 = vweird.f32 %v261_v2  ;;  %v142_v61 = vmul.f32 0.5, %v331_v62 }
 0x1b0   :  { %262 = vrcp.f32 %v150_v4  ;;  %vm158_vm11 = vmor %vm156_vm10, %vm157_vm9  ;;  %v177_v19 = vand.u32 2147483648, %v150_v4  ;;  %v175_v22 = vand.u32 2147483647, %v150_v4  ;;  %vm171_vm14 = vweird.f32 %v150_v4 }
 0x1b1   :  { %v153_v5 = vsub.f32 1.0, %v152_v3  ;;  %264 = vpow2.f32 %v203_v27  ;;  %v205_v41 = vmul.f32 1.442695, %v202_v36 }
 0x1b2   :  { %v178_v26 = vor.u32 1.1754944e-38, %v177_v19  ;;  %vm176_vm0 = vcmp.eq.f32.partialorder %v175_v22, 8.507059e+37 }
 0x1b3   :  { %v154_v7 = vmul.f32 %v261_v2, %v153_v5  ;;  %266 = vpow2.f32 %v205_v41 }
 0x1b5   :  { %v155_v9 = vadd.f32 %v261_v2, %v154_v7 }
 0x1b6   :  { %v263_v11 = vpop.eup %262 }
 0x1b7   :  { %v159_v12 = vsel %vm158_vm11, %v261_v2, %v155_v9  ;;  %v167_v15 = vmul.f32 %v263_v11, %v150_v4  ;;  %vm172_vm13 = vweird.f32 %v263_v11  ;;  %v265_v42 = vpop.eup %264 }
 0x1b8   :  { %v164_v13 = vsel %vm161_vm12, %v163_v10, %v159_v12  ;;  %vm173_vm15 = vmor %vm171_vm14, %vm172_vm13 }
 0x1b9   :  { %v181_v16 = vmul.f32 1.0614054, %v164_v13  ;;  %v168_v17 = vsub.f32 1.0, %v167_v15  ;;  %v267_v51 = vpop.eup %266 }
 0x1bb   :  { %v183_v18 = vadd.f32 -1.4531521, %v181_v16  ;;  %v169_v21 = vmul.f32 %v263_v11, %v168_v17 }
 0x1bd   :  { %v185_v23 = vmul.f32 %v183_v18, %v164_v13  ;;  %v170_v24 = vadd.f32 %v263_v11, %v169_v21 }
 0x1bf   :  { %v187_v25 = vadd.f32 1.4214138, %v185_v23  ;;  %v174_v28 = vsel %vm173_vm15, %v263_v11, %v170_v24 }
 0x1c0   :  { %v179_v30 = vsel %vm176_vm0, %v178_v26, %v174_v28 }
 0x1c1   :  { %v189_v29 = vmul.f32 %v187_v25, %v164_v13  ;;  %v182_v32 = vmul.f32 1.0614054, %v179_v30 }
 0x1c3   :  { %v191_v33 = vadd.f32 -0.28449672, %v189_v29  ;;  %v184_v34 = vadd.f32 -1.4531521, %v182_v32 }
 0x1c5   :  { %v193_v35 = vmul.f32 %v191_v33, %v164_v13  ;;  %v186_v37 = vmul.f32 %v184_v34, %v179_v30 }
 0x1c7   :  { %v195_v38 = vadd.f32 0.2548296, %v193_v35  ;;  %v188_v39 = vadd.f32 1.4214138, %v186_v37 }
 0x1c9   :  { %v197_v40 = vmul.f32 %v195_v38, %v164_v13  ;;  %v190_v43 = vmul.f32 %v188_v39, %v179_v30 }
 0x1cb   :  { %v207_v44 = vmul.f32 %v265_v42, %v197_v40  ;;  %v192_v45 = vadd.f32 -0.28449672, %v190_v43 }
 0x1cd   :  { %v209_v46 = vsub.f32 1.0, %v207_v44  ;;  %v194_v47 = vmul.f32 %v192_v45, %v179_v30 }
 0x1cf   :  { %v196_v48 = vadd.f32 0.2548296, %v194_v47  ;;  %v213_v49 = vsub.f32 0.0, %v209_v46 }
 0x1d1   :  { %v198_v50 = vmul.f32 %v196_v48, %v179_v30  ;;  %v215_v53 = vsel %vm211_vm1, %v209_v46, %v213_v49 }
 0x1d2   :  { %v217_v58 = vadd.f32 1.0, %v215_v53 }
 0x1d3   :  { %v208_v52 = vmul.f32 %v267_v51, %v198_v50 }
 0x1d4   :  { %v219_v1 = vmul.f32 %v217_v58, %v141_v60 }
 0x1d5   :  { %v210_v54 = vsub.f32 1.0, %v208_v52 }
 0x1d7   :  { %v214_v55 = vsub.f32 0.0, %v210_v54 }
 0x1d9   :  { %v216_v59 = vsel %vm212_vm2, %v210_v54, %v214_v55 }
 0x1da   :  { %v218_v0 = vadd.f32 1.0, %v216_v59 }
 0x1dc   :  { %v220_v2 = vmul.f32 %v218_v0, %v142_v61 }
 0x1de   :  { %v248_v3 = vpack.c.bf16 %v220_v2, %v219_v1 }
 0x1e0   :  { %249 = vst [vmem:[%s349_s5] sm:$0xff] %v248_v3  }

// kernel: base_transformer_cross_attn.29
= control target key start
LH: loop header
LB: loop body
LE: loop exit
PB: predicated region body
PF: predicated region fallthrough
CT: control target
= control target key end

     0   :  { %vm19_vm0 = vcmask 261120   ;;  %s184_s0 = inlined_call_operand.vmem [shape: f32[16,32], index: 0, kind: input, shape index: {}]   ;;  %s185_s1 = inlined_call_operand.vmem [shape: f32[1,32], index: 1, kind: input, shape index: {}]   ;;  %s186_s2 = inlined_call_operand.vmem [shape: f32[1,32], index: 2, kind: input, shape index: {}]   ;;  %s187_s3 = inlined_call_operand.hbm [shape: f32[16,32], index: 3, kind: output, shape index: {}]  }
   0x1   :  { %v15_v0 = vld [vmem:[%s184_s0] sm:$0xff] }
   0x2   :  { %v20_v1 = vsel %vm19_vm0, %v15_v0, 0.0 }
   0x3   :  { %8 = vsyncpa [#allocation3], 0  ;;  %21 = vadd.xlane.f32.xlu0 %v20_v1  ;;  %v16_v2 = vld [vmem:[%s184_s0 + $0x8] sm:$0xff]  ;;  %v139_v4 = vmov 32.0   ;;  %v105_v35 = vld [vmem:[%s185_s1] ss:$0 sm:$0xff] }
   0x4   :  { %v23_v3 = vsel %vm19_vm0, %v16_v2, 0.0  ;;  %107 = vrcp.f32 %v139_v4  ;;  %v106_v39 = vld [vmem:[%s186_s2] ss:$0 sm:$0xff]  ;;  %s140_s1 = smov [#allocation2]   ;;  %s89_s22 = sshll.u32 %s187_s3, 4  ;;  %s90_s22 = int_to_ptr.hbm [resolvable:$true] %s89_s22 }
   0x5   :  { %s87_s19 = sshll.u32 %s140_s1, 4  ;;  %s141_s2 = smov 128   ;;  %s88_s19 = int_to_ptr.vmem [resolvable:$true] %s87_s19 }
   0x6   :  { %s142_s23 = smov 8  }
   0xa   :  { %v108_v5 = vpop.eup %107 }
   0xb   :  { %24 = vadd.xlane.f32.xlu0 %v23_v3  ;;  %v27_v6 = vmul.f32 32.0, %v108_v5  ;;  %vm31_vm1 = vweird.f32 %v108_v5 }
   0xd   :  { %v28_v7 = vsub.f32 1.0, %v27_v6 }
   0xf   :  { %v29_v8 = vmul.f32 %v108_v5, %v28_v7 }
  0x11   :  { %v30_v9 = vadd.f32 %v108_v5, %v29_v8 }
  0x13   :  { %v32_v10 = vsel %vm31_vm1, %v108_v5, %v30_v9 }
  0x76   :  { %v22_v11 = vpop.xlane.xlu0 %21 }
  0x77   :  { %v33_v12 = vmul.f32 %v32_v10, %v22_v11 }
  0x79   :  { %v35_v13 = vsub.f32 %v15_v0, %v33_v12 }
  0x7b   :  { %v37_v14 = vmul.f32 %v35_v13, %v35_v13 }
  0x7d   :  { %v39_v15 = vsel %vm19_vm0, %v37_v14, 0.0 }
  0x7e   :  { %40 = vadd.xlane.f32.xlu1 %v39_v15  ;;  %v25_v16 = vpop.xlane.xlu0 %24 }
  0x7f   :  { %v34_v17 = vmul.f32 %v32_v10, %v25_v16 }
  0x81   :  { %v36_v18 = vsub.f32 %v16_v2, %v34_v17 }
  0x83   :  { %v38_v19 = vmul.f32 %v36_v18, %v36_v18 }
  0x85   :  { %v42_v20 = vsel %vm19_vm0, %v38_v19, 0.0 }
  0x86   :  { %43 = vadd.xlane.f32.xlu1 %v42_v20 }
  0xf1   :  { %v41_v21 = vpop.xlane.xlu1 %40 }
  0xf2   :  { %v45_v22 = vmul.f32 %v41_v21, %v32_v10 }
  0xf4   :  { %v47_v23 = vadd.f32 1e-05, %v45_v22 }
  0xf6   :  { %109 = vrsqrt.f32 %v47_v23  ;;  %vm55_vm3 = vweird.f32 %v47_v23 }
  0xf9   :  { %v44_v24 = vpop.xlane.xlu1 %43 }
  0xfa   :  { %v46_v25 = vmul.f32 %v44_v24, %v32_v10 }
  0xfc   :  { %v110_v26 = vpop.eup %109  ;;  %v48_v27 = vadd.f32 1e-05, %v46_v25 }
  0xfd   :  { %v50_v28 = vmul.f32 %v110_v26, %v47_v23  ;;  %vm56_vm2 = vweird.f32 %v110_v26 }
  0xfe   :  { %111 = vrsqrt.f32 %v48_v27  ;;  %vm57_vm4 = vmor %vm55_vm3, %vm56_vm2  ;;  %vm65_vm6 = vweird.f32 %v48_v27 }
  0xff   :  { %v51_v29 = vmul.f32 %v110_v26, %v50_v28 }
 0x101   :  { %v52_v30 = vmul.f32 0.5, %v51_v29 }
 0x103   :  { %v53_v31 = vsub.f32 1.5, %v52_v30 }
 0x104   :  { %v112_v32 = vpop.eup %111 }
 0x105   :  { %v54_v33 = vmul.f32 %v110_v26, %v53_v31  ;;  %v60_v34 = vmul.f32 %v112_v32, %v48_v27  ;;  %vm66_vm5 = vweird.f32 %v112_v32 }
 0x106   :  { %vm67_vm7 = vmor %vm65_vm6, %vm66_vm5 }
 0x107   :  { %v58_v36 = vsel %vm57_vm4, %v110_v26, %v54_v33  ;;  %v61_v37 = vmul.f32 %v112_v32, %v60_v34 }
 0x108   :  { %v69_v38 = vmul.f32 %v58_v36, %v35_v13 }
 0x109   :  { %v62_v40 = vmul.f32 0.5, %v61_v37 }
 0x10a   :  { %v74_v41 = vmul.f32 %v105_v35, %v69_v38 }
 0x10b   :  { %v63_v42 = vsub.f32 1.5, %v62_v40 }
 0x10c   :  { %v79_v43 = vadd.f32 %v106_v39, %v74_v41 }
 0x10d   :  { %v64_v44 = vmul.f32 %v112_v32, %v63_v42 }
 0x10e   :  { %81 = vst.msk [vmem:[#allocation2] sm:$0xff] %vm19_vm0, %v79_v43 }
 0x10f   :  { %v68_v45 = vsel %vm67_vm7, %v112_v32, %v64_v44 }
 0x110   :  { %v70_v46 = vmul.f32 %v68_v45, %v36_v18 }
 0x112   :  { %v75_v47 = vmul.f32 %v105_v35, %v70_v46 }
 0x114   :  { %v80_v48 = vadd.f32 %v106_v39, %v75_v47 }
 0x116   :  { %82 = vst.msk [vmem:[#allocation2 + $0x8] sm:$0xff] %vm19_vm0, %v80_v48 }
 0x117   :  { %95 = dma.vmem_to_hbm [thread:$0]  %s88_s19, 256, %s90_s22, [#allocation3], %s141_s2, %s141_s2, %s142_s23  }
 0x118   :  { %137 = dma.done.wait [#allocation3], 256  }
 0x119   :  { %138 = vsyncadd [#allocation3], 4294967040 }
 0x11a   :  { %100 = vsyncpa [#allocation3], 1 }

// kernel: base_transformer_cross_attn.21
= control target key start
LH: loop header
LB: loop body
LE: loop exit
PB: predicated region body
PF: predicated region fallthrough
CT: control target
= control target key end

     0   :  { %vm21_vm0 = vcmask 261120   ;;  %v185_v2 = vmov 0.0   ;;  %s259_s1 = inlined_call_operand.vmem [shape: bf16[128,32], index: 1, kind: input, shape index: {}]   ;;  %s260_s2 = inlined_call_operand.vmem [shape: f32[1,32], index: 2, kind: input, shape index: {}]   ;;  %s261_s0 = inlined_call_operand.vmem [shape: bf16[16,128], index: 0, kind: input, shape index: {}]   ;;  %s262_s3 = inlined_call_operand.vmem [shape: f32[16,32], index: 3, kind: input, shape index: {}]   ;;  %s263_s4 = inlined_call_operand.vmem [shape: f32[16,32], index: 4, kind: output, shape index: {}]  }
   0x1   :  { %v182_v0 = vld [vmem:[%s259_s1 + $0x38] sm:$0xff]  ;;  %v181_v1 = vld [vmem:[%s259_s1 + $0x30] sm:$0xff]  ;;  %22 = vst.msk [vmem:[#allocation2] sm:$0xff] %vm21_vm0, %v185_v2  ;;  %v180_v3 = vld [vmem:[%s259_s1 + $0x28] sm:$0xff] }
   0x2   :  { %98 = vmatpush.bf16.msra.mxu0 %v182_v0  ;;  %23 = vst.msk [vmem:[#allocation2 + $0x8] sm:$0xff] %vm21_vm0, %v185_v2  ;;  %v179_v4 = vld [vmem:[%s259_s1 + $0x20] sm:$0xff]  ;;  %v178_v5 = vld [vmem:[%s259_s1 + $0x18] sm:$0xff]  ;;  %v177_v6 = vld [vmem:[%s259_s1 + $0x10] sm:$0xff] }
   0x3   :  { %v176_v7 = vld [vmem:[%s259_s1 + $0x8] sm:$0xff]  ;;  %v175_v8 = vld [vmem:[%s259_s1] sm:$0xff] }
   0x4   :  { %v174_v9 = vld [vmem:[%s261_s0] sm:$0xff]  ;;  %v129_v21 = vld [vmem:[%s262_s3 + $0x8] sm:$0xff] }
   0x5   :  { %v184_v14 = vld [vmem:[%s260_s2] ss:$0 sm:$0xff] }
   0x6   :  { %99 = vmatpush.bf16.msra.mxu0 %v181_v1  ;;  %v128_v18 = vld [vmem:[%s262_s3] sm:$0xff] }
   0x8   :  { %v24_v10 = vld [vmem:[#allocation2] sm:$0xff] }
   0x9   :  { %v25_v13 = vld [vmem:[#allocation2 + $0x8] sm:$0xff] }
   0xa   :  { %100 = vmatpush.bf16.msra.mxu0 %v180_v3 }
   0xe   :  { %101 = vmatpush.bf16.msra.mxu0 %v179_v4 }
  0x12   :  { %102 = vmatpush.bf16.msra.mxu0 %v178_v5 }
  0x16   :  { %103 = vmatpush.bf16.msra.mxu0 %v177_v6 }
  0x1a   :  { %104 = vmatpush.bf16.msra.mxu0 %v176_v7 }
  0x1e   :  { %105 = vmatpush.bf16.msra.mxu0 %v175_v8 }
  0x21   :  { %106 = vmatmul.bf16.vlgmr.msra.gmra.mxu0 %v174_v9 }
  0x9e   :  { %v107_v11 = vpop.f32.mrf.mxu0 }
  0x9f   :  { %v112_v12 = vadd.f32 %v107_v11, %v24_v10 }
  0xa1   :  { %115 = vst.msk [vmem:[#allocation2] sm:$0xff] %vm21_vm0, %v112_v12 }
  0xa6   :  { %v109_v15 = vpop.f32.mrf.mxu0 }
  0xa7   :  { %v113_v16 = vadd.f32 %v109_v15, %v25_v13 }
  0xa8   :  { %v120_v17 = vld [vmem:[#allocation2] sm:$0xff] }
  0xa9   :  { %v126_v19 = vadd.f32 %v184_v14, %v120_v17  ;;  %116 = vst.msk [vmem:[#allocation2 + $0x8] sm:$0xff] %vm21_vm0, %v113_v16 }
  0xab   :  { %v130_v20 = vadd.f32 %v128_v18, %v126_v19 }
  0xad   :  { %132 = vst.msk [vmem:[%s263_s4] sm:$0xff] %vm21_vm0, %v130_v20 }
  0xb0   :  { %v121_v22 = vld [vmem:[#allocation2 + $0x8] sm:$0xff] }
  0xb1   :  { %v127_v23 = vadd.f32 %v184_v14, %v121_v22 }
  0xb3   :  { %v131_v24 = vadd.f32 %v129_v21, %v127_v23 }
  0xb5   :  { %133 = vst.msk [vmem:[%s263_s4 + $0x8] sm:$0xff] %vm21_vm0, %v131_v24 }

// kernel: base_transformer_cross_attn.19
= control target key start
LH: loop header
LB: loop body
LE: loop exit
PB: predicated region body
PF: predicated region fallthrough
CT: control target
= control target key end

     0   :  { %s1202_s21 = smov 0   ;;  %s1356_s0 = inlined_call_operand.vmem [shape: bf16[2,8,32], index: 0, kind: input, shape index: {}]   ;;  %s1357_s1 = inlined_call_operand.vmem [shape: bf16[2,16,64], index: 1, kind: input, shape index: {}]   ;;  %s1358_s2 = inlined_call_operand.vmem [shape: bf16[1,8,8,16], index: 2, kind: input, shape index: {}]   ;;  %s1359_s3 = inlined_call_operand.vmem [shape: bf16[32,32], index: 3, kind: input, shape index: {}]   ;;  %s1360_s4 = inlined_call_operand.vmem [shape: f32[1,32], index: 4, kind: input, shape index: {}]   ;;  %s1361_s5 = inlined_call_operand.vmem [shape: f32[2,8,32], index: 5, kind: input, shape index: {}]   ;;  %s1362_s6 = inlined_call_operand.vmem [shape: f32[2,8,32], index: 6, kind: output, shape index: {}]  }
   0x1 LB: > { %s1039_s22 = sadd.s32 4294967295, %s1150_s21   ;;  %p1043_p0 = scmp.ge.s32.totalorder %s1150_s21, 1  ;;  %s1150_s21 = sphi %s1202_s21, %s16_s21  }
   0x2   : > { %p230_p1 = scmp.lt.s32.totalorder %s1150_s21, 3 }
   0x4   : > { %p231_p2 = pnand %p1043_p0, %p230_p1 }
   0x5   : > { %p267_p3 = scmp.lt.s32.totalorder (!%p231_p2), %s1039_s22, 1  ;;  %s1152_s7 = smov (!%p231_p2), 124  }
   0x6   : > { %234 = sbr.rel (%p231_p2) target bundleno = 2429 (0x97d), region = 44  ;;  %s1153_s10 = smov (!%p231_p2), 92  }
   0x7   : > { %s1154_s11 = smov (!%p231_p2), 96   ;;  %s1155_s12 = smov (!%p231_p2), 116  }
   0x8   : > { %s1156_s13 = smov (!%p231_p2), 120   ;;  %s1157_s25 = smov (!%p231_p2), 84  }
   0x9   : > { %s1158_s26 = smov (!%p231_p2), 112   ;;  %s1160_s28 = smov (!%p231_p2), 108  }
   0xa   : > { %s1164_s14 = smov (!%p231_p2), 76   ;;  %s1165_s19 = smov (!%p231_p2), 72  }
   0xb   : > { %s1364_s22 = smov (!%p267_p3, %s1039_s22), 1  ;;  %vm303_vm0 = vcmask 31744   ;;  %v324_v8 = vld [vmem:[%s1358_s2] sm:$0xff]   ;;  %vm327_vm1 = vcmask 130048   ;;  %vm363_vm2 = vcmask 1041408   ;;  %v1061_v50 = vld [vmem:[%s1358_s2 + $0x8] sm:$0xff]  }
   0xc   : > { %s1210_s23 = sshll.u32 %s1364_s22, 3  ;;  %s1044_s24 = sshll.u32 %s1364_s22, 2  ;;  %v325_v9 = vunpack.c.l.bf16 %v324_v8  ;;  %v410_v15 = vunpack.c.h.bf16 %v324_v8  ;;  %v288_v41 = vld [vmem:[%s1359_s3] sm:$0xf]  ;;  %v494_v51 = vunpack.c.l.bf16 %v1061_v50  ;;  %vm960_vm3 = vcmask 261120  }
   0xd   : > { %s275_s27 = scalar_lea.vmem %s1357_s1, %s1210_s23  ;;  %s270_s30 = scalar_lea.vmem %s1356_s0, %s1044_s24  ;;  %v365_v42 = vsel %vm363_vm2, %v288_v41, 0  ;;  %v445_v57 = vunpack.c.l.b16 %v288_v41 }
   0xe   : > { %v1219_v0 = vld [vmem:[%s275_s27] sm:$0xff]  ;;  %374 = vmatpush.bf16.msra.mxu2 %v365_v42  ;;  %s279_s20 = scalar_lea.vmem %s1361_s5, %s1210_s23  ;;  %s1159_s27 = smov 88  }
   0xf   : > { %v285_v1 = vld [vmem:[%s270_s30] sm:$0xf]  ;;  %386 = vrot.lane.b32.xlu0 %v1219_v0, %s1152_s7  ;;  %v308_v2 = vsel %vm303_vm0, %v1219_v0, 0  ;;  %v446_v58 = vpack.c.b16 %v445_v57, %v445_v57 }
  0x10   : > { %v382_v3 = vunpack.c.l.b16 %v285_v1  ;;  %317 = vmatpush.bf16.xpose.msra.mxu0 %v308_v2 }
  0x11   : > { %v447_v59 = vrot.slane %v446_v58, 2 }
  0x12   : > { %v1224_v4 = vpack.c.b16 %v382_v3, %v382_v3 }
  0x13   : > { %v452_v61 = vsel %vm363_vm2, %v447_v59, 0 }
  0x14   : > { %461 = vmatpush.bf16.msrb.mxu2 %v452_v61  ;;  %v1295_v61 = vld [vmem:[%s1358_s2 + $0x14] sm:$0xff]  }
  0x17   : > { %384 = vrot.lane.b32.xlu0 %v1224_v4, %s1152_s7  ;;  %1053 = vmatmul.msk.bf16.vlgmr.msra.gmra.mxu0 %vm303_vm0, %v285_v1 }
  0x81   : > { %v387_v5 = vpop.permute.xlu0 %386 }
  0x82   : > { %v392_v6 = vsel %vm303_vm0, %v387_v5, 0 }
  0x83   : > { %401 = vmatpush.bf16.xpose.msra.mxu3 %v392_v6 }
  0x89   : > { %v385_v7 = vpop.permute.xlu0 %384 }
  0x8a   : > { %1056 = vmatmul.msk.bf16.vlgmr.msra.gmra.mxu3 %vm303_vm0, %v385_v7 }
  0x94   : > { %v319_v10 = vpop.f32.mrf.mxu0 }
  0x95   : > { %v323_v11 = vmul.f32 0.5, %v319_v10 }
  0x97   : > { %v326_v12 = vadd.f32 %v325_v9, %v323_v11  ;;  %v1111_v11 = vld [vmem:[%s1360_s4] ss:$0 sm:$0xff] }
  0x99   : > { %v328_v13 = vsel %vm327_vm1, %v326_v12, -inf }
  0x9a   : > { %329 = vmax.xlane.f32.xlu1 %v328_v13 }
  0x9c   : > { %v321_v14 = vpop.f32.mrf.mxu0 }
 0x10d   : > { %v403_v16 = vpop.f32.mrf.mxu3  ;;  %v330_v17 = vpop.xlane.xlu1 %329 }
 0x10e   : > { %v407_v18 = vmul.f32 0.5, %v403_v16  ;;  %v331_v19 = vsub.f32 %v326_v12, %v330_v17  ;;  %v292_v12 = vld [vmem:[%s279_s20] sm:$0xff]  ;;  %s1166_s20 = smov 68  }
 0x10f   : > { %v297_v13 = vadd.f32 %v1111_v11, %v292_v12 }
 0x110   : > { %v332_v20 = vmul.f32 1.442695, %v331_v19  ;;  %v411_v21 = vadd.f32 %v410_v15, %v407_v18  ;;  %v574_v18 = vunpack.c.h.bf16 %v1061_v50 }
 0x112   : > { %1112 = vpow2.f32 %v332_v20  ;;  %v412_v22 = vsel %vm327_vm1, %v411_v21, -inf }
 0x113   : > { %413 = vmax.xlane.f32.xlu1 %v412_v22 }
 0x115   : > { %v405_v23 = vpop.f32.mrf.mxu3 }
 0x118   : > { %v1113_v24 = vpop.eup %1112 }
 0x119   : > { %v334_v25 = vsel %vm327_vm1, %v1113_v24, 0.0 }
 0x11a   : > { %335 = vadd.xlane.f32.xlu2 %v334_v25 }
 0x12c   : > { %424 = vrot.lane.b32.xlu1 %v1219_v0, %s1153_s10 }
 0x132   : > { %340 = vrot.lane.b32.xlu2 %v1219_v0, %s1154_s11  ;;  %s1161_s11 = smov 80  }
 0x134   : > { %548 = vrot.lane.b32.xlu1 %v1224_v4, %s1155_s12 }
 0x13a   : > { %550 = vrot.lane.b32.xlu2 %v1219_v0, %s1155_s12  ;;  %s1162_s12 = smov 104  }
 0x142   : > { %470 = vrot.lane.b32.xlu2 %v1219_v0, %s1156_s13 }
 0x14a   : > { %468 = vrot.lane.b32.xlu2 %v1224_v4, %s1156_s13  ;;  %s1163_s13 = smov 100  }
 0x186   : > { %v414_v26 = vpop.xlane.xlu1 %413 }
 0x187   : > { %v415_v27 = vsub.f32 %v411_v21, %v414_v26 }
 0x189   : > { %v416_v28 = vmul.f32 1.442695, %v415_v27 }
 0x18b   : > { %1114 = vpow2.f32 %v416_v28 }
 0x18d   : > { %v336_v29 = vpop.xlane.xlu2 %335 }
 0x18e   : > { %1116 = vrcp.f32 %v336_v29 }
 0x191   : > { %v1115_v30 = vpop.eup %1114 }
 0x192   : > { %v418_v31 = vsel %vm327_vm1, %v1115_v30, 0.0 }
 0x193   : > { %419 = vadd.xlane.f32.xlu0 %v418_v31 }
 0x194   : > { %v1117_v32 = vpop.eup %1116 }
 0x195   : > { %v341_v33 = vpop.permute.xlu2 %340  ;;  %v338_v34 = vmul.f32 %v1117_v32, %v1113_v24 }
 0x196   : > { %353 = vmatpush.bf16.msra.mxu1 %v341_v33 }
 0x197   : > { %v339_v35 = vpack.c.bf16 %v338_v34, %v338_v34 }
 0x199   : > { %1054 = vmatmul.msk.bf16.vlgmr.msra.gmra.mxu1 %vm327_vm1, %v339_v35 }
 0x19d   : > { %v551_v36 = vpop.permute.xlu2 %550 }
 0x19e   : > { %v425_v40 = vpop.permute.xlu1 %424  ;;  %v556_v60 = vsel %vm303_vm0, %v551_v36, 0 }
 0x19f   : > { %437 = vmatpush.bf16.msrb.mxu1 %v425_v40 }
 0x1a5   : > { %v471_v37 = vpop.permute.xlu2 %470 }
 0x1a6   : > { %v476_v38 = vsel %vm303_vm0, %v471_v37, 0  ;;  %v549_v2 = vpop.permute.xlu1 %548 }
 0x1a7   : > { %485 = vmatpush.bf16.xpose.msrb.mxu0 %v476_v38 }
 0x1ad   : > { %v469_v39 = vpop.permute.xlu2 %468 }
 0x1ae   : > { %1060 = vmatmul.msk.bf16.vlgmr.msrb.gmra.mxu0 %vm303_vm0, %v469_v39  ;;  %v289_v39 = vld [vmem:[%s1359_s3 + $0x4] sm:$0xf] }
 0x1af   : > { %v609_v40 = vunpack.c.l.b16 %v289_v39 }
 0x1b1   : > { %v610_v41 = vpack.c.b16 %v609_v40, %v609_v40 }
 0x1b3   : > { %v611_v42 = vrot.slane %v610_v41, 2 }
 0x206   : > { %v420_v43 = vpop.xlane.xlu0 %419 }
 0x207   : > { %1118 = vrcp.f32 %v420_v43  ;;  %v616_v43 = vsel %vm363_vm2, %v611_v42, 0 }
 0x20d   : > { %v1119_v44 = vpop.eup %1118 }
 0x20e   : > { %v422_v45 = vmul.f32 %v1119_v44, %v1115_v30 }
 0x210   : > { %v423_v46 = vpack.c.bf16 %v422_v45, %v422_v45 }
 0x212   : > { %1058 = vmatmul.msk.bf16.vlgmr.msrb.gmra.mxu1 %vm327_vm1, %v423_v46  ;;  %v532_v46 = vsel %vm363_vm2, %v289_v39, 0 }
 0x213   : > { %541 = vmatpush.bf16.msra.mxu1 %v532_v46 }
 0x216   : > { %v355_v47 = vpop.f32.mrf.mxu1 }
 0x217   : > { %v359_v48 = vpack.c.bf16 %v355_v47, %v355_v47 }
 0x219   : > { %1055 = vmatmul.msk.bf16.vlgmr.msra.gmra.mxu2 %vm303_vm0, %v359_v48 }
 0x21a   : > { %565 = vmatpush.bf16.xpose.msra.mxu2 %v556_v60 }
 0x21e   : > { %v357_v49 = vpop.f32.mrf.mxu1 }
 0x22b   : > { %v487_v52 = vpop.f32.mrf.mxu0 }
 0x22c   : > { %v491_v53 = vmul.f32 0.5, %v487_v52 }
 0x22e   : > { %v495_v54 = vadd.f32 %v494_v51, %v491_v53 }
 0x230   : > { %v496_v55 = vsel %vm327_vm1, %v495_v54, -inf }
 0x231   : > { %497 = vmax.xlane.f32.xlu1 %v496_v55 }
 0x233   : > { %v489_v56 = vpop.f32.mrf.mxu0 }
 0x24a   : > { %588 = vrot.lane.b32.xlu1 %v1219_v0, %s1157_s25 }
 0x28f   : > { %v439_v62 = vpop.f32.mrf.mxu1 }
 0x290   : > { %v443_v63 = vpack.c.bf16 %v439_v62, %v439_v62 }
 0x292   : > { %1059 = vmatmul.msk.bf16.vlgmr.msrb.gmra.mxu2 %vm303_vm0, %v443_v63  ;;  %v738_v63 = vunpack.c.l.bf16 %v1295_v61 }
 0x297   : > { %v441_v1 = vpop.f32.mrf.mxu1 }
 0x29c   : > { %v376_v3 = vpop.f32.mrf.mxu2 }
 0x29d   : > { %v380_v14 = vadd.f32 %v376_v3, %v297_v13 }
 0x2a2   : > { %1064 = vmatmul.msk.bf16.vlgmr.msra.gmra.mxu2 %vm303_vm0, %v549_v2 }
 0x2a4   : > { %v378_v5 = vpop.f32.mrf.mxu2  ;;  %v498_v6 = vpop.xlane.xlu1 %497 }
 0x2a5   : > { %v499_v7 = vsub.f32 %v495_v54, %v498_v6 }
 0x2a7   : > { %v500_v8 = vmul.f32 1.442695, %v499_v7  ;;  %v1069_v7 = vld [vmem:[%s1358_s2 + $0x10] sm:$0xf] }
 0x2a9   : > { %1120 = vpow2.f32 %v500_v8 }
 0x2af   : > { %v1121_v9 = vpop.eup %1120 }
 0x2b0   : > { %v502_v10 = vsel %vm327_vm1, %v1121_v9, 0.0 }
 0x2b1   : > { %503 = vadd.xlane.f32.xlu0 %v502_v10 }
 0x2bc   : > { %v589_v29 = vpop.permute.xlu1 %588 }
 0x2bd   : > { %601 = vmatpush.bf16.msra.mxu0 %v589_v29 }
 0x315   : > { %v463_v15 = vpop.f32.mrf.mxu2 }
 0x316   : > { %v1268_v16 = vadd.f32 %v463_v15, %v380_v14 }
 0x31d   : > { %v465_v17 = vpop.f32.mrf.mxu2 }
 0x324   : > { %v504_v30 = vpop.xlane.xlu0 %503 }
 0x325   : > { %v567_v19 = vpop.f32.mrf.mxu2 }
 0x326   : > { %v571_v20 = vmul.f32 0.5, %v567_v19 }
 0x328   : > { %v575_v21 = vadd.f32 %v574_v18, %v571_v20 }
 0x32a   : > { %v576_v22 = vsel %vm327_vm1, %v575_v21, -inf }
 0x32b   : > { %577 = vmax.xlane.f32.xlu2 %v576_v22 }
 0x32d   : > { %v569_v23 = vpop.f32.mrf.mxu2 }
 0x343   : > { %634 = vrot.lane.b32.xlu2 %v1219_v0, %s1158_s26 }
 0x39e   : > { %v578_v24 = vpop.xlane.xlu2 %577 }
 0x39f   : > { %v579_v25 = vsub.f32 %v575_v21, %v578_v24 }
 0x3a1   : > { %v580_v26 = vmul.f32 1.442695, %v579_v25 }
 0x3a3   : > { %1122 = vpow2.f32 %v580_v26 }
 0x3a6   : > { %v635_v47 = vpop.permute.xlu2 %634 }
 0x3a7   : > { %v640_v48 = vsel %vm303_vm0, %v635_v47, 0 }
 0x3a8   : > { %649 = vmatpush.bf16.xpose.msrb.mxu1 %v640_v48 }
 0x3a9   : > { %v1123_v27 = vpop.eup %1122 }
 0x3aa   : > { %v582_v28 = vsel %vm327_vm1, %v1123_v27, 0.0 }
 0x3ab   : > { %583 = vadd.xlane.f32.xlu0 %v582_v28 }
 0x3bf   : > { %508 = vrot.lane.b32.xlu0 %v1219_v0, %s1159_s27  ;;  %s283_s27 = scalar_lea.vmem %s1362_s6, %s1210_s23 }
 0x3c7   : > { %714 = vrot.lane.b32.xlu0 %v1219_v0, %s1160_s28 }
 0x3cf   : > { %712 = vrot.lane.b32.xlu0 %v1224_v4, %s1160_s28 }
 0x3d7   : > { %632 = vrot.lane.b32.xlu0 %v1224_v4, %s1158_s26 }
 0x41e   : > { %v584_v31 = vpop.xlane.xlu0 %583 }
 0x41f   : > { %1124 = vrcp.f32 %v584_v31 }
 0x420   : > { %1126 = vrcp.f32 %v504_v30 }
 0x425   : > { %v1125_v32 = vpop.eup %1124 }
 0x426   : > { %v586_v33 = vmul.f32 %v1125_v32, %v1123_v27  ;;  %v1127_v35 = vpop.eup %1126 }
 0x427   : > { %v506_v36 = vmul.f32 %v1127_v35, %v1121_v9  ;;  %v658_v9 = vunpack.c.l.bf16 %v1069_v7 }
 0x428   : > { %v587_v34 = vpack.c.bf16 %v586_v33, %v586_v33 }
 0x429   : > { %v507_v38 = vpack.c.bf16 %v506_v36, %v506_v36 }
 0x42a   : > { %1066 = vmatmul.msk.bf16.vlgmr.msra.gmra.mxu0 %vm327_vm1, %v587_v34 }
 0x431   : > { %v509_v37 = vpop.permute.xlu0 %508 }
 0x432   : > { %521 = vmatpush.bf16.msrb.mxu3 %v509_v37 }
 0x435   : > { %1062 = vmatmul.msk.bf16.vlgmr.msrb.gmra.mxu3 %vm327_vm1, %v507_v38 }
 0x436   : > { %625 = vmatpush.bf16.msra.mxu3 %v616_v43 }
 0x439   : > { %v715_v44 = vpop.permute.xlu0 %714 }
 0x43a   : > { %v720_v45 = vsel %vm303_vm0, %v715_v44, 0 }
 0x43b   : > { %729 = vmatpush.bf16.xpose.msrb.mxu3 %v720_v45 }
 0x441   : > { %v713_v52 = vpop.permute.xlu0 %712 }
 0x449   : > { %v633_v56 = vpop.permute.xlu0 %632 }
 0x4a7   : > { %v603_v49 = vpop.f32.mrf.mxu0 }
 0x4a8   : > { %v607_v50 = vpack.c.bf16 %v603_v49, %v603_v49 }
 0x4aa   : > { %1067 = vmatmul.msk.bf16.vlgmr.msra.gmra.mxu3 %vm303_vm0, %v607_v50 }
 0x4af   : > { %v605_v51 = vpop.f32.mrf.mxu0 }
 0x4b8   : > { %v523_v53 = vpop.f32.mrf.mxu3 }
 0x4b9   : > { %v527_v54 = vpack.c.bf16 %v523_v53, %v523_v53 }
 0x4ba   : > { %1072 = vmatmul.msk.bf16.vlgmr.msrb.gmra.mxu3 %vm303_vm0, %v713_v52 }
 0x4bb   : > { %1063 = vmatmul.msk.bf16.vlgmr.msra.gmra.mxu1 %vm303_vm0, %v527_v54 }
 0x4c0   : > { %v525_v55 = vpop.f32.mrf.mxu3 }
 0x4cb   : > { %1068 = vmatmul.msk.bf16.vlgmr.msrb.gmra.mxu1 %vm303_vm0, %v633_v56 }
 0x52d   : > { %v627_v57 = vpop.f32.mrf.mxu3 }
 0x535   : > { %v629_v58 = vpop.f32.mrf.mxu3 }
 0x536   : > { %v1081_v58 = vld [vmem:[%s1358_s2 + $0x1c] sm:$0xf] }
 0x538   : > { %v543_v59 = vpop.f32.mrf.mxu1 }
 0x539   : > { %v547_v60 = vadd.f32 %v543_v59, %v1268_v16  ;;  %v902_v59 = vunpack.c.l.bf16 %v1081_v58 }
 0x53b   : > { %v1297_v62 = vadd.f32 %v627_v57, %v547_v60  ;;  %v822_v60 = vunpack.c.h.bf16 %v1295_v61 }
 0x53d   : > { %v731_v1 = vpop.f32.mrf.mxu3 }
 0x53e   : > { %v735_v2 = vmul.f32 0.5, %v731_v1 }
 0x540   : > { %v545_v3 = vpop.f32.mrf.mxu1  ;;  %v739_v5 = vadd.f32 %v738_v63, %v735_v2 }
 0x542   : > { %v740_v6 = vsel %vm327_vm1, %v739_v5, -inf }
 0x543   : > { %741 = vmax.xlane.f32.xlu0 %v740_v6 }
 0x545   : > { %v733_v8 = vpop.f32.mrf.mxu3 }
 0x548   : > { %v651_v10 = vpop.f32.mrf.mxu1 }
 0x549   : > { %v655_v11 = vmul.f32 0.5, %v651_v10 }
 0x54b   : > { %v659_v12 = vadd.f32 %v658_v9, %v655_v11 }
 0x54d   : > { %v660_v13 = vsel %vm327_vm1, %v659_v12, -inf }
 0x54e   : > { %661 = vmax.xlane.f32.xlu1 %v660_v13 }
 0x550   : > { %v653_v14 = vpop.f32.mrf.mxu1 }
 0x557   : > { %672 = vrot.lane.b32.xlu0 %v1219_v0, %s1161_s11 }
 0x55f   : > { %798 = vrot.lane.b32.xlu0 %v1219_v0, %s1162_s12 }
 0x567   : > { %796 = vrot.lane.b32.xlu0 %v1224_v4, %s1162_s12 }
 0x5b6   : > { %v742_v15 = vpop.xlane.xlu0 %741 }
 0x5b7   : > { %v743_v16 = vsub.f32 %v739_v5, %v742_v15 }
 0x5b9   : > { %v744_v17 = vmul.f32 1.442695, %v743_v16 }
 0x5bb   : > { %1128 = vpow2.f32 %v744_v17 }
 0x5c1   : > { %v1129_v18 = vpop.eup %1128  ;;  %v662_v19 = vpop.xlane.xlu1 %661 }
 0x5c2   : > { %v663_v20 = vsub.f32 %v659_v12, %v662_v19  ;;  %v746_v21 = vsel %vm327_vm1, %v1129_v18, 0.0 }
 0x5c3   : > { %747 = vadd.xlane.f32.xlu1 %v746_v21 }
 0x5c4   : > { %v664_v22 = vmul.f32 1.442695, %v663_v20 }
 0x5c6   : > { %1130 = vpow2.f32 %v664_v22 }
 0x5c9   : > { %v673_v25 = vpop.permute.xlu0 %672 }
 0x5ca   : > { %685 = vmatpush.bf16.msrb.mxu2 %v673_v25 }
 0x5cc   : > { %v1131_v23 = vpop.eup %1130 }
 0x5cd   : > { %v666_v24 = vsel %vm327_vm1, %v1131_v23, 0.0 }
 0x5ce   : > { %667 = vadd.xlane.f32.xlu2 %v666_v24 }
 0x5d1   : > { %v799_v42 = vpop.permute.xlu0 %798 }
 0x5d2   : > { %v804_v43 = vsel %vm303_vm0, %v799_v42, 0 }
 0x5d9   : > { %v797_v51 = vpop.permute.xlu0 %796 }
 0x5dc   : > { %878 = vrot.lane.b32.xlu1 %v1219_v0, %s1163_s13 }
 0x5e6   : > { %752 = vrot.lane.b32.xlu2 %v1219_v0, %s1164_s14 }
 0x5ee   : > { %876 = vrot.lane.b32.xlu2 %v1224_v4, %s1163_s13  ;;  %v290_v4 = vld [vmem:[%s1359_s3 + $0x8] sm:$0xf] }
 0x5ef   : > { %v773_v35 = vunpack.c.l.b16 %v290_v4  ;;  %v696_v39 = vsel %vm363_vm2, %v290_v4, 0 }
 0x5f0   : > { %705 = vmatpush.bf16.msrb.mxu0 %v696_v39 }
 0x5f1   : > { %v774_v36 = vpack.c.b16 %v773_v35, %v773_v35 }
 0x5f3   : > { %v775_v37 = vrot.slane %v774_v36, 2 }
 0x5f4   : > { %813 = vmatpush.bf16.xpose.msra.mxu0 %v804_v43 }
 0x5f5   : > { %v780_v38 = vsel %vm363_vm2, %v775_v37, 0 }
 0x5f6   : > { %789 = vmatpush.bf16.msra.mxu2 %v780_v38 }
 0x636   : > { %v748_v26 = vpop.xlane.xlu1 %747 }
 0x637   : > { %1132 = vrcp.f32 %v748_v26 }
 0x63d   : > { %v1133_v28 = vpop.eup %1132 }
 0x63e   : > { %v750_v29 = vmul.f32 %v1133_v28, %v1129_v18 }
 0x640   : > { %v751_v33 = vpack.c.bf16 %v750_v29, %v750_v29 }
 0x641   : > { %v668_v27 = vpop.xlane.xlu2 %667 }
 0x642   : > { %1134 = vrcp.f32 %v668_v27 }
 0x648   : > { %v1135_v30 = vpop.eup %1134 }
 0x649   : > { %v670_v31 = vmul.f32 %v1135_v30, %v1131_v23  ;;  %v753_v32 = vpop.permute.xlu2 %752 }
 0x64a   : > { %765 = vmatpush.bf16.msra.mxu1 %v753_v32 }
 0x64b   : > { %v671_v34 = vpack.c.bf16 %v670_v31, %v670_v31 }
 0x64d   : > { %1070 = vmatmul.msk.bf16.vlgmr.msrb.gmra.mxu2 %vm327_vm1, %v671_v34  ;;  %1074 = vmatmul.msk.bf16.vlgmr.msra.gmra.mxu1 %vm327_vm1, %v751_v33 }
 0x64e   : > { %v879_v40 = vpop.permute.xlu1 %878 }
 0x64f   : > { %v884_v41 = vsel %vm303_vm0, %v879_v40, 0 }
 0x650   : > { %893 = vmatpush.bf16.xpose.msrb.mxu2 %v884_v41 }
 0x651   : > { %v877_v50 = vpop.permute.xlu2 %876 }
 0x6ca   : > { %v767_v44 = vpop.f32.mrf.mxu1 }
 0x6cb   : > { %v771_v45 = vpack.c.bf16 %v767_v44, %v767_v44 }
 0x6cd   : > { %1075 = vmatmul.msk.bf16.vlgmr.msra.gmra.mxu2 %vm303_vm0, %v771_v45 }
 0x6d0   : > { %v687_v46 = vpop.f32.mrf.mxu2 }
 0x6d1   : > { %v691_v47 = vpack.c.bf16 %v687_v46, %v687_v46 }
 0x6d2   : > { %v769_v48 = vpop.f32.mrf.mxu1 }
 0x6d3   : > { %1071 = vmatmul.msk.bf16.vlgmr.msrb.gmra.mxu0 %vm303_vm0, %v691_v47 }
 0x6d8   : > { %v689_v49 = vpop.f32.mrf.mxu2 }
 0x6dd   : > { %1080 = vmatmul.msk.bf16.vlgmr.msrb.gmra.mxu2 %vm303_vm0, %v877_v50 }
 0x6e3   : > { %1076 = vmatmul.msk.bf16.vlgmr.msra.gmra.mxu0 %vm303_vm0, %v797_v51 }
 0x750   : > { %v707_v52 = vpop.f32.mrf.mxu0  ;;  %v791_v53 = vpop.f32.mrf.mxu2 }
 0x751   : > { %v711_v54 = vadd.f32 %v707_v52, %v1297_v62 }
 0x753   : > { %v1327_v55 = vadd.f32 %v791_v53, %v711_v54 }
 0x758   : > { %v709_v56 = vpop.f32.mrf.mxu0  ;;  %v793_v57 = vpop.f32.mrf.mxu2 }
 0x760   : > { %v815_v63 = vpop.f32.mrf.mxu0  ;;  %v895_v1 = vpop.f32.mrf.mxu2 }
 0x761   : > { %v819_v2 = vmul.f32 0.5, %v815_v63  ;;  %v899_v3 = vmul.f32 0.5, %v895_v1 }
 0x763   : > { %v903_v5 = vadd.f32 %v902_v59, %v899_v3  ;;  %v823_v6 = vadd.f32 %v822_v60, %v819_v2 }
 0x765   : > { %v904_v7 = vsel %vm327_vm1, %v903_v5, -inf  ;;  %v824_v62 = vsel %vm327_vm1, %v823_v6, -inf }
 0x766   : > { %905 = vmax.xlane.f32.xlu2 %v904_v7  ;;  %825 = vmax.xlane.f32.xlu1 %v824_v62 }
 0x768   : > { %v817_v8 = vpop.f32.mrf.mxu0  ;;  %v897_v9 = vpop.f32.mrf.mxu2 }
 0x77e   : > { %836 = vrot.lane.b32.xlu2 %v1219_v0, %s1165_s19 }
 0x7d9   : > { %v906_v10 = vpop.xlane.xlu2 %905  ;;  %v826_v11 = vpop.xlane.xlu1 %825 }
 0x7da   : > { %v907_v61 = vsub.f32 %v903_v5, %v906_v10  ;;  %v827_v12 = vsub.f32 %v823_v6, %v826_v11 }
 0x7dc   : > { %v908_v13 = vmul.f32 1.442695, %v907_v61  ;;  %v828_v14 = vmul.f32 1.442695, %v827_v12 }
 0x7de   : > { %1136 = vpow2.f32 %v908_v13 }
 0x7df   : > { %1138 = vpow2.f32 %v828_v14 }
 0x7e1   : > { %v837_v19 = vpop.permute.xlu2 %836 }
 0x7e2   : > { %849 = vmatpush.bf16.msra.mxu3 %v837_v19 }
 0x7e4   : > { %v1137_v15 = vpop.eup %1136 }
 0x7e5   : > { %v1139_v16 = vpop.eup %1138  ;;  %v910_v17 = vsel %vm327_vm1, %v1137_v15, 0.0 }
 0x7e6   : > { %911 = vadd.xlane.f32.xlu1 %v910_v17  ;;  %v830_v18 = vsel %vm327_vm1, %v1139_v16, 0.0 }
 0x7e7   : > { %831 = vadd.xlane.f32.xlu0 %v830_v18 }
 0x7fb   : > { %916 = vrot.lane.b32.xlu0 %v1219_v0, %s1166_s20  ;;  %v291_v0 = vld [vmem:[%s1359_s3 + $0xc] sm:$0xf] }
 0x7fc   : > { %v937_v29 = vunpack.c.l.b16 %v291_v0  ;;  %v860_v30 = vsel %vm363_vm2, %v291_v0, 0 }
 0x7fd   : > { %869 = vmatpush.bf16.msrb.mxu1 %v860_v30 }
 0x7fe   : > { %v938_v31 = vpack.c.b16 %v937_v29, %v937_v29 }
 0x800   : > { %v939_v32 = vrot.slane %v938_v31, 2 }
 0x802   : > { %v944_v33 = vsel %vm363_vm2, %v939_v32, 0 }
 0x803   : > { %953 = vmatpush.bf16.msrb.mxu3 %v944_v33 }
 0x859   : > { %v912_v21 = vpop.xlane.xlu1 %911 }
 0x85a   : > { %v832_v20 = vpop.xlane.xlu0 %831 }
 0x85b   : > { %1140 = vrcp.f32 %v832_v20 }
 0x85c   : > { %1142 = vrcp.f32 %v912_v21 }
 0x861   : > { %v1141_v22 = vpop.eup %1140 }
 0x862   : > { %v834_v23 = vmul.f32 %v1141_v22, %v1139_v16  ;;  %v1143_v25 = vpop.eup %1142 }
 0x863   : > { %v914_v26 = vmul.f32 %v1143_v25, %v1137_v15 }
 0x864   : > { %v835_v24 = vpack.c.bf16 %v834_v23, %v834_v23 }
 0x865   : > { %v915_v28 = vpack.c.bf16 %v914_v26, %v914_v26 }
 0x866   : > { %1078 = vmatmul.msk.bf16.vlgmr.msra.gmra.mxu3 %vm327_vm1, %v835_v24 }
 0x86d   : > { %v917_v27 = vpop.permute.xlu0 %916 }
 0x86e   : > { %929 = vmatpush.bf16.msrb.mxu0 %v917_v27 }
 0x871   : > { %1082 = vmatmul.msk.bf16.vlgmr.msrb.gmra.mxu0 %vm327_vm1, %v915_v28 }
 0x8e9   : > { %v851_v34 = vpop.f32.mrf.mxu3 }
 0x8ea   : > { %v855_v4 = vpack.c.bf16 %v851_v34, %v851_v34 }
 0x8ec   : > { %1079 = vmatmul.msk.bf16.vlgmr.msrb.gmra.mxu1 %vm303_vm0, %v855_v4 }
 0x8ee   : > { %v931_v35 = vpop.f32.mrf.mxu0 }
 0x8ef   : > { %v935_v36 = vpack.c.bf16 %v931_v35, %v931_v35 }
 0x8f1   : > { %v853_v37 = vpop.f32.mrf.mxu3  ;;  %1083 = vmatmul.msk.bf16.vlgmr.msrb.gmra.mxu3 %vm303_vm0, %v935_v36 }
 0x8f6   : > { %v933_v38 = vpop.f32.mrf.mxu0 }
 0x969   : > { %v871_v39 = vpop.f32.mrf.mxu1 }
 0x96a   : > { %v875_v41 = vadd.f32 %v871_v39, %v1327_v55 }
 0x971   : > { %v873_v40 = vpop.f32.mrf.mxu1 }
 0x974   : > { %v955_v42 = vpop.f32.mrf.mxu3 }
 0x975   : > { %v959_v43 = vadd.f32 %v955_v42, %v875_v41 }
 0x977   : > { %961 = vst.msk [vmem:[%s283_s27] sm:$0xff] %vm960_vm3, %v959_v43 }
 0x97c   : > { %v957_v44 = vpop.f32.mrf.mxu3 }
 0x97d PF: > { %s16_s21 = sadd.s32 1, %s1150_s21  }
 0x97e   : > { %p13_p4 = scmp.ge.s32.totalorder %s16_s21, 4  }
 0x980   :  { %15 = sbr.rel (!%p13_p4) target bundleno = 1 (0x1), region = 87 }

</bundles_post_ra>
